<compile_context>
chip_gen: v7x
topology: tpu7x:2x2x1
jax: 0.10.0
libtpu: 0.0.40
codegen_flags: <defaults>
</compile_context>

<pallas_src>
import functools

import jax
import jax.numpy as jnp
from jax.experimental import pallas as pl
from jax.experimental.pallas import tpu as pltpu


def _round_up(n: int, m: int) -> int:
    return ((n + m - 1) // m) * m


def _mlp_block_kernel(x_ref, w1_ref, b1_ref, w2_ref, b2_ref, g_ref, bta_ref,
                      o_ref, *, eps: float):
    """One row-tile of the fused MLP block.

    x_ref  : (tm, D)  f32   activation tile (kept f32 for residual + LN)
    w1_ref : (D, E)   bf16  extend weight (pre-transposed: x @ w1)
    b1_ref : (1, E)   f32
    w2_ref : (E, D)   bf16  output weight (pre-transposed: h @ w2)
    b2_ref : (1, D)   f32
    g_ref  : (1, D)   f32   LayerNorm gamma
    bta_ref: (1, D)   f32   LayerNorm beta
    o_ref  : (tm, D)  f32
    """
    x = x_ref[...]                                                    # (tm, D) f32

    # extend_layer: Linear -> (Dropout = identity) -> ReLU
    # bf16 operands, f32 MXU accumulation; bias+ReLU in f32 on the VPU.
    h = jnp.dot(x.astype(jnp.bfloat16), w1_ref[...],
                preferred_element_type=jnp.float32)                   # (tm, E)
    h = jnp.maximum(h + b1_ref[...], 0.0)

    # output_layer: Linear -> (Dropout = identity)
    y = jnp.dot(h.astype(jnp.bfloat16), w2_ref[...],
                preferred_element_type=jnp.float32)                   # (tm, D)
    y = y + b2_ref[...]

    # residual + LayerNorm over the model (lane) dim, all f32.
    z = y + x
    mean = jnp.mean(z, axis=-1, keepdims=True)
    zc = z - mean
    var = jnp.mean(zc * zc, axis=-1, keepdims=True)
    inv = jax.lax.rsqrt(var + eps)                                    # EUP
    o_ref[...] = (zc * inv) * g_ref[...] + bta_ref[...]


def prepare_mlp_block_params(w1, b1, w2, b2, gamma, beta):
    """One-time parameter preparation (hoisted out of the per-call hot path).

    Takes PyTorch layouts:
      w1: (E, D) Linear(out=E, in=D).weight,  b1: (E,)
      w2: (D, E) Linear(out=D, in=E).weight,  b2: (D,)
      gamma/beta: (D,) LayerNorm affine.
    """
    E, D = w1.shape
    return dict(
        w1_t=jnp.transpose(w1).astype(jnp.bfloat16),    # (D, E) bf16
        b1=b1.astype(jnp.float32).reshape(1, E),
        w2_t=jnp.transpose(w2).astype(jnp.bfloat16),    # (E, D) bf16
        b2=b2.astype(jnp.float32).reshape(1, D),
        gamma=gamma.astype(jnp.float32).reshape(1, D),
        beta=beta.astype(jnp.float32).reshape(1, D),
    )


def mlp_block_pallas(x, params, *, eps: float = 1e-5, block_rows: int = 2048):
    """Fused MLPBlock forward.  `params` from prepare_mlp_block_params()."""
    orig_shape = x.shape
    D = orig_shape[-1]
    E = params["w1_t"].shape[1]

    x2 = x.reshape(-1, D).astype(jnp.float32)
    M = x2.shape[0]

    # Row-tile: multiple of 8 (sublane), large to amortize per-step overhead,
    # capped so the grid keeps >= 2 steps (v7x dual-TC occupancy).
    tm = min(block_rows, _round_up(max((M + 1) // 2, 8), 8))
    grid = (pl.cdiv(M, tm),)   # no padding: last block is partial, store masked

    flops = 4 * M * D * E                                   # two matmuls
    bytes_accessed = (2 * M * D * 4                         # read x + write out
                      + 2 * D * E * 2                       # bf16 weights
                      + (E + 3 * D) * 4)                    # biases, gamma, beta

    kernel = functools.partial(_mlp_block_kernel, eps=eps)

    out = pl.pallas_call(
        kernel,
        out_shape=jax.ShapeDtypeStruct((M, D), jnp.float32),
        grid_spec=pltpu.PrefetchScalarGridSpec(
            num_scalar_prefetch=0,
            grid=grid,
            in_specs=[
                pl.BlockSpec((tm, D), lambda i: (i, 0)),    # x row tile
                pl.BlockSpec((D, E), lambda i: (0, 0)),     # w1 (broadcast)
                pl.BlockSpec((1, E), lambda i: (0, 0)),     # b1
                pl.BlockSpec((E, D), lambda i: (0, 0)),     # w2
                pl.BlockSpec((1, D), lambda i: (0, 0)),     # b2
                pl.BlockSpec((1, D), lambda i: (0, 0)),     # gamma
                pl.BlockSpec((1, D), lambda i: (0, 0)),     # beta
            ],
            out_specs=pl.BlockSpec((tm, D), lambda i: (i, 0)),
        ),
        compiler_params=pltpu.CompilerParams(
            dimension_semantics=("parallel",),       # 2 TCs on v7x
            vmem_limit_bytes=32 * 1024 * 1024,       # ample for tm<=2048, D=128
        ),
        cost_estimate=pl.CostEstimate(
            flops=flops, transcendentals=M, bytes_accessed=bytes_accessed),
    )(x2, params["w1_t"], params["b1"], params["w2_t"], params["b2"],
      params["gamma"], params["beta"])

    return out.reshape(orig_shape)


def mlp_block_reference(x, w1, b1, w2, b2, gamma, beta, eps=1e-5):
    """Pure-jnp f32 reference mirroring the PyTorch module in eval mode."""
    h = jnp.maximum(jnp.einsum('...d,ed->...e', x, w1) + b1, 0.0)
    y = jnp.einsum('...e,de->...d', h, w2) + b2
    z = y + x
    mean = jnp.mean(z, axis=-1, keepdims=True)
    var = jnp.mean((z - mean) ** 2, axis=-1, keepdims=True)
    return (z - mean) * jax.lax.rsqrt(var + eps) * gamma + beta


if __name__ == "__main__":
    # Module hyperparameters.
    output_dim = 128      # model dim D (lane-dense: multiple of 128)
    extend_dim = 256      # first Linear width E
    dropout = 0.1         # inference mode -> identity

    # Small example input (batch, seq, model_dim); L chosen so M = B*L is NOT a
    # multiple of the row tile, exercising the padding-free masked last block.
    B, L = 4, 250
    key = jax.random.PRNGKey(0)
    key, kx, k1, k2, k3, k4, k5, k6 = jax.random.split(key, 8)

    x = jax.random.normal(kx, (B, L, output_dim), dtype=jnp.float32)

    # Parameters in exact PyTorch Linear / LayerNorm layouts.
    w1 = jax.random.normal(k1, (extend_dim, output_dim), jnp.float32) / jnp.sqrt(
        float(output_dim))                                  # Linear(out=E, in=D).weight
    b1 = jax.random.normal(k2, (extend_dim,), jnp.float32) * 0.1
    w2 = jax.random.normal(k3, (output_dim, extend_dim), jnp.float32) / jnp.sqrt(
        float(extend_dim))                                  # Linear(out=D, in=E).weight
    b2 = jax.random.normal(k4, (output_dim,), jnp.float32) * 0.1
    gamma = 1.0 + 0.1 * jax.random.normal(k5, (output_dim,), jnp.float32)
    beta = 0.1 * jax.random.normal(k6, (output_dim,), jnp.float32)

    # One-time param prep (transpose + bf16 cast), then the fused kernel.
    params = prepare_mlp_block_params(w1, b1, w2, b2, gamma, beta)
    y = mlp_block_pallas(x, params, block_rows=2048)
    y = jax.block_until_ready(y)

    y_ref = mlp_block_reference(x, w1, b1, w2, b2, gamma, beta)
    assert y.shape == y_ref.shape, (y.shape, y_ref.shape)
    max_err = float(jnp.max(jnp.abs(y - y_ref)))
    # bf16 MXU operands (f32 accumulation) vs. the all-f32 reference.
    assert jnp.allclose(y, y_ref, atol=5e-2, rtol=5e-2), max_err
    print("KERNEL_OK")
</pallas_src>

<mosaic_0001>
module attributes {stable_mosaic.version = 11 : i64} {
  func.func @_mlp_block_kernel(%arg0: i32, %arg1: memref<504x128xf32, #tpu.memory_space<vmem>>, %arg2: memref<128x256xbf16, #tpu.memory_space<vmem>>, %arg3: memref<1x256xf32, #tpu.memory_space<vmem>>, %arg4: memref<256x128xbf16, #tpu.memory_space<vmem>>, %arg5: memref<1x128xf32, #tpu.memory_space<vmem>>, %arg6: memref<1x128xf32, #tpu.memory_space<vmem>>, %arg7: memref<1x128xf32, #tpu.memory_space<vmem>>, %arg8: memref<504x128xf32, #tpu.memory_space<vmem>>) attributes {dimension_semantics = [#tpu.dimension_semantics<parallel>], iteration_bounds = array<i64: 2>, scalar_prefetch = 0 : i64, scratch_operands = 0 : i64, tpu.core_type = #tpu.core_type<tc>, window_params = [{transform_indices = @transform_0, window_bounds = array<i64: 504, 128>}, {pipeline_mode = #tpu.pipeline_mode<synchronous>, transform_indices = @transform_1, window_bounds = array<i64: 128, 256>}, {pipeline_mode = #tpu.pipeline_mode<synchronous>, transform_indices = @transform_2, window_bounds = array<i64: 1, 256>}, {pipeline_mode = #tpu.pipeline_mode<synchronous>, transform_indices = @transform_3, window_bounds = array<i64: 256, 128>}, {pipeline_mode = #tpu.pipeline_mode<synchronous>, transform_indices = @transform_4, window_bounds = array<i64: 1, 128>}, {pipeline_mode = #tpu.pipeline_mode<synchronous>, transform_indices = @transform_5, window_bounds = array<i64: 1, 128>}, {pipeline_mode = #tpu.pipeline_mode<synchronous>, transform_indices = @transform_6, window_bounds = array<i64: 1, 128>}, {transform_indices = @transform_7, window_bounds = array<i64: 504, 128>}]} {
    %c0 = arith.constant 0 : index
    %c0_0 = arith.constant 0 : index
    %0 = vector.load %arg1[%c0, %c0_0] : memref<504x128xf32, #tpu.memory_space<vmem>>, vector<504x128xf32>
    %1 = arith.truncf %0 : vector<504x128xf32> to vector<504x128xbf16>
    %c0_1 = arith.constant 0 : index
    %c0_2 = arith.constant 0 : index
    %2 = vector.load %arg2[%c0_1, %c0_2] : memref<128x256xbf16, #tpu.memory_space<vmem>>, vector<128x256xbf16>
    %cst = arith.constant dense<0.000000e+00> : vector<504x256xf32>
    %3 = tpu.matmul %1, %2, %cst {dimension_numbers = #tpu.dot_dimension_numbers<[1], [0], [0], [1], [0, 0, 1, 1], [], []>} : vector<504x128xbf16>, vector<128x256xbf16>, vector<504x256xf32> -> vector<504x256xf32>
    %c0_3 = arith.constant 0 : index
    %c0_4 = arith.constant 0 : index
    %4 = vector.load %arg3[%c0_3, %c0_4] : memref<1x256xf32, #tpu.memory_space<vmem>>, vector<1x256xf32>
    %5 = vector.broadcast %4 : vector<1x256xf32> to vector<504x256xf32>
    %6 = arith.addf %3, %5 : vector<504x256xf32>
    %cst_5 = arith.constant 0.000000e+00 : f32
    %7 = vector.broadcast %cst_5 : f32 to vector<504x256xf32>
    %8 = arith.maximumf %6, %7 : vector<504x256xf32>
    %9 = arith.truncf %8 : vector<504x256xf32> to vector<504x256xbf16>
    %c0_6 = arith.constant 0 : index
    %c0_7 = arith.constant 0 : index
    %10 = vector.load %arg4[%c0_6, %c0_7] : memref<256x128xbf16, #tpu.memory_space<vmem>>, vector<256x128xbf16>
    %cst_8 = arith.constant dense<0.000000e+00> : vector<504x128xf32>
    %11 = tpu.matmul %9, %10, %cst_8 {dimension_numbers = #tpu.dot_dimension_numbers<[1], [0], [0], [1], [0, 0, 1, 1], [], []>} : vector<504x256xbf16>, vector<256x128xbf16>, vector<504x128xf32> -> vector<504x128xf32>
    %c0_9 = arith.constant 0 : index
    %c0_10 = arith.constant 0 : index
    %12 = vector.load %arg5[%c0_9, %c0_10] : memref<1x128xf32, #tpu.memory_space<vmem>>, vector<1x128xf32>
    %13 = vector.broadcast %12 : vector<1x128xf32> to vector<504x128xf32>
    %14 = arith.addf %11, %13 : vector<504x128xf32>
    %15 = arith.addf %14, %0 : vector<504x128xf32>
    %cst_11 = arith.constant dense<0.000000e+00> : vector<504xf32>
    %16 = vector.multi_reduction <add>, %15, %cst_11 [1] : vector<504x128xf32> to vector<504xf32>
    %17 = vector.shape_cast %16 : vector<504xf32> to vector<504x1xf32>
    %cst_12 = arith.constant 1.280000e+02 : f32
    %18 = vector.broadcast %cst_12 : f32 to vector<504x1xf32>
    %19 = arith.divf %17, %18 : vector<504x1xf32>
    %20 = vector.broadcast %19 : vector<504x1xf32> to vector<504x128xf32>
    %21 = arith.subf %15, %20 : vector<504x128xf32>
    %22 = arith.mulf %21, %21 : vector<504x128xf32>
    %cst_13 = arith.constant dense<0.000000e+00> : vector<504xf32>
    %23 = vector.multi_reduction <add>, %22, %cst_13 [1] : vector<504x128xf32> to vector<504xf32>
    %24 = vector.shape_cast %23 : vector<504xf32> to vector<504x1xf32>
    %cst_14 = arith.constant 1.280000e+02 : f32
    %25 = vector.broadcast %cst_14 : f32 to vector<504x1xf32>
    %26 = arith.divf %24, %25 : vector<504x1xf32>
    %cst_15 = arith.constant 9.99999974E-6 : f32
    %27 = vector.broadcast %cst_15 : f32 to vector<504x1xf32>
    %28 = arith.addf %26, %27 : vector<504x1xf32>
    %29 = math.rsqrt %28 : vector<504x1xf32>
    %30 = vector.broadcast %29 : vector<504x1xf32> to vector<504x128xf32>
    %31 = arith.mulf %21, %30 : vector<504x128xf32>
    %c0_16 = arith.constant 0 : index
    %c0_17 = arith.constant 0 : index
    %32 = vector.load %arg6[%c0_16, %c0_17] : memref<1x128xf32, #tpu.memory_space<vmem>>, vector<1x128xf32>
    %33 = vector.broadcast %32 : vector<1x128xf32> to vector<504x128xf32>
    %34 = arith.mulf %31, %33 : vector<504x128xf32>
    %c0_18 = arith.constant 0 : index
    %c0_19 = arith.constant 0 : index
    %35 = vector.load %arg7[%c0_18, %c0_19] : memref<1x128xf32, #tpu.memory_space<vmem>>, vector<1x128xf32>
    %36 = vector.broadcast %35 : vector<1x128xf32> to vector<504x128xf32>
    %37 = arith.addf %34, %36 : vector<504x128xf32>
    %c0_20 = arith.constant 0 : index
    %c0_21 = arith.constant 0 : index
    %38 = vector.load %arg8[%c0_20, %c0_21] : memref<504x128xf32, #tpu.memory_space<vmem>>, vector<504x128xf32>
    tpu.vector_store %arg8[%c0_20, %c0_21], %37 {strides = array<i32>} : memref<504x128xf32, #tpu.memory_space<vmem>>, vector<504x128xf32>,
    return
  }
  func.func @transform_0(%arg0: i32) -> (i32, i32) {
    %c0_i32 = arith.constant 0 : i32
    %c0_i32_0 = arith.constant 0 : i32
    return %arg0, %c0_i32 : i32, i32
  }
  func.func @transform_1(%arg0: i32) -> (i32, i32) {
    %c0_i32 = arith.constant 0 : i32
    %c0_i32_0 = arith.constant 0 : i32
    %c0_i32_1 = arith.constant 0 : i32
    return %c0_i32, %c0_i32_0 : i32, i32
  }
  func.func @transform_2(%arg0: i32) -> (i32, i32) {
    %c0_i32 = arith.constant 0 : i32
    %c0_i32_0 = arith.constant 0 : i32
    %c0_i32_1 = arith.constant 0 : i32
    return %c0_i32, %c0_i32_0 : i32, i32
  }
  func.func @transform_3(%arg0: i32) -> (i32, i32) {
    %c0_i32 = arith.constant 0 : i32
    %c0_i32_0 = arith.constant 0 : i32
    %c0_i32_1 = arith.constant 0 : i32
    return %c0_i32, %c0_i32_0 : i32, i32
  }
  func.func @transform_4(%arg0: i32) -> (i32, i32) {
    %c0_i32 = arith.constant 0 : i32
    %c0_i32_0 = arith.constant 0 : i32
    %c0_i32_1 = arith.constant 0 : i32
    return %c0_i32, %c0_i32_0 : i32, i32
  }
  func.func @transform_5(%arg0: i32) -> (i32, i32) {
    %c0_i32 = arith.constant 0 : i32
    %c0_i32_0 = arith.constant 0 : i32
    %c0_i32_1 = arith.constant 0 : i32
    return %c0_i32, %c0_i32_0 : i32, i32
  }
  func.func @transform_6(%arg0: i32) -> (i32, i32) {
    %c0_i32 = arith.constant 0 : i32
    %c0_i32_0 = arith.constant 0 : i32
    %c0_i32_1 = arith.constant 0 : i32
    return %c0_i32, %c0_i32_0 : i32, i32
  }
  func.func @transform_7(%arg0: i32) -> (i32, i32) {
    %c0_i32 = arith.constant 0 : i32
    %c0_i32_0 = arith.constant 0 : i32
    return %arg0, %c0_i32 : i32, i32
  }
}

</mosaic_0001>

<bundles_post_ra>
// kernel: tpu_custom_call.1
= control target key start
LH: loop header
LB: loop body
LE: loop exit
PB: predicated region body
PF: predicated region fallthrough
CT: control target
= control target key end

     0   :  { %12 = vsyncpa [#allocation3], 0  ;;  %s4615_s0 = inlined_call_operand.hbm [shape: f32[1000,128], index: 0, kind: input, shape index: {}]   ;;  %s4616_s1 = inlined_call_operand.hbm [shape: bf16[128,256], index: 1, kind: input, shape index: {}]   ;;  %s4617_s2 = inlined_call_operand.vmem [shape: f32[1,256], index: 2, kind: input, shape index: {}]   ;;  %s4618_s3 = inlined_call_operand.hbm [shape: bf16[256,128], index: 3, kind: input, shape index: {}]   ;;  %s4619_s4 = inlined_call_operand.vmem [shape: f32[1,128], index: 4, kind: input, shape index: {}]   ;;  %s4620_s5 = inlined_call_operand.vmem [shape: f32[1,128], index: 5, kind: input, shape index: {}]   ;;  %s4621_s6 = inlined_call_operand.vmem [shape: f32[1,128], index: 6, kind: input, shape index: {}]   ;;  %s4622_s7 = inlined_call_operand.hbm [shape: f32[1000,128], index: 7, kind: output, shape index: {}]  }
   0x1   :  { %14 = vsyncpa [#allocation3 + $0x1], 0 }
   0x2   :  { %15 = vsyncpa [#allocation6], 0 }
   0x3   :  { %16 = vsyncpa [#allocation4], 0 }
   0x4   :  { %18 = vsyncpa [#allocation4 + $0x1], 0  ;;  %s3182_s24 = smov 0   ;;  %s3184_s25 = smov 0  }
   0x5   :  { %s3186_s26 = smov 0   ;;  %s3188_s27 = smov 0  }
   0x6 LB: > { %s3203_s28 = sadd.s32 4294967295, %s3127_s27   ;;  %s2582_s29 = sadd.s32 4294967294, %s3127_s27   ;;  %s3127_s27 = sphi %s3188_s27, %s4697_s27   ;;  %s3123_s26 = sphi %s3186_s26, %s4701_s26   ;;  %s3119_s25 = sphi %s3184_s25, %s4700_s25   ;;  %s3115_s24 = sphi %s3182_s24, %s4699_s24  }
   0x7   : > { %s3207_s30 = sadd.s32 1, %s3127_s27   ;;  %s31_s8 = sadd.s32 1, %s3123_s26 }
   0x8   : > { %4646 = sst [smem:[#allocation12_spill]] %s3207_s30  ;;  %s28_s9 = ssub.s32 %s3127_s27, %s3207_s30 }
   0x9   : > { %p38_p0 = scmp.ne.s32.totalorder %s3123_s26, %s3119_s25  ;;  %p29_p1 = scmp.eq.s32.totalorder %s28_s9, 0 }
   0xa   : > { %p39_p2 = scmp.eq.s32.totalorder %s3127_s27, 0  ;;  %p44_p3 = scmp.ne.s32.totalorder %s3119_s25, %s3115_s24 }
   0xb   : > { %p4623_p4 = scmp.eq.s32.totalorder %s3203_s28, 0  ;;  %p194_p7 = scmp.eq.s32.totalorder %s3203_s28, 1 }
   0xc   : > { %s3219_s10 = scalar_select %p29_p1, %s3123_s26, %s31_s8  }
   0xd   : > { %p3221_p5 = por %p39_p2, %p38_p0  ;;  %p3227_p6 = por %p4623_p4, %p44_p3 }
   0xe   : > { %4647 = sst [smem:[#allocation13_spill]] %s3219_s10  ;;  %p200_p8 = scmp.eq.s32.totalorder %s2582_s29, 1 }
   0xf   : > { %s4648_s11 = scalar_select %p3221_p5, 1, 0 }
  0x10   : > { %s4649_s12 = scalar_select %p3227_p6, 1, 0 }
  0x11   : > { %p2583_p9 = scmp.ge.s32.totalorder %s3127_s27, 1  ;;  %p207_p10 = scmp.lt.s32.totalorder %s3127_s27, 3 }
  0x12   : > { %p3234_p11 = por %p194_p7, %p38_p0  ;;  %p3238_p12 = por %p200_p8, %p44_p3 }
  0x13   : > { %p3242_p13 = pnand %p2583_p9, %p207_p10  ;;  %s3129_s16 = smov [#allocation5]  }
  0x14   : > { %s4650_s13 = scalar_select %p3234_p11, 1, 0 }
  0x15   : > { %s4651_s14 = scalar_select %p3238_p12, 1, 0 }
  0x16   : > { %s4653_s15 = scalar_select %p3242_p13, 1, 0 }
  0x17   : > { %4652 = sst [smem:[#allocation14_spill]] %s4651_s14  ;;  %p2683_p1 = pneg %p3242_p13 }
  0x18   : > { %s219_s17 = sshll.u32 %s3129_s16, 4  ;;  %s3130_s19 = smov [#allocation7]   ;;  %s220_s17 = int_to_ptr.vmem [resolvable:$true] %s219_s17 }
  0x19   : > { %p3250_p2 = pnand %p2683_p1, %p4623_p4  ;;  %s235_s20 = sshll.u32 %s3130_s19, 4  ;;  %s3254_s20 = int_to_ptr.vmem [resolvable:$true] %s235_s20 }
  0x1a   : > { %s2973_s23 = scalar_lea.hbm %s4616_s1, 2048 }
  0x1b   : > { %p2974_p0 = scmp.ne.s32.totalorder %s4616_s1, %s2973_s23  ;;  %p2975_p3 = pneg %p3250_p2 }
  0x1c   : > { %p2980_p9 = scmp.lt.u32.totalorder %s2973_s23, %s4616_s1 }
  0x1d   : > { %p2976_p7 = pnand %p2975_p3, %p2974_p0 }
  0x1f   : > { %p2977_p8 = pneg %p2976_p7 }
  0x21   : > { %p2982_p10 = pnand %p2980_p9, %p2977_p8 }
  0x23   : > { %2985 = shalt.err (!%p2982_p10)
}
  0x24   : > { %s2986_s19 = scalar_lea.vmem %s220_s17, 2048  ;;  %p2994_p11 = scmp.lt.s32.totalorder %s220_s17, %s220_s17 }
  0x25   : > { %p2987_p1 = scmp.ne.s32.totalorder %s220_s17, %s2986_s19  ;;  %p2995_p6 = scmp.lt.s32.totalorder %s2986_s19, %s2986_s19 }
  0x27   : > { %p2989_p4 = pnand %p2987_p1, %p2975_p3  ;;  %p2996_p13 = por %p2995_p6, %p2994_p11 }
  0x29   : > { %p2990_p12 = pneg %p2989_p4 }
  0x2b   : > { %p2997_p5 = pnand %p2996_p13, %p2990_p12 }
  0x2d   : > { %3000 = shalt.err (!%p2997_p5)
}
  0x2e   : > { %s3131_s21 = smov 128   ;;  %s3132_s22 = smov 8  }
  0x2f   : > { %2686 = dma.hbm_to_vmem [thread:$0]  (!%p3250_p2), %s4616_s1, 2048, %s220_s17, [#allocation6], %s3131_s21, %s3131_s21, %s3132_s22  }
  0x30   : > { %s3001_s16 = scalar_lea.hbm %s4618_s3, 2048 }
  0x31   : > { %p3002_p4 = scmp.ne.s32.totalorder %s4618_s3, %s3001_s16  ;;  %p3008_p11 = scmp.lt.u32.totalorder %s3001_s16, %s4618_s3 }
  0x33   : > { %p3004_p5 = pnand %p3002_p4, %p2975_p3 }
  0x35   : > { %p3005_p6 = pneg %p3004_p5 }
  0x37   : > { %p3010_p12 = pnand %p3008_p11, %p3005_p6 }
  0x39   : > { %3013 = shalt.err (!%p3010_p12)
}
  0x3a   : > { %s3014_s17 = scalar_lea.vmem %s3254_s20, 2048  ;;  %p3022_p8 = scmp.lt.s32.totalorder %s3254_s20, %s3254_s20 }
  0x3b   : > { %p3015_p13 = scmp.ne.s32.totalorder %s3254_s20, %s3014_s17  ;;  %p3023_p9 = scmp.lt.s32.totalorder %s3014_s17, %s3014_s17 }
  0x3d   : > { %p3017_p0 = pnand %p3015_p13, %p2975_p3  ;;  %p3024_p10 = por %p3023_p9, %p3022_p8 }
  0x3f   : > { %p3018_p7 = pneg %p3017_p0 }
  0x41   : > { %p3025_p1 = pnand %p3024_p10, %p3018_p7 }
  0x43   : > { %3028 = shalt.err (!%p3025_p1)
}
  0x44   : > { %s3133_s30 = smov 64   ;;  %s3134_s10 = smov 4  }
  0x45   : > { %2689 = dma.hbm_to_vmem [thread:$0]  (!%p3250_p2), %s4618_s3, 2048, %s3254_s20, [#allocation6], %s3133_s30, %s3133_s30, %s3134_s10  }
  0x46   : > { %p2586_p4 = scmp.ge.s32.totalorder %s3127_s27, 2 }
  0x47   : > { %p4655_p3 = scmp.ne.s32.totalorder (!%p2586_p4), %s4648_s11, 0 }
  0x48   : > { %254 = sbr.rel (%p2586_p4) target bundleno = 114 (0x72), region = 40 }
  0x4f   : > { %257 = sbr.rel (!%p4655_p3) target bundleno = 114 (0x72), region = 44  ;;  %s258_s22 = sand.u32 (%p4655_p3), 1, %s3123_s26  }
  0x50   : > { %s263_s23 = smul.u32 (%p4655_p3), 63, %s3127_s27  ;;  %s3313_s9 = scalar_lea.sflag (%p4655_p3), [#allocation3], %s258_s22 }
  0x51   : > { %s2671_s29 = smul.u32 (%p4655_p3), 504, %s258_s22 }
  0x52   : > { %s264_s8 = ssub.s32 (%p4655_p3), 125, %s263_s23 }
  0x53   : > { %p265_p5 = scmp.lt.s32.totalorder (%p4655_p3), %s264_s8, 63  ;;  %s262_s16 = scalar_lea.vmem (%p4655_p3), [#allocation2], %s2671_s29 }
  0x56   : > { %s4703_s8 = smov (!%p265_p5, %s264_s8), 63 }
  0x57   : > { %s3310_s18 = sshll.u32 %s4703_s8, 7 }
  0x58   : > { %s269_s20 = ssub.s32 8064, %s3310_s18 }
  0x59   : > { %270 = vsyncadd %s3313_s9, %s269_s20  ;;  %p2588_p2 = scmp.ne.s32.totalorder %s3310_s18, 0  ;;  %s2637_s11 = smul.u32 8064, %s3127_s27 }
  0x5a   : > { %s275_s19 = sshll.u32 %s262_s16, 4  ;;  %s3033_s23 = scalar_lea.hbm %s4615_s0, 16000  ;;  %s3323_s19 = int_to_ptr.vmem [resolvable:$true] %s275_s19 }
  0x5b   : > { %s3321_s10 = scalar_lea.hbm %s4615_s0, %s2637_s11 }
  0x5c   : > { %s3029_s14 = scalar_lea.hbm %s3321_s10, %s3310_s18  ;;  %p3034_p13 = scmp.lt.u32.totalorder %s3321_s10, %s4615_s0 }
  0x5d   : > { %p3030_p6 = scmp.ne.s32.totalorder %s3321_s10, %s3029_s14  ;;  %p3035_p0 = scmp.lt.u32.totalorder %s3033_s23, %s3029_s14 }
  0x5e   : > { %p3037_p8 = scmp.lt.u32.totalorder %s3029_s14, %s3321_s10 }
  0x5f   : > { %p3031_p11 = pnand %p3030_p6, %p2588_p2  ;;  %p3036_p7 = por %p3035_p0, %p3034_p13 }
  0x61   : > { %p3032_p12 = pneg %p3031_p11  ;;  %p3038_p9 = por %p3037_p8, %p3036_p7 }
  0x63   : > { %p3039_p10 = pnand %p3038_p9, %p3032_p12 }
  0x65   : > { %3042 = shalt.err (!%p3039_p10)
}
  0x66   : > { %s3043_s20 = scalar_lea.vmem %s3323_s19, %s3310_s18  ;;  %s3135_s16 = smov [#allocation2]  }
  0x67   : > { %p3044_p1 = scmp.ne.s32.totalorder %s3323_s19, %s3043_s20  ;;  %s3047_s11 = sshll.u32 %s3135_s16, 4  ;;  %s3048_s11 = int_to_ptr.vmem [resolvable:$false] %s3047_s11 }
  0x68   : > { %s3049_s17 = scalar_lea.vmem %s3048_s11, 16128  ;;  %p3050_p6 = scmp.lt.s32.totalorder %s3323_s19, %s3048_s11 }
  0x69   : > { %p3045_p3 = pnand %p3044_p1, %p2588_p2  ;;  %p3051_p11 = scmp.lt.s32.totalorder %s3049_s17, %s3043_s20 }
  0x6b   : > { %p3046_p5 = pneg %p3045_p3  ;;  %p3052_p13 = por %p3051_p11, %p3050_p6 }
  0x6d   : > { %p3053_p0 = pnand %p3052_p13, %p3046_p5 }
  0x6f   : > { %3056 = shalt.err (!%p3053_p0)
}
  0x70   : > { %s3136_s30 = smov 128   ;;  %s3137_s14 = smov 8  }
  0x71   : > { %281 = dma.hbm_to_vmem [thread:$0]  (%p2588_p2), %s3321_s10, %s3310_s18, %s3323_s19, %s3313_s9, %s3136_s30, %s3136_s30, %s3137_s14  }
  0x72 PF: > { %p4656_p12 = scmp.ne.s32.totalorder %s4653_s15, 0 }
  0x74   : > { %287 = sbr.rel (%p4656_p12) target bundleno = 1194 (0x4aa), region = 48 }
  0x7b   : > { %s3353_s21 = sand.u32 1, %s3119_s25   ;;  %p4657_p7 = scmp.ne.s32.totalorder %s4649_s12, 0 }
  0x7c   : > { %s2672_s22 = smul.u32 504, %s3353_s21  ;;  %s290_s23 = scalar_lea.sflag [#allocation3], %s3353_s21 }
  0x7e   : > { %s3359_s29 = scalar_lea.vmem [#allocation2], %s2672_s22 }
  0x7f   : > { %3102 = dma.done.wait (%p4657_p7), %s290_s23, 8064  }
  0x80   : > { %3104 = vsyncadd (%p4657_p7), %s290_s23, 4294959232  ;;  %p4658_p2 = scmp.eq.s32.totalorder %s3203_s28, 0 }
  0x82   : > { %3106 = dma.done.wait (%p4658_p2), [#allocation6], 4096   ;;  %p4659_p8 = pmov %p4658_p2 }
  0x83   : > { %v3138_v0 = vmov 0   ;;  %v2742_v1 = vld [vmem:[#allocation5 + $0x4] ss:$8 sps:$4 sm:$0xff]   ;;  %v2744_v2 = vld [vmem:[#allocation5] ss:$8 sps:$4 sm:$0xff]   ;;  %v2768_v14 = vld [vmem:[#allocation7 + $0x10] sm:$0xff]  }
  0x84   : > { %3108 = vsyncadd (%p4659_p8), [#allocation6], 4294963200  ;;  %578 = vmatprep.mubr.bf16.mxu0 %v3138_v0  ;;  %2639 = vmatprep.subr.bf16.mxu1 %v3138_v0  ;;  %v2745_v3 = vld [vmem:[#allocation5 + $0x14] ss:$8 sps:$4 sm:$0xff]   ;;  %v2747_v4 = vld [vmem:[#allocation5 + $0x10] ss:$8 sps:$4 sm:$0xff]  }
  0x85   : > { %546 = vmatprep.subr.bf16.mxu0 %v2742_v1  ;;  %v2748_v5 = vld [vmem:[#allocation5 + $0x24] ss:$8 sps:$4 sm:$0xff]   ;;  %v2750_v6 = vld [vmem:[#allocation5 + $0x20] ss:$8 sps:$4 sm:$0xff]   ;;  %v2751_v7 = vld [vmem:[#allocation5 + $0x34] ss:$8 sps:$4 sm:$0xff]  }
  0x86   : > { %547 = vmatpush1.bf16.msra.mxu0 %v2744_v2  ;;  %v2753_v8 = vld [vmem:[#allocation5 + $0x30] ss:$8 sps:$4 sm:$0xff]   ;;  %v2754_v9 = vld [vmem:[#allocation5 + $0x44] ss:$8 sps:$4 sm:$0xff]   ;;  %v2756_v12 = vld [vmem:[#allocation5 + $0x40] ss:$8 sps:$4 sm:$0xff]  }
  0x87   : > { %548 = vmatprep.subr.bf16.mxu0 %v2745_v3  ;;  %v2766_v10 = vld [vmem:[#allocation7] sm:$0xff]   ;;  %v2767_v11 = vld [vmem:[#allocation7 + $0x8] sm:$0xff]   ;;  %v2757_v13 = vld [vmem:[#allocation5 + $0x54] ss:$8 sps:$4 sm:$0xff]   ;;  %s4209_s16 = scalar_lea.vmem [#allocation8], %s2672_s22  ;;  %s2471_s22 = scalar_lea.sflag [#allocation4], %s3353_s21 }
  0x88   : > { %2655 = vmatpush1.bf16.msra.mxu1 %v2766_v10  ;;  %v2759_v15 = vld [vmem:[#allocation5 + $0x50] ss:$8 sps:$4 sm:$0xff]   ;;  %v2760_v16 = vld [vmem:[#allocation5 + $0x64] ss:$8 sps:$4 sm:$0xff]   ;;  %v2762_v18 = vld [vmem:[#allocation5 + $0x60] ss:$8 sps:$4 sm:$0xff]  }
  0x89   : > { %2640 = vmatprep.subr.bf16.mxu1 %v3138_v0  ;;  %v2769_v17 = vld [vmem:[#allocation7 + $0x18] sm:$0xff]   ;;  %v2770_v21 = vld [vmem:[#allocation7 + $0x20] sm:$0xff]   ;;  %v343_v22 = vld [vmem:[%s3359_s29] sm:$0xff]  ;;  %p4694_p9 = scmp.ne.s32.totalorder %s4650_s13, 0 }
  0x8a   : > { %549 = vmatpush1.bf16.msra.mxu0 %v2747_v4  ;;  %v2763_v19 = vld [vmem:[#allocation5 + $0x74] ss:$8 sps:$4 sm:$0xff]   ;;  %v2765_v20 = vld [vmem:[#allocation5 + $0x70] ss:$8 sps:$4 sm:$0xff]   ;;  %v2771_v24 = vld [vmem:[#allocation7 + $0x28] sm:$0xff]   ;;  %s2478_s23 = smul.u32 (%p4694_p9), 63, %s3203_s28 }
  0x8b   : > { %550 = vmatprep.subr.bf16.mxu0 %v2748_v5  ;;  %v344_v23 = vld [vmem:[%s3359_s29 + $0x8] sm:$0xff]  ;;  %v345_v27 = vld [vmem:[%s3359_s29 + $0x10] sm:$0xff]  ;;  %v346_v28 = vld [vmem:[%s3359_s29 + $0x18] sm:$0xff] }
  0x8c   : > { %2656 = vmatpush1.bf16.msra.mxu1 %v2767_v11  ;;  %v406_v25 = vpack.c.bf16 %v344_v23, %v343_v22  ;;  %v2772_v26 = vld [vmem:[#allocation7 + $0x30] sm:$0xff]   ;;  %v407_v29 = vpack.c.bf16 %v346_v28, %v345_v27  ;;  %v2773_v30 = vld [vmem:[#allocation7 + $0x38] sm:$0xff]   ;;  %v2774_v31 = vld [vmem:[#allocation7 + $0x40] sm:$0xff]  }
  0x8d   : > { %2641 = vmatprep.subr.bf16.mxu1 %v3138_v0  ;;  %v347_v32 = vld [vmem:[%s3359_s29 + $0x20] sm:$0xff]  ;;  %v348_v33 = vld [vmem:[%s3359_s29 + $0x28] sm:$0xff]  ;;  %v349_v36 = vld [vmem:[%s3359_s29 + $0x30] sm:$0xff] }
  0x8e   : > { %551 = vmatpush1.bf16.msra.mxu0 %v2750_v6  ;;  %v408_v34 = vpack.c.bf16 %v348_v33, %v347_v32  ;;  %v2775_v35 = vld [vmem:[#allocation7 + $0x48] sm:$0xff]   ;;  %v352_v40 = vld [vmem:[%s3359_s29 + $0x48] sm:$0xff]  ;;  %v353_v43 = vld [vmem:[%s3359_s29 + $0x50] sm:$0xff] }
  0x8f   : > { %552 = vmatprep.subr.bf16.mxu0 %v2751_v7  ;;  %v350_v37 = vld [vmem:[%s3359_s29 + $0x38] sm:$0xff]  ;;  %v351_v39 = vld [vmem:[%s3359_s29 + $0x40] sm:$0xff]  ;;  %v356_v47 = vld [vmem:[%s3359_s29 + $0x68] sm:$0xff] }
  0x90   : > { %2657 = vmatpush1.bf16.msra.mxu1 %v2768_v14  ;;  %v409_v38 = vpack.c.bf16 %v350_v37, %v349_v36  ;;  %v410_v41 = vpack.c.bf16 %v352_v40, %v351_v39  ;;  %v2776_v42 = vld [vmem:[#allocation7 + $0x50] sm:$0xff]   ;;  %v354_v44 = vld [vmem:[%s3359_s29 + $0x58] sm:$0xff]  ;;  %v2777_v49 = vld [vmem:[#allocation7 + $0x58] sm:$0xff]  }
  0x91   : > { %2642 = vmatprep.subr.bf16.mxu1 %v3138_v0  ;;  %v411_v45 = vpack.c.bf16 %v354_v44, %v353_v43  ;;  %v355_v46 = vld [vmem:[%s3359_s29 + $0x60] sm:$0xff]  ;;  %v357_v50 = vld [vmem:[%s3359_s29 + $0x70] sm:$0xff]  ;;  %v358_v51 = vld [vmem:[%s3359_s29 + $0x78] sm:$0xff] }
  0x92   : > { %553 = vmatpush1.bf16.msra.mxu0 %v2753_v8  ;;  %v412_v48 = vpack.c.bf16 %v356_v47, %v355_v46  ;;  %v413_v52 = vpack.c.bf16 %v358_v51, %v357_v50  ;;  %v359_v53 = vld [vmem:[%s3359_s29 + $0x80] sm:$0xff]  ;;  %v360_v54 = vld [vmem:[%s3359_s29 + $0x88] sm:$0xff]  ;;  %v2778_v56 = vld [vmem:[#allocation7 + $0x60] sm:$0xff]  }
  0x93   : > { %554 = vmatprep.subr.bf16.mxu0 %v2754_v9  ;;  %v414_v55 = vpack.c.bf16 %v360_v54, %v359_v53  ;;  %v361_v57 = vld [vmem:[%s3359_s29 + $0x90] sm:$0xff]  ;;  %v362_v58 = vld [vmem:[%s3359_s29 + $0x98] sm:$0xff]  ;;  %v363_v60 = vld [vmem:[%s3359_s29 + $0xa0] sm:$0xff] }
  0x94   : > { %2658 = vmatpush1.bf16.msra.mxu1 %v2769_v17  ;;  %v415_v59 = vpack.c.bf16 %v362_v58, %v361_v57  ;;  %v364_v61 = vld [vmem:[%s3359_s29 + $0xa8] sm:$0xff]  ;;  %v2779_v63 = vld [vmem:[#allocation7 + $0x68] sm:$0xff]   ;;  %v365_v1 = vld [vmem:[%s3359_s29 + $0xb0] sm:$0xff] }
  0x95   : > { %2643 = vmatprep.subr.bf16.mxu1 %v3138_v0  ;;  %v416_v62 = vpack.c.bf16 %v364_v61, %v363_v60  ;;  %v366_v2 = vld [vmem:[%s3359_s29 + $0xb8] sm:$0xff]  ;;  %v367_v4 = vld [vmem:[%s3359_s29 + $0xc0] sm:$0xff]  ;;  %v368_v5 = vld [vmem:[%s3359_s29 + $0xc8] sm:$0xff] }
  0x96   : > { %555 = vmatpush1.bf16.msra.mxu0 %v2756_v12  ;;  %v417_v3 = vpack.c.bf16 %v366_v2, %v365_v1  ;;  %v418_v6 = vpack.c.bf16 %v368_v5, %v367_v4  ;;  %v369_v7 = vld [vmem:[%s3359_s29 + $0xd0] sm:$0xff]  ;;  %v370_v8 = vld [vmem:[%s3359_s29 + $0xd8] sm:$0xff]  ;;  %v2780_v9 = vld [vmem:[#allocation7 + $0x70] sm:$0xff]  }
  0x97   : > { %556 = vmatprep.subr.bf16.mxu0 %v2757_v13  ;;  %v372_v12 = vld [vmem:[%s3359_s29 + $0xe8] sm:$0xff]  ;;  %v378_v22 = vld [vmem:[%s3359_s29 + $0x118] sm:$0xff]  ;;  %v381_v27 = vld [vmem:[%s3359_s29 + $0x130] sm:$0xff] }
  0x98   : > { %2659 = vmatpush1.bf16.msra.mxu1 %v2770_v21  ;;  %v2781_v13 = vld [vmem:[#allocation7 + $0x78] sm:$0xff]   ;;  %v382_v28 = vld [vmem:[%s3359_s29 + $0x138] sm:$0xff]  ;;  %v387_v36 = vld [vmem:[%s3359_s29 + $0x160] sm:$0xff] }
  0x99   : > { %2644 = vmatprep.subr.bf16.mxu1 %v3138_v0  ;;  %v385_v33 = vld [vmem:[%s3359_s29 + $0x150] sm:$0xff]  ;;  %v388_v37 = vld [vmem:[%s3359_s29 + $0x168] sm:$0xff]  ;;  %v390_v40 = vld [vmem:[%s3359_s29 + $0x178] sm:$0xff] }
  0x9a   : > { %557 = vmatpush1.bf16.msra.mxu0 %v2759_v15  ;;  %v373_v15 = vld [vmem:[%s3359_s29 + $0xf0] sm:$0xff]  ;;  %v392_v43 = vld [vmem:[%s3359_s29 + $0x188] sm:$0xff]  ;;  %v394_v46 = vld [vmem:[%s3359_s29 + $0x198] sm:$0xff] }
  0x9b   : > { %558 = vmatprep.subr.bf16.mxu0 %v2760_v16  ;;  %v374_v16 = vld [vmem:[%s3359_s29 + $0xf8] sm:$0xff]  ;;  %v389_v39 = vld [vmem:[%s3359_s29 + $0x170] sm:$0xff]  ;;  %v395_v50 = vld [vmem:[%s3359_s29 + $0x1a0] sm:$0xff] }
  0x9c   : > { %2660 = vmatpush1.bf16.msra.mxu1 %v2771_v24  ;;  %v396_v51 = vld [vmem:[%s3359_s29 + $0x1a8] sm:$0xff]  ;;  %v397_v58 = vld [vmem:[%s3359_s29 + $0x1b0] sm:$0xff] }
  0x9d   : > { %2645 = vmatprep.subr.bf16.mxu1 %v3138_v0  ;;  %v454_v54 = vld [vmem:[%s4617_s2] sm:$0x3] }
  0x9e   : > { %559 = vmatpush1.bf16.msra.mxu0 %v2762_v18  ;;  %v375_v18 = vld [vmem:[%s3359_s29 + $0x100] sm:$0xff] }
  0x9f   : > { %560 = vmatprep.subr.bf16.mxu0 %v2763_v19  ;;  %v376_v19 = vld [vmem:[%s3359_s29 + $0x108] sm:$0xff] }
  0xa0   : > { %2661 = vmatpush1.bf16.msra.mxu1 %v2772_v26 }
  0xa1   : > { %2646 = vmatprep.subr.bf16.mxu1 %v3138_v0 }
  0xa2   : > { %561 = vmatpush1.bf16.msra.mxu0 %v2765_v20  ;;  %v422_v20 = vpack.c.bf16 %v376_v19, %v375_v18 }
  0xa3   : > { %1222 = vmatprep.subr.bf16.mxu0 %v3138_v0 }
  0xa4   : > { %2662 = vmatpush1.bf16.msra.mxu1 %v2773_v30 }
  0xa5   : > { %579 = vmatmul.mubr.bf16.vlgmr.msra.gmra.mrb[0].mxu0 %v406_v25  ;;  %2647 = vmatprep.subr.bf16.mxu1 %v3138_v0  ;;  %v380_v25 = vld [vmem:[%s3359_s29 + $0x128] sm:$0xff] }
  0xa6   : > { %1223 = vmatpush1.bf16.msra.mxu0 %v2766_v10  ;;  %588 = vmatprep.mubr.bf16.mxu0 %v3138_v0  ;;  %v419_v10 = vpack.c.bf16 %v370_v8, %v369_v7 }
  0xa7   : > { %1224 = vmatprep.subr.bf16.mxu0 %v3138_v0 }
  0xa8   : > { %2663 = vmatpush1.bf16.msra.mxu1 %v2774_v31 }
  0xa9   : > { %2648 = vmatprep.subr.bf16.mxu1 %v3138_v0 }
  0xaa   : > { %1225 = vmatpush1.bf16.msra.mxu0 %v2767_v11  ;;  %v371_v11 = vld [vmem:[%s3359_s29 + $0xe0] sm:$0xff] }
  0xab   : > { %1226 = vmatprep.subr.bf16.mxu0 %v3138_v0 }
  0xac   : > { %2664 = vmatpush1.bf16.msra.mxu1 %v2775_v35 }
  0xad   : > { %589 = vmatmul.mubr.bf16.gmra.mrb[4].mxu0 %v407_v29  ;;  %2649 = vmatprep.subr.bf16.mxu1 %v3138_v0  ;;  %v425_v29 = vpack.c.bf16 %v382_v28, %v381_v27  ;;  %v401_v27 = vld [vmem:[%s3359_s29 + $0x1d0] sm:$0xff]  ;;  %v402_v28 = vld [vmem:[%s3359_s29 + $0x1d8] sm:$0xff] }
  0xae   : > { %598 = vmatprep.mubr.bf16.mxu0 %v3138_v0  ;;  %1227 = vmatpush1.bf16.msra.mxu0 %v2768_v14  ;;  %v420_v14 = vpack.c.bf16 %v372_v12, %v371_v11  ;;  %v400_v11 = vld [vmem:[%s3359_s29 + $0x1c8] sm:$0xff] }
  0xaf   : > { %1228 = vmatprep.subr.bf16.mxu0 %v3138_v0 }
  0xb0   : > { %2665 = vmatpush1.bf16.msra.mxu1 %v2776_v42 }
  0xb1   : > { %2650 = vmatprep.subr.bf16.mxu1 %v3138_v0 }
  0xb2   : > { %1229 = vmatpush1.bf16.msra.mxu0 %v2769_v17  ;;  %v421_v17 = vpack.c.bf16 %v374_v16, %v373_v15 }
  0xb3   : > { %1230 = vmatprep.subr.bf16.mxu0 %v3138_v0 }
  0xb4   : > { %2666 = vmatpush1.bf16.msra.mxu1 %v2777_v49 }
  0xb5   : > { %599 = vmatmul.mubr.bf16.gmra.mrb[8].mxu0 %v408_v34  ;;  %2651 = vmatprep.subr.bf16.mxu1 %v3138_v0  ;;  %v386_v34 = vld [vmem:[%s3359_s29 + $0x158] sm:$0xff] }
  0xb6   : > { %608 = vmatprep.mubr.bf16.mxu0 %v3138_v0  ;;  %1231 = vmatpush1.bf16.msra.mxu0 %v2770_v21  ;;  %v377_v21 = vld [vmem:[%s3359_s29 + $0x110] sm:$0xff] }
  0xb7   : > { %1232 = vmatprep.subr.bf16.mxu0 %v3138_v0  ;;  %v423_v23 = vpack.c.bf16 %v378_v22, %v377_v21 }
  0xb8   : > { %2667 = vmatpush1.bf16.msra.mxu1 %v2778_v56 }
  0xb9   : > { %2652 = vmatprep.subr.bf16.mxu1 %v3138_v0 }
  0xba   : > { %1233 = vmatpush1.bf16.msra.mxu0 %v2771_v24  ;;  %v379_v24 = vld [vmem:[%s3359_s29 + $0x120] sm:$0xff] }
  0xbb   : > { %1234 = vmatprep.subr.bf16.mxu0 %v3138_v0 }
  0xbc   : > { %2668 = vmatpush1.bf16.msra.mxu1 %v2779_v63 }
  0xbd   : > { %609 = vmatmul.mubr.bf16.gmra.mrb[12].mxu0 %v409_v38  ;;  %2653 = vmatprep.subr.bf16.mxu1 %v3138_v0  ;;  %v428_v38 = vpack.c.bf16 %v388_v37, %v387_v36 }
  0xbe   : > { %618 = vmatprep.mubr.bf16.mxu0 %v3138_v0  ;;  %1235 = vmatpush1.bf16.msra.mxu0 %v2772_v26  ;;  %v424_v26 = vpack.c.bf16 %v380_v25, %v379_v24 }
  0xbf   : > { %1236 = vmatprep.subr.bf16.mxu0 %v3138_v0 }
  0xc0   : > { %2669 = vmatpush1.bf16.msra.mxu1 %v2780_v9 }
  0xc1   : > { %2654 = vmatprep.subr.bf16.mxu1 %v3138_v0 }
  0xc2   : > { %1237 = vmatpush1.bf16.msra.mxu0 %v2773_v30  ;;  %v383_v30 = vld [vmem:[%s3359_s29 + $0x140] sm:$0xff] }
  0xc3   : > { %1238 = vmatprep.subr.bf16.mxu0 %v3138_v0 }
  0xc4   : > { %2670 = vmatpush1.bf16.msra.mxu1 %v2781_v13 }
  0xc5   : > { %619 = vmatmul.mubr.bf16.gmra.mrb[16].mxu0 %v410_v41  ;;  %v429_v41 = vpack.c.bf16 %v390_v40, %v389_v39 }
  0xc6   : > { %628 = vmatprep.mubr.bf16.mxu0 %v3138_v0  ;;  %1239 = vmatpush1.bf16.msra.mxu0 %v2774_v31  ;;  %v384_v31 = vld [vmem:[%s3359_s29 + $0x148] sm:$0xff] }
  0xc7   : > { %1240 = vmatprep.subr.bf16.mxu0 %v3138_v0  ;;  %v426_v32 = vpack.c.bf16 %v384_v31, %v383_v30 }
  0xca   : > { %1241 = vmatpush1.bf16.msra.mxu0 %v2775_v35  ;;  %v427_v35 = vpack.c.bf16 %v386_v34, %v385_v33  ;;  %v435_v34 = vpack.c.bf16 %v402_v28, %v401_v27 }
  0xcb   : > { %1242 = vmatprep.subr.bf16.mxu0 %v3138_v0 }
  0xcd   : > { %629 = vmatmul.mubr.bf16.gmra.mrb[20].mxu0 %v411_v45  ;;  %v393_v45 = vld [vmem:[%s3359_s29 + $0x190] sm:$0xff] }
  0xce   : > { %638 = vmatprep.mubr.bf16.mxu0 %v3138_v0  ;;  %1243 = vmatpush1.bf16.msra.mxu0 %v2776_v42  ;;  %v391_v42 = vld [vmem:[%s3359_s29 + $0x180] sm:$0xff]  ;;  %v431_v47 = vpack.c.bf16 %v394_v46, %v393_v45  ;;  %v404_v45 = vld [vmem:[%s3359_s29 + $0x1e8] sm:$0xff] }
  0xcf   : > { %1244 = vmatprep.subr.bf16.mxu0 %v3138_v0  ;;  %v430_v44 = vpack.c.bf16 %v392_v43, %v391_v42 }
  0xd2   : > { %1245 = vmatpush1.bf16.msra.mxu0 %v2777_v49 }
  0xd3   : > { %1246 = vmatprep.subr.bf16.mxu0 %v3138_v0 }
  0xd5   : > { %639 = vmatmul.mubr.bf16.gmra.mrb[24].mxu0 %v412_v48  ;;  %v456_v48 = vlaneseq }
  0xd6   : > { %648 = vmatprep.mubr.bf16.mxu0 %v3138_v0  ;;  %1247 = vmatpush1.bf16.msra.mxu0 %v2778_v56 }
  0xd7   : > { %1248 = vmatprep.subr.bf16.mxu0 %v3138_v0  ;;  %v457_v49 = vshrl.u32 %v456_v48, 7 }
  0xd9   : > { %v458_v53 = vsub.s32 0, %v457_v49 }
  0xda   : > { %1249 = vmatpush1.bf16.msra.mxu0 %v2779_v63 }
  0xdb   : > { %1250 = vmatprep.subr.bf16.mxu0 %v3138_v0  ;;  %v3485_v56 = vrot.slane %v454_v54, %v458_v53 }
  0xdd   : > { %649 = vmatmul.mubr.bf16.gmra.mrb[28].mxu0 %v413_v52  ;;  %v432_v52 = vpack.c.bf16 %v396_v51, %v395_v50 }
  0xde   : > { %658 = vmatprep.mubr.bf16.mxu0 %v3138_v0  ;;  %1251 = vmatpush1.bf16.msra.mxu0 %v2780_v9 }
  0xdf   : > { %1252 = vmatprep.subr.bf16.mxu0 %v3138_v0 }
  0xe2   : > { %1253 = vmatpush1.bf16.msra.mxu0 %v2781_v13 }
  0xe5   : > { %659 = vmatmul.mubr.bf16.gmra.mrb[32].mxu0 %v414_v55  ;;  %v462_v55 = vsub.s32 1, %v457_v49 }
  0xe6   : > { %668 = vmatprep.mubr.bf16.mxu0 %v3138_v0 }
  0xe7   : > { %v3487_v57 = vrot.slane %v454_v54, %v462_v55 }
  0xed   : > { %669 = vmatmul.mubr.bf16.gmra.mrb[36].mxu0 %v415_v59  ;;  %v398_v59 = vld [vmem:[%s3359_s29 + $0x1b8] sm:$0xff] }
  0xee   : > { %678 = vmatprep.mubr.bf16.mxu0 %v3138_v0  ;;  %v433_v63 = vpack.c.bf16 %v398_v59, %v397_v58 }
  0xf5   : > { %679 = vmatmul.mubr.bf16.gmra.mrb[40].mxu0 %v416_v62 }
  0xf6   : > { %688 = vmatprep.mubr.bf16.mxu0 %v3138_v0 }
  0xfd   : > { %689 = vmatmul.mubr.bf16.gmra.mrb[44].mxu0 %v417_v3 }
  0xfe   : > { %698 = vmatprep.mubr.bf16.mxu0 %v3138_v0 }
 0x105   : > { %699 = vmatmul.mubr.bf16.gmra.mrb[48].mxu0 %v418_v6 }
 0x106   : > { %708 = vmatprep.mubr.bf16.mxu0 %v3138_v0 }
 0x10d   : > { %709 = vmatmul.mubr.bf16.gmra.mrb[52].mxu0 %v419_v10  ;;  %v399_v10 = vld [vmem:[%s3359_s29 + $0x1c0] sm:$0xff] }
 0x10e   : > { %718 = vmatprep.mubr.bf16.mxu0 %v3138_v0 }
 0x115   : > { %719 = vmatmul.mubr.bf16.gmra.mrb[56].mxu0 %v420_v14 }
 0x116   : > { %728 = vmatprep.mubr.bf16.mxu0 %v3138_v0 }
 0x11d   : > { %729 = vmatmul.mubr.bf16.gmra.mrb[60].mxu0 %v421_v17  ;;  %v434_v17 = vpack.c.bf16 %v400_v11, %v399_v10 }
 0x11e   : > { %738 = vmatprep.mubr.bf16.mxu0 %v3138_v0 }
 0x125   : > { %739 = vmatmul.mubr.bf16.gmra.mrb[64].mxu0 %v422_v20 }
 0x126   : > { %748 = vmatprep.mubr.bf16.mxu0 %v3138_v0 }
 0x12d   : > { %749 = vmatmul.mubr.bf16.gmra.mrb[68].mxu0 %v423_v23 }
 0x12e   : > { %758 = vmatprep.mubr.bf16.mxu0 %v3138_v0 }
 0x135   : > { %759 = vmatmul.mubr.bf16.gmra.mrb[72].mxu0 %v424_v26 }
 0x136   : > { %768 = vmatprep.mubr.bf16.mxu0 %v3138_v0 }
 0x13d   : > { %769 = vmatmul.mubr.bf16.gmra.mrb[76].mxu0 %v425_v29 }
 0x13e   : > { %778 = vmatprep.mubr.bf16.mxu0 %v3138_v0 }
 0x145   : > { %779 = vmatmul.mubr.bf16.gmra.mrb[80].mxu0 %v426_v32 }
 0x146   : > { %788 = vmatprep.mubr.bf16.mxu0 %v3138_v0 }
 0x14d   : > { %789 = vmatmul.mubr.bf16.gmra.mrb[84].mxu0 %v427_v35 }
 0x14e   : > { %798 = vmatprep.mubr.bf16.mxu0 %v3138_v0 }
 0x155   : > { %799 = vmatmul.mubr.bf16.gmra.mrb[88].mxu0 %v428_v38 }
 0x156   : > { %808 = vmatprep.mubr.bf16.mxu0 %v3138_v0 }
 0x15d   : > { %809 = vmatmul.mubr.bf16.gmra.mrb[92].mxu0 %v429_v41 }
 0x15e   : > { %818 = vmatprep.mubr.bf16.mxu0 %v3138_v0 }
 0x165   : > { %819 = vmatmul.mubr.bf16.gmra.mrb[96].mxu0 %v430_v44  ;;  %v403_v44 = vld [vmem:[%s3359_s29 + $0x1e0] sm:$0xff] }
 0x166   : > { %828 = vmatprep.mubr.bf16.mxu0 %v3138_v0  ;;  %v436_v51 = vpack.c.bf16 %v404_v45, %v403_v44 }
 0x16d   : > { %829 = vmatmul.mubr.bf16.gmra.mrb[100].mxu0 %v431_v47 }
 0x16e   : > { %838 = vmatprep.mubr.bf16.mxu0 %v3138_v0 }
 0x175   : > { %839 = vmatmul.mubr.bf16.gmra.mrb[104].mxu0 %v432_v52 }
 0x176   : > { %848 = vmatprep.mubr.bf16.mxu0 %v3138_v0 }
 0x178   : > { %v580_v60 = vpop.f32.mrb[0].mxu0 }
 0x179   : > { %v581_v61 = vadd.f32 %v580_v60, %v3485_v56  ;;  %v582_v62 = vpop.f32.mrb[1].mxu0 }
 0x17a   : > { %v583_v1 = vadd.f32 %v582_v62, %v3487_v57  ;;  %v584_v2 = vpop.f32.mrb[2].mxu0 }
 0x17b   : > { %v585_v3 = vadd.f32 %v584_v2, %v3485_v56  ;;  %v586_v4 = vpop.f32.mrb[3].mxu0  ;;  %v897_v6 = vmax.f32 %v581_v61, 0.0 }
 0x17c   : > { %v587_v5 = vadd.f32 %v586_v4, %v3487_v57  ;;  %v898_v8 = vmax.f32 %v583_v1, 0.0 }
 0x17d   : > { %v899_v7 = vmax.f32 %v585_v3, 0.0  ;;  %849 = vmatmul.mubr.bf16.gmra.mrb[108].mxu0 %v433_v63  ;;  %v405_v63 = vld [vmem:[%s3359_s29 + $0x1f0] sm:$0xff] }
 0x17e   : > { %v900_v9 = vmax.f32 %v587_v5, 0.0  ;;  %858 = vmatprep.mubr.bf16.mxu0 %v3138_v0 }
 0x17f   : > { %v3499_v12 = vpack.c.bf16 %v899_v7, %v897_v6  ;;  %v437_v6 = vpack.c.bf16 %v405_v63, %v405_v63 }
 0x180   : > { %v3501_v13 = vpack.c.bf16 %v900_v9, %v898_v8  ;;  %v590_v14 = vpop.f32.mrb[4].mxu0 }
 0x181   : > { %v591_v15 = vadd.f32 %v590_v14, %v3485_v56  ;;  %v592_v16 = vpop.f32.mrb[5].mxu0 }
 0x182   : > { %v593_v18 = vadd.f32 %v592_v16, %v3487_v57  ;;  %v594_v19 = vpop.f32.mrb[6].mxu0 }
 0x183   : > { %v595_v20 = vadd.f32 %v594_v19, %v3485_v56  ;;  %v596_v21 = vpop.f32.mrb[7].mxu0  ;;  %v901_v23 = vmax.f32 %v591_v15, 0.0 }
 0x184   : > { %v597_v22 = vadd.f32 %v596_v21, %v3487_v57  ;;  %v902_v25 = vmax.f32 %v593_v18, 0.0 }
 0x185   : > { %v903_v24 = vmax.f32 %v595_v20, 0.0  ;;  %859 = vmatmul.mubr.bf16.gmra.mrb[112].mxu0 %v434_v17 }
 0x186   : > { %v904_v26 = vmax.f32 %v597_v22, 0.0  ;;  %868 = vmatprep.mubr.bf16.mxu0 %v3138_v0 }
 0x187   : > { %v3510_v29 = vpack.c.bf16 %v903_v24, %v901_v23 }
 0x188   : > { %v3512_v30 = vpack.c.bf16 %v904_v26, %v902_v25  ;;  %v600_v31 = vpop.f32.mrb[8].mxu0 }
 0x189   : > { %v601_v32 = vadd.f32 %v600_v31, %v3485_v56  ;;  %v602_v33 = vpop.f32.mrb[9].mxu0 }
 0x18a   : > { %v603_v35 = vadd.f32 %v602_v33, %v3487_v57  ;;  %v604_v36 = vpop.f32.mrb[10].mxu0 }
 0x18b   : > { %v605_v37 = vadd.f32 %v604_v36, %v3485_v56  ;;  %v606_v38 = vpop.f32.mrb[11].mxu0  ;;  %v905_v40 = vmax.f32 %v601_v32, 0.0 }
 0x18c   : > { %v607_v39 = vadd.f32 %v606_v38, %v3487_v57  ;;  %v906_v42 = vmax.f32 %v603_v35, 0.0 }
 0x18d   : > { %v907_v41 = vmax.f32 %v605_v37, 0.0  ;;  %869 = vmatmul.mubr.bf16.gmra.mrb[116].mxu0 %v435_v34 }
 0x18e   : > { %v908_v43 = vmax.f32 %v607_v39, 0.0  ;;  %878 = vmatprep.mubr.bf16.mxu0 %v3138_v0 }
 0x18f   : > { %v1027_v46 = vpack.c.bf16 %v907_v41, %v905_v40 }
 0x190   : > { %v610_v47 = vpop.f32.mrb[12].mxu0  ;;  %v1028_v48 = vpack.c.bf16 %v908_v43, %v906_v42 }
 0x191   : > { %v611_v49 = vadd.f32 %v610_v47, %v3485_v56  ;;  %v612_v50 = vpop.f32.mrb[13].mxu0 }
 0x192   : > { %v613_v52 = vadd.f32 %v612_v50, %v3487_v57  ;;  %v614_v53 = vpop.f32.mrb[14].mxu0  ;;  %1270 = vmatprep.mubr.bf16.mxu1 %v1028_v48 }
 0x193   : > { %v615_v54 = vadd.f32 %v614_v53, %v3485_v56  ;;  %v616_v55 = vpop.f32.mrb[15].mxu0  ;;  %1271 = vmatmul.mubr.bf16.vlgmr.msra.gmra.mrb[0].mxu1 %v1027_v46  ;;  %v909_v59 = vmax.f32 %v611_v49, 0.0 }
 0x194   : > { %v617_v58 = vadd.f32 %v616_v55, %v3487_v57  ;;  %v910_v61 = vmax.f32 %v613_v52, 0.0 }
 0x195   : > { %v911_v60 = vmax.f32 %v615_v54, 0.0  ;;  %879 = vmatmul.mubr.bf16.gmra.mrb[120].mxu0 %v436_v51 }
 0x196   : > { %v912_v62 = vmax.f32 %v617_v58, 0.0  ;;  %888 = vmatprep.mubr.bf16.mxu0 %v3138_v0 }
 0x197   : > { %v1029_v1 = vpack.c.bf16 %v911_v60, %v909_v59 }
 0x198   : > { %v1030_v2 = vpack.c.bf16 %v912_v62, %v910_v61  ;;  %v620_v3 = vpop.f32.mrb[16].mxu0 }
 0x199   : > { %v621_v4 = vadd.f32 %v620_v3, %v3485_v56  ;;  %v622_v5 = vpop.f32.mrb[17].mxu0 }
 0x19a   : > { %v623_v7 = vadd.f32 %v622_v5, %v3487_v57  ;;  %v624_v8 = vpop.f32.mrb[18].mxu0  ;;  %1278 = vmatprep.mubr.bf16.mxu1 %v1030_v2 }
 0x19b   : > { %v625_v9 = vadd.f32 %v624_v8, %v3485_v56  ;;  %v626_v10 = vpop.f32.mrb[19].mxu0  ;;  %1279 = vmatmul.mubr.bf16.gmra.mrb[4].mxu1 %v1029_v1  ;;  %v913_v14 = vmax.f32 %v621_v4, 0.0 }
 0x19c   : > { %v627_v11 = vadd.f32 %v626_v10, %v3487_v57  ;;  %v914_v15 = vmax.f32 %v623_v7, 0.0 }
 0x19d   : > { %v915_v0 = vmax.f32 %v625_v9, 0.0  ;;  %889 = vmatmul.mubr.bf16.gmra.mrb[124].mxu0 %v437_v6 }
 0x19e   : > { %v916_v16 = vmax.f32 %v627_v11, 0.0  ;;  %1254 = vmatprep.mubr.bf16.mxu0 %v3501_v13 }
 0x19f   : > { %v1031_v17 = vpack.c.bf16 %v915_v0, %v913_v14 }
 0x1a0   : > { %v1032_v18 = vpack.c.bf16 %v916_v16, %v914_v15  ;;  %v630_v19 = vpop.f32.mrb[20].mxu0 }
 0x1a1   : > { %v631_v20 = vadd.f32 %v630_v19, %v3485_v56  ;;  %v632_v21 = vpop.f32.mrb[21].mxu0 }
 0x1a2   : > { %v633_v22 = vadd.f32 %v632_v21, %v3487_v57  ;;  %v634_v23 = vpop.f32.mrb[22].mxu0  ;;  %1286 = vmatprep.mubr.bf16.mxu1 %v1032_v18 }
 0x1a3   : > { %v635_v24 = vadd.f32 %v634_v23, %v3485_v56  ;;  %v636_v25 = vpop.f32.mrb[23].mxu0  ;;  %1287 = vmatmul.mubr.bf16.gmra.mrb[8].mxu1 %v1031_v17  ;;  %v917_v27 = vmax.f32 %v631_v20, 0.0 }
 0x1a4   : > { %v637_v26 = vadd.f32 %v636_v25, %v3487_v57  ;;  %v918_v13 = vmax.f32 %v633_v22, 0.0 }
 0x1a5   : > { %v919_v28 = vmax.f32 %v635_v24, 0.0  ;;  %1255 = vmatmul.mubr.bf16.vlgmr.msra.gmra.mrb[128].mxu0 %v3499_v12 }
 0x1a6   : > { %v920_v31 = vmax.f32 %v637_v26, 0.0  ;;  %1262 = vmatprep.mubr.bf16.mxu0 %v3512_v30 }
 0x1a7   : > { %v1033_v32 = vpack.c.bf16 %v919_v28, %v917_v27 }
 0x1a8   : > { %v1034_v33 = vpack.c.bf16 %v920_v31, %v918_v13  ;;  %v640_v34 = vpop.f32.mrb[24].mxu0 }
 0x1a9   : > { %v641_v35 = vadd.f32 %v640_v34, %v3485_v56  ;;  %v642_v36 = vpop.f32.mrb[25].mxu0 }
 0x1aa   : > { %v643_v37 = vadd.f32 %v642_v36, %v3487_v57  ;;  %v644_v38 = vpop.f32.mrb[26].mxu0  ;;  %1294 = vmatprep.mubr.bf16.mxu1 %v1034_v33 }
 0x1ab   : > { %v645_v39 = vadd.f32 %v644_v38, %v3485_v56  ;;  %v646_v40 = vpop.f32.mrb[27].mxu0  ;;  %1295 = vmatmul.mubr.bf16.gmra.mrb[12].mxu1 %v1033_v32  ;;  %v921_v41 = vmax.f32 %v641_v35, 0.0 }
 0x1ac   : > { %v647_v12 = vadd.f32 %v646_v40, %v3487_v57  ;;  %v922_v30 = vmax.f32 %v643_v37, 0.0 }
 0x1ad   : > { %v923_v42 = vmax.f32 %v645_v39, 0.0  ;;  %1263 = vmatmul.mubr.bf16.gmra.mrb[132].mxu0 %v3510_v29 }
 0x1ae   : > { %v924_v43 = vmax.f32 %v647_v12, 0.0 }
 0x1af   : > { %v1035_v44 = vpack.c.bf16 %v923_v42, %v921_v41 }
 0x1b0   : > { %v1036_v45 = vpack.c.bf16 %v924_v43, %v922_v30  ;;  %v650_v46 = vpop.f32.mrb[28].mxu0 }
 0x1b1   : > { %v651_v47 = vadd.f32 %v650_v46, %v3485_v56  ;;  %v652_v48 = vpop.f32.mrb[29].mxu0 }
 0x1b2   : > { %v653_v49 = vadd.f32 %v652_v48, %v3487_v57  ;;  %v654_v50 = vpop.f32.mrb[30].mxu0  ;;  %1302 = vmatprep.mubr.bf16.mxu1 %v1036_v45 }
 0x1b3   : > { %v655_v51 = vadd.f32 %v654_v50, %v3485_v56  ;;  %v656_v52 = vpop.f32.mrb[31].mxu0  ;;  %1303 = vmatmul.mubr.bf16.gmra.mrb[16].mxu1 %v1035_v44  ;;  %v925_v54 = vmax.f32 %v651_v47, 0.0 }
 0x1b4   : > { %v657_v53 = vadd.f32 %v656_v52, %v3487_v57  ;;  %v926_v55 = vmax.f32 %v653_v49, 0.0 }
 0x1b5   : > { %v927_v29 = vmax.f32 %v655_v51, 0.0 }
 0x1b6   : > { %v928_v58 = vmax.f32 %v657_v53, 0.0 }
 0x1b7   : > { %v1037_v59 = vpack.c.bf16 %v927_v29, %v925_v54 }
 0x1b8   : > { %v1038_v60 = vpack.c.bf16 %v928_v58, %v926_v55  ;;  %v660_v61 = vpop.f32.mrb[32].mxu0 }
 0x1b9   : > { %v661_v62 = vadd.f32 %v660_v61, %v3485_v56  ;;  %v662_v63 = vpop.f32.mrb[33].mxu0 }
 0x1ba   : > { %v663_v1 = vadd.f32 %v662_v63, %v3487_v57  ;;  %v664_v2 = vpop.f32.mrb[34].mxu0  ;;  %1310 = vmatprep.mubr.bf16.mxu1 %v1038_v60 }
 0x1bb   : > { %v665_v3 = vadd.f32 %v664_v2, %v3485_v56  ;;  %v666_v4 = vpop.f32.mrb[35].mxu0  ;;  %1311 = vmatmul.mubr.bf16.gmra.mrb[20].mxu1 %v1037_v59  ;;  %v929_v6 = vmax.f32 %v661_v62, 0.0 }
 0x1bc   : > { %v667_v5 = vadd.f32 %v666_v4, %v3487_v57  ;;  %v930_v8 = vmax.f32 %v663_v1, 0.0 }
 0x1bd   : > { %v931_v7 = vmax.f32 %v665_v3, 0.0 }
 0x1be   : > { %v932_v9 = vmax.f32 %v667_v5, 0.0 }
 0x1bf   : > { %v1039_v10 = vpack.c.bf16 %v931_v7, %v929_v6 }
 0x1c0   : > { %v1040_v11 = vpack.c.bf16 %v932_v9, %v930_v8  ;;  %v670_v14 = vpop.f32.mrb[36].mxu0 }
 0x1c1   : > { %v671_v0 = vadd.f32 %v670_v14, %v3485_v56  ;;  %v672_v15 = vpop.f32.mrb[37].mxu0 }
 0x1c2   : > { %v673_v16 = vadd.f32 %v672_v15, %v3487_v57  ;;  %v674_v17 = vpop.f32.mrb[38].mxu0  ;;  %1318 = vmatprep.mubr.bf16.mxu1 %v1040_v11 }
 0x1c3   : > { %v675_v18 = vadd.f32 %v674_v17, %v3485_v56  ;;  %v676_v19 = vpop.f32.mrb[39].mxu0  ;;  %1319 = vmatmul.mubr.bf16.gmra.mrb[24].mxu1 %v1039_v10  ;;  %v933_v21 = vmax.f32 %v671_v0, 0.0 }
 0x1c4   : > { %v677_v20 = vadd.f32 %v676_v19, %v3487_v57  ;;  %v934_v23 = vmax.f32 %v673_v16, 0.0 }
 0x1c5   : > { %v935_v22 = vmax.f32 %v675_v18, 0.0 }
 0x1c6   : > { %v936_v24 = vmax.f32 %v677_v20, 0.0 }
 0x1c7   : > { %v1041_v25 = vpack.c.bf16 %v935_v22, %v933_v21 }
 0x1c8   : > { %v1042_v26 = vpack.c.bf16 %v936_v24, %v934_v23  ;;  %v680_v27 = vpop.f32.mrb[40].mxu0 }
 0x1c9   : > { %v681_v28 = vadd.f32 %v680_v27, %v3485_v56  ;;  %v682_v13 = vpop.f32.mrb[41].mxu0 }
 0x1ca   : > { %v683_v31 = vadd.f32 %v682_v13, %v3487_v57  ;;  %v684_v32 = vpop.f32.mrb[42].mxu0  ;;  %1326 = vmatprep.mubr.bf16.mxu1 %v1042_v26 }
 0x1cb   : > { %v685_v33 = vadd.f32 %v684_v32, %v3485_v56  ;;  %v686_v34 = vpop.f32.mrb[43].mxu0  ;;  %1327 = vmatmul.mubr.bf16.gmra.mrb[28].mxu1 %v1041_v25  ;;  %v937_v36 = vmax.f32 %v681_v28, 0.0 }
 0x1cc   : > { %v687_v35 = vadd.f32 %v686_v34, %v3487_v57  ;;  %v938_v38 = vmax.f32 %v683_v31, 0.0 }
 0x1cd   : > { %v939_v37 = vmax.f32 %v685_v33, 0.0 }
 0x1ce   : > { %v940_v39 = vmax.f32 %v687_v35, 0.0 }
 0x1cf   : > { %v1043_v40 = vpack.c.bf16 %v939_v37, %v937_v36 }
 0x1d0   : > { %v1044_v12 = vpack.c.bf16 %v940_v39, %v938_v38  ;;  %v690_v41 = vpop.f32.mrb[44].mxu0 }
 0x1d1   : > { %v691_v42 = vadd.f32 %v690_v41, %v3485_v56  ;;  %v692_v30 = vpop.f32.mrb[45].mxu0 }
 0x1d2   : > { %v693_v43 = vadd.f32 %v692_v30, %v3487_v57  ;;  %v694_v44 = vpop.f32.mrb[46].mxu0  ;;  %1334 = vmatprep.mubr.bf16.mxu1 %v1044_v12 }
 0x1d3   : > { %v695_v45 = vadd.f32 %v694_v44, %v3485_v56  ;;  %v696_v46 = vpop.f32.mrb[47].mxu0  ;;  %1335 = vmatmul.mubr.bf16.gmra.mrb[32].mxu1 %v1043_v40  ;;  %v941_v48 = vmax.f32 %v691_v42, 0.0 }
 0x1d4   : > { %v697_v47 = vadd.f32 %v696_v46, %v3487_v57  ;;  %v942_v50 = vmax.f32 %v693_v43, 0.0 }
 0x1d5   : > { %v943_v49 = vmax.f32 %v695_v45, 0.0 }
 0x1d6   : > { %v944_v51 = vmax.f32 %v697_v47, 0.0 }
 0x1d7   : > { %v1045_v52 = vpack.c.bf16 %v943_v49, %v941_v48 }
 0x1d8   : > { %v1046_v53 = vpack.c.bf16 %v944_v51, %v942_v50  ;;  %v700_v54 = vpop.f32.mrb[48].mxu0 }
 0x1d9   : > { %v701_v29 = vadd.f32 %v700_v54, %v3485_v56  ;;  %v702_v55 = vpop.f32.mrb[49].mxu0 }
 0x1da   : > { %v703_v58 = vadd.f32 %v702_v55, %v3487_v57  ;;  %v704_v59 = vpop.f32.mrb[50].mxu0  ;;  %1342 = vmatprep.mubr.bf16.mxu1 %v1046_v53 }
 0x1db   : > { %v705_v60 = vadd.f32 %v704_v59, %v3485_v56  ;;  %v706_v61 = vpop.f32.mrb[51].mxu0  ;;  %1343 = vmatmul.mubr.bf16.gmra.mrb[36].mxu1 %v1045_v52  ;;  %v945_v63 = vmax.f32 %v701_v29, 0.0 }
 0x1dc   : > { %v707_v62 = vadd.f32 %v706_v61, %v3487_v57  ;;  %v946_v2 = vmax.f32 %v703_v58, 0.0 }
 0x1dd   : > { %v947_v1 = vmax.f32 %v705_v60, 0.0 }
 0x1de   : > { %v948_v3 = vmax.f32 %v707_v62, 0.0 }
 0x1df   : > { %v1047_v4 = vpack.c.bf16 %v947_v1, %v945_v63 }
 0x1e0   : > { %v1048_v5 = vpack.c.bf16 %v948_v3, %v946_v2  ;;  %v710_v6 = vpop.f32.mrb[52].mxu0 }
 0x1e1   : > { %v711_v7 = vadd.f32 %v710_v6, %v3485_v56  ;;  %v712_v8 = vpop.f32.mrb[53].mxu0 }
 0x1e2   : > { %v713_v9 = vadd.f32 %v712_v8, %v3487_v57  ;;  %v714_v10 = vpop.f32.mrb[54].mxu0  ;;  %1350 = vmatprep.mubr.bf16.mxu1 %v1048_v5 }
 0x1e3   : > { %v715_v11 = vadd.f32 %v714_v10, %v3485_v56  ;;  %v716_v14 = vpop.f32.mrb[55].mxu0  ;;  %1351 = vmatmul.mubr.bf16.gmra.mrb[40].mxu1 %v1047_v4  ;;  %v949_v15 = vmax.f32 %v711_v7, 0.0 }
 0x1e4   : > { %v717_v0 = vadd.f32 %v716_v14, %v3487_v57  ;;  %v950_v17 = vmax.f32 %v713_v9, 0.0 }
 0x1e5   : > { %v951_v16 = vmax.f32 %v715_v11, 0.0 }
 0x1e6   : > { %v952_v18 = vmax.f32 %v717_v0, 0.0 }
 0x1e7   : > { %v1049_v19 = vpack.c.bf16 %v951_v16, %v949_v15 }
 0x1e8   : > { %v1050_v20 = vpack.c.bf16 %v952_v18, %v950_v17  ;;  %v720_v21 = vpop.f32.mrb[56].mxu0 }
 0x1e9   : > { %v721_v22 = vadd.f32 %v720_v21, %v3485_v56  ;;  %v722_v23 = vpop.f32.mrb[57].mxu0 }
 0x1ea   : > { %v723_v24 = vadd.f32 %v722_v23, %v3487_v57  ;;  %v724_v25 = vpop.f32.mrb[58].mxu0  ;;  %1358 = vmatprep.mubr.bf16.mxu1 %v1050_v20 }
 0x1eb   : > { %v725_v26 = vadd.f32 %v724_v25, %v3485_v56  ;;  %v726_v27 = vpop.f32.mrb[59].mxu0  ;;  %1359 = vmatmul.mubr.bf16.gmra.mrb[44].mxu1 %v1049_v19  ;;  %v953_v13 = vmax.f32 %v721_v22, 0.0 }
 0x1ec   : > { %v727_v28 = vadd.f32 %v726_v27, %v3487_v57  ;;  %v954_v32 = vmax.f32 %v723_v24, 0.0 }
 0x1ed   : > { %v955_v31 = vmax.f32 %v725_v26, 0.0 }
 0x1ee   : > { %v956_v33 = vmax.f32 %v727_v28, 0.0 }
 0x1ef   : > { %v1051_v34 = vpack.c.bf16 %v955_v31, %v953_v13 }
 0x1f0   : > { %v1052_v35 = vpack.c.bf16 %v956_v33, %v954_v32  ;;  %v730_v36 = vpop.f32.mrb[60].mxu0 }
 0x1f1   : > { %v731_v37 = vadd.f32 %v730_v36, %v3485_v56  ;;  %v732_v38 = vpop.f32.mrb[61].mxu0 }
 0x1f2   : > { %v733_v39 = vadd.f32 %v732_v38, %v3487_v57  ;;  %v734_v40 = vpop.f32.mrb[62].mxu0  ;;  %1366 = vmatprep.mubr.bf16.mxu1 %v1052_v35 }
 0x1f3   : > { %v735_v12 = vadd.f32 %v734_v40, %v3485_v56  ;;  %v736_v41 = vpop.f32.mrb[63].mxu0  ;;  %1367 = vmatmul.mubr.bf16.gmra.mrb[48].mxu1 %v1051_v34  ;;  %v957_v30 = vmax.f32 %v731_v37, 0.0 }
 0x1f4   : > { %v737_v42 = vadd.f32 %v736_v41, %v3487_v57  ;;  %v958_v44 = vmax.f32 %v733_v39, 0.0 }
 0x1f5   : > { %v959_v43 = vmax.f32 %v735_v12, 0.0 }
 0x1f6   : > { %v960_v45 = vmax.f32 %v737_v42, 0.0 }
 0x1f7   : > { %v1053_v46 = vpack.c.bf16 %v959_v43, %v957_v30 }
 0x1f8   : > { %v1054_v47 = vpack.c.bf16 %v960_v45, %v958_v44  ;;  %v740_v48 = vpop.f32.mrb[64].mxu0 }
 0x1f9   : > { %v741_v49 = vadd.f32 %v740_v48, %v3485_v56  ;;  %v742_v50 = vpop.f32.mrb[65].mxu0 }
 0x1fa   : > { %v743_v51 = vadd.f32 %v742_v50, %v3487_v57  ;;  %v744_v52 = vpop.f32.mrb[66].mxu0  ;;  %1374 = vmatprep.mubr.bf16.mxu1 %v1054_v47 }
 0x1fb   : > { %v745_v53 = vadd.f32 %v744_v52, %v3485_v56  ;;  %v746_v54 = vpop.f32.mrb[67].mxu0  ;;  %1375 = vmatmul.mubr.bf16.gmra.mrb[52].mxu1 %v1053_v46  ;;  %v961_v55 = vmax.f32 %v741_v49, 0.0 }
 0x1fc   : > { %v747_v29 = vadd.f32 %v746_v54, %v3487_v57  ;;  %v962_v59 = vmax.f32 %v743_v51, 0.0 }
 0x1fd   : > { %v963_v58 = vmax.f32 %v745_v53, 0.0 }
 0x1fe   : > { %v964_v60 = vmax.f32 %v747_v29, 0.0 }
 0x1ff   : > { %v1055_v61 = vpack.c.bf16 %v963_v58, %v961_v55 }
 0x200   : > { %v1056_v62 = vpack.c.bf16 %v964_v60, %v962_v59  ;;  %v750_v63 = vpop.f32.mrb[68].mxu0 }
 0x201   : > { %v751_v1 = vadd.f32 %v750_v63, %v3485_v56  ;;  %v752_v2 = vpop.f32.mrb[69].mxu0 }
 0x202   : > { %v753_v3 = vadd.f32 %v752_v2, %v3487_v57  ;;  %v754_v4 = vpop.f32.mrb[70].mxu0  ;;  %1382 = vmatprep.mubr.bf16.mxu1 %v1056_v62 }
 0x203   : > { %v755_v5 = vadd.f32 %v754_v4, %v3485_v56  ;;  %v756_v6 = vpop.f32.mrb[71].mxu0  ;;  %1383 = vmatmul.mubr.bf16.gmra.mrb[56].mxu1 %v1055_v61  ;;  %v965_v8 = vmax.f32 %v751_v1, 0.0 }
 0x204   : > { %v757_v7 = vadd.f32 %v756_v6, %v3487_v57  ;;  %v966_v10 = vmax.f32 %v753_v3, 0.0 }
 0x205   : > { %v967_v9 = vmax.f32 %v755_v5, 0.0 }
 0x206   : > { %v968_v11 = vmax.f32 %v757_v7, 0.0 }
 0x207   : > { %v1057_v14 = vpack.c.bf16 %v967_v9, %v965_v8 }
 0x208   : > { %v1058_v0 = vpack.c.bf16 %v968_v11, %v966_v10  ;;  %v760_v15 = vpop.f32.mrb[72].mxu0 }
 0x209   : > { %v761_v16 = vadd.f32 %v760_v15, %v3485_v56  ;;  %v762_v17 = vpop.f32.mrb[73].mxu0 }
 0x20a   : > { %v763_v18 = vadd.f32 %v762_v17, %v3487_v57  ;;  %v764_v19 = vpop.f32.mrb[74].mxu0  ;;  %1390 = vmatprep.mubr.bf16.mxu1 %v1058_v0 }
 0x20b   : > { %v765_v20 = vadd.f32 %v764_v19, %v3485_v56  ;;  %v766_v21 = vpop.f32.mrb[75].mxu0  ;;  %1391 = vmatmul.mubr.bf16.gmra.mrb[60].mxu1 %v1057_v14  ;;  %v969_v23 = vmax.f32 %v761_v16, 0.0 }
 0x20c   : > { %v767_v22 = vadd.f32 %v766_v21, %v3487_v57  ;;  %v970_v25 = vmax.f32 %v763_v18, 0.0 }
 0x20d   : > { %v971_v24 = vmax.f32 %v765_v20, 0.0 }
 0x20e   : > { %v972_v26 = vmax.f32 %v767_v22, 0.0 }
 0x20f   : > { %v1059_v27 = vpack.c.bf16 %v971_v24, %v969_v23 }
 0x210   : > { %v1060_v28 = vpack.c.bf16 %v972_v26, %v970_v25  ;;  %v770_v13 = vpop.f32.mrb[76].mxu0 }
 0x211   : > { %v771_v31 = vadd.f32 %v770_v13, %v3485_v56  ;;  %v772_v32 = vpop.f32.mrb[77].mxu0 }
 0x212   : > { %v773_v33 = vadd.f32 %v772_v32, %v3487_v57  ;;  %v774_v34 = vpop.f32.mrb[78].mxu0  ;;  %1398 = vmatprep.mubr.bf16.mxu1 %v1060_v28 }
 0x213   : > { %v775_v35 = vadd.f32 %v774_v34, %v3485_v56  ;;  %v776_v36 = vpop.f32.mrb[79].mxu0  ;;  %1399 = vmatmul.mubr.bf16.gmra.mrb[64].mxu1 %v1059_v27  ;;  %v973_v38 = vmax.f32 %v771_v31, 0.0 }
 0x214   : > { %v777_v37 = vadd.f32 %v776_v36, %v3487_v57  ;;  %v974_v40 = vmax.f32 %v773_v33, 0.0 }
 0x215   : > { %v975_v39 = vmax.f32 %v775_v35, 0.0 }
 0x216   : > { %v976_v12 = vmax.f32 %v777_v37, 0.0 }
 0x217   : > { %v1061_v41 = vpack.c.bf16 %v975_v39, %v973_v38 }
 0x218   : > { %v1062_v42 = vpack.c.bf16 %v976_v12, %v974_v40  ;;  %v780_v30 = vpop.f32.mrb[80].mxu0 }
 0x219   : > { %v781_v43 = vadd.f32 %v780_v30, %v3485_v56  ;;  %v782_v44 = vpop.f32.mrb[81].mxu0 }
 0x21a   : > { %v783_v45 = vadd.f32 %v782_v44, %v3487_v57  ;;  %v784_v46 = vpop.f32.mrb[82].mxu0  ;;  %1406 = vmatprep.mubr.bf16.mxu1 %v1062_v42 }
 0x21b   : > { %v785_v47 = vadd.f32 %v784_v46, %v3485_v56  ;;  %v786_v48 = vpop.f32.mrb[83].mxu0  ;;  %1407 = vmatmul.mubr.bf16.gmra.mrb[68].mxu1 %v1061_v41  ;;  %v977_v50 = vmax.f32 %v781_v43, 0.0 }
 0x21c   : > { %v787_v49 = vadd.f32 %v786_v48, %v3487_v57  ;;  %v978_v52 = vmax.f32 %v783_v45, 0.0 }
 0x21d   : > { %v979_v51 = vmax.f32 %v785_v47, 0.0 }
 0x21e   : > { %v980_v53 = vmax.f32 %v787_v49, 0.0 }
 0x21f   : > { %v1063_v54 = vpack.c.bf16 %v979_v51, %v977_v50 }
 0x220   : > { %v1064_v29 = vpack.c.bf16 %v980_v53, %v978_v52  ;;  %v790_v55 = vpop.f32.mrb[84].mxu0 }
 0x221   : > { %v791_v58 = vadd.f32 %v790_v55, %v3485_v56  ;;  %v792_v59 = vpop.f32.mrb[85].mxu0 }
 0x222   : > { %v793_v60 = vadd.f32 %v792_v59, %v3487_v57  ;;  %v794_v61 = vpop.f32.mrb[86].mxu0  ;;  %1414 = vmatprep.mubr.bf16.mxu1 %v1064_v29 }
 0x223   : > { %v795_v62 = vadd.f32 %v794_v61, %v3485_v56  ;;  %v796_v63 = vpop.f32.mrb[87].mxu0  ;;  %1415 = vmatmul.mubr.bf16.gmra.mrb[72].mxu1 %v1063_v54  ;;  %v981_v2 = vmax.f32 %v791_v58, 0.0 }
 0x224   : > { %v797_v1 = vadd.f32 %v796_v63, %v3487_v57  ;;  %v982_v4 = vmax.f32 %v793_v60, 0.0 }
 0x225   : > { %v983_v3 = vmax.f32 %v795_v62, 0.0 }
 0x226   : > { %v984_v5 = vmax.f32 %v797_v1, 0.0 }
 0x227   : > { %v1065_v6 = vpack.c.bf16 %v983_v3, %v981_v2 }
 0x228   : > { %v1066_v7 = vpack.c.bf16 %v984_v5, %v982_v4  ;;  %v800_v8 = vpop.f32.mrb[88].mxu0 }
 0x229   : > { %v801_v9 = vadd.f32 %v800_v8, %v3485_v56  ;;  %v802_v10 = vpop.f32.mrb[89].mxu0 }
 0x22a   : > { %v803_v11 = vadd.f32 %v802_v10, %v3487_v57  ;;  %v804_v14 = vpop.f32.mrb[90].mxu0  ;;  %1422 = vmatprep.mubr.bf16.mxu1 %v1066_v7 }
 0x22b   : > { %v805_v0 = vadd.f32 %v804_v14, %v3485_v56  ;;  %v806_v15 = vpop.f32.mrb[91].mxu0  ;;  %1423 = vmatmul.mubr.bf16.gmra.mrb[76].mxu1 %v1065_v6  ;;  %v985_v17 = vmax.f32 %v801_v9, 0.0 }
 0x22c   : > { %v807_v16 = vadd.f32 %v806_v15, %v3487_v57  ;;  %v986_v19 = vmax.f32 %v803_v11, 0.0 }
 0x22d   : > { %v987_v18 = vmax.f32 %v805_v0, 0.0 }
 0x22e   : > { %v988_v20 = vmax.f32 %v807_v16, 0.0 }
 0x22f   : > { %v1067_v21 = vpack.c.bf16 %v987_v18, %v985_v17 }
 0x230   : > { %v1068_v22 = vpack.c.bf16 %v988_v20, %v986_v19  ;;  %v810_v23 = vpop.f32.mrb[92].mxu0 }
 0x231   : > { %v811_v24 = vadd.f32 %v810_v23, %v3485_v56  ;;  %v812_v25 = vpop.f32.mrb[93].mxu0 }
 0x232   : > { %v813_v26 = vadd.f32 %v812_v25, %v3487_v57  ;;  %v814_v27 = vpop.f32.mrb[94].mxu0  ;;  %1430 = vmatprep.mubr.bf16.mxu1 %v1068_v22 }
 0x233   : > { %v815_v28 = vadd.f32 %v814_v27, %v3485_v56  ;;  %v816_v13 = vpop.f32.mrb[95].mxu0  ;;  %1431 = vmatmul.mubr.bf16.gmra.mrb[80].mxu1 %v1067_v21  ;;  %v989_v32 = vmax.f32 %v811_v24, 0.0 }
 0x234   : > { %v817_v31 = vadd.f32 %v816_v13, %v3487_v57  ;;  %v990_v34 = vmax.f32 %v813_v26, 0.0 }
 0x235   : > { %v991_v33 = vmax.f32 %v815_v28, 0.0 }
 0x236   : > { %v992_v35 = vmax.f32 %v817_v31, 0.0 }
 0x237   : > { %v1069_v36 = vpack.c.bf16 %v991_v33, %v989_v32 }
 0x238   : > { %v1070_v37 = vpack.c.bf16 %v992_v35, %v990_v34  ;;  %v820_v38 = vpop.f32.mrb[96].mxu0 }
 0x239   : > { %v821_v39 = vadd.f32 %v820_v38, %v3485_v56  ;;  %v822_v40 = vpop.f32.mrb[97].mxu0 }
 0x23a   : > { %v823_v12 = vadd.f32 %v822_v40, %v3487_v57  ;;  %v824_v41 = vpop.f32.mrb[98].mxu0  ;;  %1438 = vmatprep.mubr.bf16.mxu1 %v1070_v37 }
 0x23b   : > { %v825_v42 = vadd.f32 %v824_v41, %v3485_v56  ;;  %v826_v30 = vpop.f32.mrb[99].mxu0  ;;  %1439 = vmatmul.mubr.bf16.gmra.mrb[84].mxu1 %v1069_v36  ;;  %v993_v44 = vmax.f32 %v821_v39, 0.0 }
 0x23c   : > { %v827_v43 = vadd.f32 %v826_v30, %v3487_v57  ;;  %v994_v46 = vmax.f32 %v823_v12, 0.0 }
 0x23d   : > { %v995_v45 = vmax.f32 %v825_v42, 0.0 }
 0x23e   : > { %v996_v47 = vmax.f32 %v827_v43, 0.0 }
 0x23f   : > { %v1071_v48 = vpack.c.bf16 %v995_v45, %v993_v44 }
 0x240   : > { %v1072_v49 = vpack.c.bf16 %v996_v47, %v994_v46  ;;  %v830_v50 = vpop.f32.mrb[100].mxu0 }
 0x241   : > { %v831_v51 = vadd.f32 %v830_v50, %v3485_v56  ;;  %v832_v52 = vpop.f32.mrb[101].mxu0 }
 0x242   : > { %v833_v53 = vadd.f32 %v832_v52, %v3487_v57  ;;  %v834_v54 = vpop.f32.mrb[102].mxu0  ;;  %1446 = vmatprep.mubr.bf16.mxu1 %v1072_v49  ;;  %v3638_v52 = vld [vmem:[%s4619_s4] ss:$0 sm:$0xff] }
 0x243   : > { %v835_v29 = vadd.f32 %v834_v54, %v3485_v56  ;;  %v836_v55 = vpop.f32.mrb[103].mxu0  ;;  %1447 = vmatmul.mubr.bf16.gmra.mrb[88].mxu1 %v1071_v48  ;;  %v997_v59 = vmax.f32 %v831_v51, 0.0 }
 0x244   : > { %v837_v58 = vadd.f32 %v836_v55, %v3487_v57  ;;  %v998_v61 = vmax.f32 %v833_v53, 0.0 }
 0x245   : > { %v999_v60 = vmax.f32 %v835_v29, 0.0 }
 0x246   : > { %v1000_v62 = vmax.f32 %v837_v58, 0.0 }
 0x247   : > { %v1073_v63 = vpack.c.bf16 %v999_v60, %v997_v59 }
 0x248   : > { %v1074_v1 = vpack.c.bf16 %v1000_v62, %v998_v61  ;;  %v840_v2 = vpop.f32.mrb[104].mxu0 }
 0x249   : > { %v841_v3 = vadd.f32 %v840_v2, %v3485_v56  ;;  %v842_v4 = vpop.f32.mrb[105].mxu0 }
 0x24a   : > { %v843_v5 = vadd.f32 %v842_v4, %v3487_v57  ;;  %v844_v6 = vpop.f32.mrb[106].mxu0  ;;  %1454 = vmatprep.mubr.bf16.mxu1 %v1074_v1 }
 0x24b   : > { %v845_v7 = vadd.f32 %v844_v6, %v3485_v56  ;;  %v846_v8 = vpop.f32.mrb[107].mxu0  ;;  %1455 = vmatmul.mubr.bf16.gmra.mrb[92].mxu1 %v1073_v63  ;;  %v1001_v10 = vmax.f32 %v841_v3, 0.0  ;;  %v2908_v6 = vld [vmem:[%s3359_s29 + $0x20] sm:$0xff] }
 0x24c   : > { %v847_v9 = vadd.f32 %v846_v8, %v3487_v57  ;;  %v1002_v14 = vmax.f32 %v843_v5, 0.0 }
 0x24d   : > { %v1003_v11 = vmax.f32 %v845_v7, 0.0 }
 0x24e   : > { %v1004_v0 = vmax.f32 %v847_v9, 0.0 }
 0x24f   : > { %v1075_v15 = vpack.c.bf16 %v1003_v11, %v1001_v10 }
 0x250   : > { %v1076_v16 = vpack.c.bf16 %v1004_v0, %v1002_v14  ;;  %v850_v17 = vpop.f32.mrb[108].mxu0  ;;  %v2909_v14 = vld [vmem:[%s3359_s29 + $0x28] sm:$0xff] }
 0x251   : > { %v851_v18 = vadd.f32 %v850_v17, %v3485_v56  ;;  %v852_v19 = vpop.f32.mrb[109].mxu0 }
 0x252   : > { %v853_v20 = vadd.f32 %v852_v19, %v3487_v57  ;;  %v854_v21 = vpop.f32.mrb[110].mxu0  ;;  %1462 = vmatprep.mubr.bf16.mxu1 %v1076_v16 }
 0x253   : > { %v855_v22 = vadd.f32 %v854_v21, %v3485_v56  ;;  %v856_v23 = vpop.f32.mrb[111].mxu0  ;;  %1463 = vmatmul.mubr.bf16.gmra.mrb[96].mxu1 %v1075_v15  ;;  %v1005_v25 = vmax.f32 %v851_v18, 0.0 }
 0x254   : > { %v857_v24 = vadd.f32 %v856_v23, %v3487_v57  ;;  %v1006_v27 = vmax.f32 %v853_v20, 0.0 }
 0x255   : > { %v1007_v26 = vmax.f32 %v855_v22, 0.0 }
 0x256   : > { %v1008_v28 = vmax.f32 %v857_v24, 0.0 }
 0x257   : > { %v1077_v13 = vpack.c.bf16 %v1007_v26, %v1005_v25 }
 0x258   : > { %v1078_v31 = vpack.c.bf16 %v1008_v28, %v1006_v27  ;;  %v860_v32 = vpop.f32.mrb[112].mxu0 }
 0x259   : > { %v861_v33 = vadd.f32 %v860_v32, %v3485_v56  ;;  %v862_v34 = vpop.f32.mrb[113].mxu0  ;;  %v2910_v32 = vld [vmem:[%s3359_s29 + $0x30] sm:$0xff] }
 0x25a   : > { %v863_v35 = vadd.f32 %v862_v34, %v3487_v57  ;;  %v864_v36 = vpop.f32.mrb[114].mxu0  ;;  %1470 = vmatprep.mubr.bf16.mxu1 %v1078_v31 }
 0x25b   : > { %v865_v37 = vadd.f32 %v864_v36, %v3485_v56  ;;  %v866_v38 = vpop.f32.mrb[115].mxu0  ;;  %1471 = vmatmul.mubr.bf16.gmra.mrb[100].mxu1 %v1077_v13  ;;  %v1009_v40 = vmax.f32 %v861_v33, 0.0 }
 0x25c   : > { %v867_v39 = vadd.f32 %v866_v38, %v3487_v57  ;;  %v1010_v41 = vmax.f32 %v863_v35, 0.0 }
 0x25d   : > { %v1011_v12 = vmax.f32 %v865_v37, 0.0  ;;  %v2911_v37 = vld [vmem:[%s3359_s29 + $0x38] sm:$0xff] }
 0x25e   : > { %v1012_v42 = vmax.f32 %v867_v39, 0.0 }
 0x25f   : > { %v1079_v30 = vpack.c.bf16 %v1011_v12, %v1009_v40 }
 0x260   : > { %v1080_v43 = vpack.c.bf16 %v1012_v42, %v1010_v41  ;;  %v870_v44 = vpop.f32.mrb[116].mxu0 }
 0x261   : > { %v871_v45 = vadd.f32 %v870_v44, %v3485_v56  ;;  %v872_v46 = vpop.f32.mrb[117].mxu0 }
 0x262   : > { %v873_v47 = vadd.f32 %v872_v46, %v3487_v57  ;;  %v874_v48 = vpop.f32.mrb[118].mxu0  ;;  %1478 = vmatprep.mubr.bf16.mxu1 %v1080_v43 }
 0x263   : > { %v875_v49 = vadd.f32 %v874_v48, %v3485_v56  ;;  %v876_v50 = vpop.f32.mrb[119].mxu0  ;;  %1479 = vmatmul.mubr.bf16.gmra.mrb[104].mxu1 %v1079_v30  ;;  %v1013_v53 = vmax.f32 %v871_v45, 0.0  ;;  %v2912_v48 = vld [vmem:[%s3359_s29 + $0x40] sm:$0xff] }
 0x264   : > { %v877_v51 = vadd.f32 %v876_v50, %v3487_v57  ;;  %v1014_v29 = vmax.f32 %v873_v47, 0.0 }
 0x265   : > { %v1015_v54 = vmax.f32 %v875_v49, 0.0 }
 0x266   : > { %v1016_v55 = vmax.f32 %v877_v51, 0.0  ;;  %v1272_v58 = vpop.f32.mrb[0].mxu1 }
 0x267   : > { %v1081_v59 = vpack.c.bf16 %v1015_v54, %v1013_v53  ;;  %v1273_v60 = vadd.f32 %v3638_v52, %v1272_v58  ;;  %v1274_v61 = vpop.f32.mrb[1].mxu1  ;;  %v2913_v53 = vld [vmem:[%s3359_s29 + $0x48] sm:$0xff] }
 0x268   : > { %v1082_v62 = vpack.c.bf16 %v1016_v55, %v1014_v29  ;;  %v880_v63 = vpop.f32.mrb[120].mxu0  ;;  %v1275_v1 = vpop.f32.mrb[2].mxu1  ;;  %v2914_v55 = vld [vmem:[%s3359_s29] sm:$0xff] }
 0x269   : > { %v881_v2 = vadd.f32 %v880_v63, %v3485_v56  ;;  %v1276_v3 = vadd.f32 %v3638_v52, %v1275_v1  ;;  %v882_v4 = vpop.f32.mrb[121].mxu0  ;;  %v1277_v5 = vpop.f32.mrb[3].mxu1  ;;  %v3644_v7 = vadd.f32 %v2908_v6, %v1273_v60 }
 0x26a   : > { %v883_v8 = vadd.f32 %v882_v4, %v3487_v57  ;;  %v884_v9 = vpop.f32.mrb[122].mxu0  ;;  %1486 = vmatprep.mubr.bf16.mxu1 %v1082_v62  ;;  %v2915_v4 = vld [vmem:[%s3359_s29 + $0x8] sm:$0xff] }
 0x26b   : > { %v885_v10 = vadd.f32 %v884_v9, %v3485_v56  ;;  %v886_v11 = vpop.f32.mrb[123].mxu0  ;;  %1487 = vmatmul.mubr.bf16.gmra.mrb[108].mxu1 %v1081_v59  ;;  %1581 = vadd.xlane.f32.xlu0 %v3644_v7  ;;  %v3650_v0 = vadd.f32 %v2909_v14, %v1276_v3  ;;  %v1017_v16 = vmax.f32 %v881_v2, 0.0  ;;  %v2917_v14 = vld [vmem:[%s3359_s29 + $0x50] sm:$0xff] }
 0x26c   : > { %v887_v15 = vadd.f32 %v886_v11, %v3487_v57  ;;  %v1018_v18 = vmax.f32 %v883_v8, 0.0 }
 0x26d   : > { %v1019_v17 = vmax.f32 %v885_v10, 0.0  ;;  %1583 = vadd.xlane.f32.xlu1 %v3650_v0  ;;  %v2916_v10 = vld [vmem:[%s3359_s29 + $0x10] sm:$0xff] }
 0x26e   : > { %v1020_v19 = vmax.f32 %v887_v15, 0.0  ;;  %v1280_v20 = vpop.f32.mrb[4].mxu1 }
 0x26f   : > { %v1083_v21 = vpack.c.bf16 %v1019_v17, %v1017_v16  ;;  %v1281_v22 = vadd.f32 %v3638_v52, %v1280_v20  ;;  %v1282_v23 = vpop.f32.mrb[5].mxu1  ;;  %v2918_v20 = vld [vmem:[%s3359_s29 + $0x58] sm:$0xff] }
 0x270   : > { %v1084_v24 = vpack.c.bf16 %v1020_v19, %v1018_v18  ;;  %v890_v25 = vpop.f32.mrb[124].mxu0  ;;  %v1283_v26 = vpop.f32.mrb[6].mxu1 }
 0x271   : > { %v891_v27 = vadd.f32 %v890_v25, %v3485_v56  ;;  %v1284_v28 = vadd.f32 %v3638_v52, %v1283_v26  ;;  %v892_v13 = vpop.f32.mrb[125].mxu0  ;;  %v1285_v31 = vpop.f32.mrb[7].mxu1  ;;  %v3658_v33 = vadd.f32 %v2910_v32, %v1281_v22 }
 0x272   : > { %v893_v34 = vadd.f32 %v892_v13, %v3487_v57  ;;  %v894_v35 = vpop.f32.mrb[126].mxu0  ;;  %1494 = vmatprep.mubr.bf16.mxu1 %v1084_v24  ;;  %v2919_v24 = vld [vmem:[%s3359_s29 + $0x60] sm:$0xff] }
 0x273   : > { %v895_v36 = vpop.f32.mrb[127].mxu0  ;;  %1495 = vmatmul.mubr.bf16.gmra.mrb[112].mxu1 %v1083_v21  ;;  %1585 = vadd.xlane.f32.xlu0 %v3658_v33  ;;  %v3663_v38 = vadd.f32 %v2911_v37, %v1284_v28  ;;  %v1021_v39 = vmax.f32 %v891_v27, 0.0  ;;  %v2920_v27 = vld [vmem:[%s3359_s29 + $0x18] sm:$0xff] }
 0x274   : > { %v1022_v56 = vmax.f32 %v893_v34, 0.0  ;;  %v2921_v34 = vld [vmem:[%s3359_s29 + $0x68] sm:$0xff] }
 0x275   : > { %1587 = vadd.xlane.f32.xlu1 %v3663_v38  ;;  %v1085_v43 = vpack.c.bf16 %v1021_v39, %v1021_v39  ;;  %v2922_v39 = vld [vmem:[%s3359_s29 + $0x70] sm:$0xff] }
 0x276   : > { %v1086_v40 = vpack.c.bf16 %v1022_v56, %v1022_v56  ;;  %v1288_v12 = vpop.f32.mrb[8].mxu1 }
 0x277   : > { %v1289_v41 = vadd.f32 %v3638_v52, %v1288_v12  ;;  %v1290_v57 = vpop.f32.mrb[9].mxu1  ;;  %v2923_v12 = vld [vmem:[%s3359_s29 + $0x78] sm:$0xff] }
 0x278   : > { %v1256_v42 = vpop.f32.mrb[128].mxu0  ;;  %v1291_v30 = vpop.f32.mrb[10].mxu1  ;;  %1502 = vmatprep.mubr.bf16.mxu1 %v1086_v40 }
 0x279   : > { %v1257_v44 = vadd.f32 %v3638_v52, %v1256_v42  ;;  %v1292_v45 = vadd.f32 %v3638_v52, %v1291_v30  ;;  %v1258_v46 = vpop.f32.mrb[129].mxu0  ;;  %v1293_v47 = vpop.f32.mrb[11].mxu1  ;;  %v3670_v49 = vadd.f32 %v2912_v48, %v1289_v41  ;;  %v2925_v48 = vld [vmem:[%s3359_s29 + $0x88] sm:$0xff] }
 0x27a   : > { %v1259_v50 = vpop.f32.mrb[130].mxu0  ;;  %v2924_v46 = vld [vmem:[%s3359_s29 + $0x80] sm:$0xff] }
 0x27b   : > { %1503 = vmatmul.mubr.bf16.gmra.mrb[116].mxu1 %v1085_v43  ;;  %1589 = vadd.xlane.f32.xlu0 %v3670_v49  ;;  %v1261_v51 = vpop.f32.mrb[131].mxu0  ;;  %v3674_v54 = vadd.f32 %v2913_v53, %v1292_v45  ;;  %v1260_v29 = vadd.f32 %v3638_v52, %v1259_v50  ;;  %v3679_v58 = vadd.f32 %v2914_v55, %v1257_v44 }
 0x27d   : > { %1591 = vadd.xlane.f32.xlu1 %v3674_v54  ;;  %v3685_v5 = vadd.f32 %v2915_v4, %v1260_v29 }
 0x27e   : > { %v1296_v59 = vpop.f32.mrb[12].mxu1 }
 0x27f   : > { %v1298_v60 = vpop.f32.mrb[13].mxu1  ;;  %1573 = vadd.xlane.f32.xlu0 %v3679_v58  ;;  %v1297_v63 = vadd.f32 %v3638_v52, %v1296_v59 }
 0x280   : > { %v1264_v61 = vpop.f32.mrb[132].mxu0  ;;  %v1299_v62 = vpop.f32.mrb[14].mxu1 }
 0x281   : > { %v1265_v1 = vadd.f32 %v3638_v52, %v1264_v61  ;;  %v1266_v2 = vpop.f32.mrb[133].mxu0  ;;  %v1301_v3 = vpop.f32.mrb[15].mxu1  ;;  %v1300_v8 = vadd.f32 %v3638_v52, %v1299_v62  ;;  %v3694_v15 = vadd.f32 %v2917_v14, %v1297_v63  ;;  %v2926_v61 = vld [vmem:[%s3359_s29 + $0x90] sm:$0xff]  ;;  %v2927_v63 = vld [vmem:[%s3359_s29 + $0x98] sm:$0xff] }
 0x282   : > { %v1267_v6 = vpop.f32.mrb[134].mxu0 }
 0x283   : > { %v1269_v9 = vpop.f32.mrb[135].mxu0  ;;  %1575 = vadd.xlane.f32.xlu0 %v3685_v5  ;;  %v3690_v11 = vadd.f32 %v2916_v10, %v1265_v1  ;;  %v1268_v17 = vadd.f32 %v3638_v52, %v1267_v6  ;;  %v3700_v21 = vadd.f32 %v2918_v20, %v1300_v8  ;;  %v2928_v10 = vld [vmem:[%s3359_s29 + $0xa0] sm:$0xff] }
 0x285   : > { %1577 = vadd.xlane.f32.xlu1 %v3690_v11  ;;  %v3709_v28 = vadd.f32 %v2920_v27, %v1268_v17 }
 0x286   : > { %v1304_v16 = vpop.f32.mrb[16].mxu1 }
 0x287   : > { %v1305_v18 = vadd.f32 %v3638_v52, %v1304_v16  ;;  %v1306_v19 = vpop.f32.mrb[17].mxu1  ;;  %1593 = vadd.xlane.f32.xlu0 %v3694_v15  ;;  %v2929_v16 = vld [vmem:[%s3359_s29 + $0xa8] sm:$0xff] }
 0x288   : > { %v1307_v22 = vpop.f32.mrb[18].mxu1 }
 0x289   : > { %v1309_v23 = vpop.f32.mrb[19].mxu1  ;;  %1595 = vadd.xlane.f32.xlu1 %v3700_v21  ;;  %v3704_v25 = vadd.f32 %v2919_v24, %v1305_v18  ;;  %v1308_v26 = vadd.f32 %v3638_v52, %v1307_v22 }
 0x28b   : > { %1597 = vadd.xlane.f32.xlu0 %v3704_v25  ;;  %v3714_v35 = vadd.f32 %v2921_v34, %v1308_v26  ;;  %v2930_v26 = vld [vmem:[%s3359_s29 + $0xb0] sm:$0xff] }
 0x28d   : > { %1579 = vadd.xlane.f32.xlu1 %v3709_v28 }
 0x28e   : > { %v1312_v13 = vpop.f32.mrb[20].mxu1 }
 0x28f   : > { %v1313_v31 = vadd.f32 %v3638_v52, %v1312_v13  ;;  %v1314_v32 = vpop.f32.mrb[21].mxu1  ;;  %v2931_v13 = vld [vmem:[%s3359_s29 + $0xb8] sm:$0xff] }
 0x290   : > { %v1315_v36 = vpop.f32.mrb[22].mxu1 }
 0x291   : > { %v1316_v37 = vadd.f32 %v3638_v52, %v1315_v36  ;;  %v1317_v56 = vpop.f32.mrb[23].mxu1  ;;  %1599 = vadd.xlane.f32.xlu1 %v3714_v35  ;;  %v3719_v40 = vadd.f32 %v2922_v39, %v1313_v31 }
 0x293   : > { %1601 = vadd.xlane.f32.xlu0 %v3719_v40  ;;  %v3723_v41 = vadd.f32 %v2923_v12, %v1316_v37  ;;  %v2932_v12 = vld [vmem:[%s3359_s29 + $0xc0] sm:$0xff] }
 0x295   : > { %1603 = vadd.xlane.f32.xlu1 %v3723_v41 }
 0x296   : > { %v1320_v57 = vpop.f32.mrb[24].mxu1 }
 0x297   : > { %v1321_v42 = vadd.f32 %v3638_v52, %v1320_v57  ;;  %v1322_v30 = vpop.f32.mrb[25].mxu1 }
 0x298   : > { %v1323_v43 = vpop.f32.mrb[26].mxu1 }
 0x299   : > { %v1324_v44 = vadd.f32 %v3638_v52, %v1323_v43  ;;  %v1325_v45 = vpop.f32.mrb[27].mxu1  ;;  %v3729_v47 = vadd.f32 %v2924_v46, %v1321_v42  ;;  %v2933_v42 = vld [vmem:[%s3359_s29 + $0xc8] sm:$0xff] }
 0x29b   : > { %1605 = vadd.xlane.f32.xlu0 %v3729_v47  ;;  %v3733_v50 = vadd.f32 %v2925_v48, %v1324_v44 }
 0x29d   : > { %1607 = vadd.xlane.f32.xlu1 %v3733_v50 }
 0x29e   : > { %v1328_v51 = vpop.f32.mrb[28].mxu1 }
 0x29f   : > { %v1329_v53 = vadd.f32 %v3638_v52, %v1328_v51  ;;  %v1330_v29 = vpop.f32.mrb[29].mxu1 }
 0x2a0   : > { %v1331_v55 = vpop.f32.mrb[30].mxu1 }
 0x2a1   : > { %v1332_v59 = vadd.f32 %v3638_v52, %v1331_v55  ;;  %v1333_v60 = vpop.f32.mrb[31].mxu1  ;;  %v3739_v62 = vadd.f32 %v2926_v61, %v1329_v53  ;;  %v2934_v53 = vld [vmem:[%s3359_s29 + $0xd0] sm:$0xff]  ;;  %v2935_v55 = vld [vmem:[%s3359_s29 + $0xd8] sm:$0xff] }
 0x2a3   : > { %1609 = vadd.xlane.f32.xlu0 %v3739_v62  ;;  %v3743_v1 = vadd.f32 %v2927_v63, %v1332_v59 }
 0x2a5   : > { %1611 = vadd.xlane.f32.xlu1 %v3743_v1 }
 0x2a6   : > { %v1336_v2 = vpop.f32.mrb[32].mxu1 }
 0x2a7   : > { %v1337_v3 = vadd.f32 %v3638_v52, %v1336_v2  ;;  %v1338_v4 = vpop.f32.mrb[33].mxu1 }
 0x2a8   : > { %v1339_v6 = vpop.f32.mrb[34].mxu1 }
 0x2a9   : > { %v1340_v8 = vadd.f32 %v3638_v52, %v1339_v6  ;;  %v1341_v9 = vpop.f32.mrb[35].mxu1  ;;  %v3749_v14 = vadd.f32 %v2928_v10, %v1337_v3  ;;  %v2936_v6 = vld [vmem:[%s3359_s29 + $0xe0] sm:$0xff] }
 0x2aa   : > { %v2937_v9 = vld [vmem:[%s3359_s29 + $0xe8] sm:$0xff] }
 0x2ab   : > { %1613 = vadd.xlane.f32.xlu0 %v3749_v14  ;;  %v3753_v17 = vadd.f32 %v2929_v16, %v1340_v8 }
 0x2ad   : > { %1615 = vadd.xlane.f32.xlu1 %v3753_v17 }
 0x2ae   : > { %v1344_v18 = vpop.f32.mrb[36].mxu1 }
 0x2af   : > { %v1345_v19 = vadd.f32 %v3638_v52, %v1344_v18  ;;  %v1346_v20 = vpop.f32.mrb[37].mxu1 }
 0x2b0   : > { %v1347_v22 = vpop.f32.mrb[38].mxu1 }
 0x2b1   : > { %v1348_v23 = vadd.f32 %v3638_v52, %v1347_v22  ;;  %v1349_v24 = vpop.f32.mrb[39].mxu1  ;;  %v3759_v27 = vadd.f32 %v2930_v26, %v1345_v19 }
 0x2b2   : > { %v2938_v24 = vld [vmem:[%s3359_s29 + $0xf0] sm:$0xff] }
 0x2b3   : > { %1617 = vadd.xlane.f32.xlu0 %v3759_v27  ;;  %v3763_v31 = vadd.f32 %v2931_v13, %v1348_v23  ;;  %v2939_v13 = vld [vmem:[%s3359_s29 + $0xf8] sm:$0xff] }
 0x2b5   : > { %1619 = vadd.xlane.f32.xlu1 %v3763_v31 }
 0x2b6   : > { %v1352_v32 = vpop.f32.mrb[40].mxu1 }
 0x2b7   : > { %v1353_v34 = vadd.f32 %v3638_v52, %v1352_v32  ;;  %v1354_v36 = vpop.f32.mrb[41].mxu1 }
 0x2b8   : > { %v1355_v37 = vpop.f32.mrb[42].mxu1 }
 0x2b9   : > { %v1356_v56 = vadd.f32 %v3638_v52, %v1355_v37  ;;  %v1357_v39 = vpop.f32.mrb[43].mxu1  ;;  %v3769_v57 = vadd.f32 %v2932_v12, %v1353_v34 }
 0x2bb   : > { %1621 = vadd.xlane.f32.xlu0 %v3769_v57  ;;  %v3773_v30 = vadd.f32 %v2933_v42, %v1356_v56  ;;  %v2940_v42 = vld [vmem:[%s3359_s29 + $0x100] sm:$0xff] }
 0x2bd   : > { %1623 = vadd.xlane.f32.xlu1 %v3773_v30 }
 0x2be   : > { %v1360_v43 = vpop.f32.mrb[44].mxu1 }
 0x2bf   : > { %v1361_v44 = vadd.f32 %v3638_v52, %v1360_v43  ;;  %v1362_v45 = vpop.f32.mrb[45].mxu1 }
 0x2c0   : > { %v1363_v46 = vpop.f32.mrb[46].mxu1 }
 0x2c1   : > { %v1364_v48 = vadd.f32 %v3638_v52, %v1363_v46  ;;  %v1365_v51 = vpop.f32.mrb[47].mxu1  ;;  %v3779_v29 = vadd.f32 %v2934_v53, %v1361_v44  ;;  %v2941_v44 = vld [vmem:[%s3359_s29 + $0x108] sm:$0xff] }
 0x2c3   : > { %1625 = vadd.xlane.f32.xlu0 %v3779_v29  ;;  %v3783_v59 = vadd.f32 %v2935_v55, %v1364_v48 }
 0x2c5   : > { %1627 = vadd.xlane.f32.xlu1 %v3783_v59 }
 0x2c6   : > { %v1368_v60 = vpop.f32.mrb[48].mxu1 }
 0x2c7   : > { %v1369_v61 = vadd.f32 %v3638_v52, %v1368_v60  ;;  %v1370_v63 = vpop.f32.mrb[49].mxu1 }
 0x2c8   : > { %v1371_v2 = vpop.f32.mrb[50].mxu1 }
 0x2c9   : > { %v1372_v3 = vadd.f32 %v3638_v52, %v1371_v2  ;;  %v1373_v4 = vpop.f32.mrb[51].mxu1  ;;  %v3789_v8 = vadd.f32 %v2936_v6, %v1369_v61  ;;  %v2942_v61 = vld [vmem:[%s3359_s29 + $0x110] sm:$0xff]  ;;  %v2943_v2 = vld [vmem:[%s3359_s29 + $0x118] sm:$0xff] }
 0x2cb   : > { %1629 = vadd.xlane.f32.xlu0 %v3789_v8  ;;  %v3793_v10 = vadd.f32 %v2937_v9, %v1372_v3 }
 0x2cd   : > { %1631 = vadd.xlane.f32.xlu1 %v3793_v10 }
 0x2ce   : > { %v1376_v16 = vpop.f32.mrb[52].mxu1 }
 0x2cf   : > { %v1377_v18 = vadd.f32 %v3638_v52, %v1376_v16  ;;  %v1378_v19 = vpop.f32.mrb[53].mxu1 }
 0x2d0   : > { %v1379_v20 = vpop.f32.mrb[54].mxu1 }
 0x2d1   : > { %v1380_v22 = vadd.f32 %v3638_v52, %v1379_v20  ;;  %v1381_v23 = vpop.f32.mrb[55].mxu1  ;;  %v3799_v26 = vadd.f32 %v2938_v24, %v1377_v18  ;;  %v2944_v20 = vld [vmem:[%s3359_s29 + $0x120] sm:$0xff] }
 0x2d2   : > { %v2945_v23 = vld [vmem:[%s3359_s29 + $0x128] sm:$0xff] }
 0x2d3   : > { %1633 = vadd.xlane.f32.xlu0 %v3799_v26  ;;  %v3803_v32 = vadd.f32 %v2939_v13, %v1380_v22 }
 0x2d5   : > { %1635 = vadd.xlane.f32.xlu1 %v3803_v32 }
 0x2d6   : > { %v1384_v34 = vpop.f32.mrb[56].mxu1 }
 0x2d7   : > { %v1385_v36 = vadd.f32 %v3638_v52, %v1384_v34  ;;  %v1386_v37 = vpop.f32.mrb[57].mxu1 }
 0x2d8   : > { %v1387_v56 = vpop.f32.mrb[58].mxu1 }
 0x2d9   : > { %v1388_v39 = vadd.f32 %v3638_v52, %v1387_v56  ;;  %v1389_v12 = vpop.f32.mrb[59].mxu1  ;;  %v3809_v43 = vadd.f32 %v2940_v42, %v1385_v36 }
 0x2da   : > { %v2946_v12 = vld [vmem:[%s3359_s29 + $0x130] sm:$0xff] }
 0x2db   : > { %1637 = vadd.xlane.f32.xlu0 %v3809_v43  ;;  %v3813_v45 = vadd.f32 %v2941_v44, %v1388_v39  ;;  %v2947_v44 = vld [vmem:[%s3359_s29 + $0x138] sm:$0xff] }
 0x2dd   : > { %1639 = vadd.xlane.f32.xlu1 %v3813_v45 }
 0x2de   : > { %v1392_v46 = vpop.f32.mrb[60].mxu1 }
 0x2df   : > { %v1393_v48 = vadd.f32 %v3638_v52, %v1392_v46  ;;  %v1394_v51 = vpop.f32.mrb[61].mxu1 }
 0x2e0   : > { %v1395_v53 = vpop.f32.mrb[62].mxu1 }
 0x2e1   : > { %v1396_v55 = vadd.f32 %v3638_v52, %v1395_v53  ;;  %v1397_v60 = vpop.f32.mrb[63].mxu1  ;;  %v3819_v63 = vadd.f32 %v2942_v61, %v1393_v48 }
 0x2e3   : > { %1641 = vadd.xlane.f32.xlu0 %v3819_v63  ;;  %v3823_v3 = vadd.f32 %v2943_v2, %v1396_v55 }
 0x2e5   : > { %1643 = vadd.xlane.f32.xlu1 %v3823_v3 }
 0x2e6   : > { %v1400_v4 = vpop.f32.mrb[64].mxu1 }
 0x2e7   : > { %v1401_v6 = vadd.f32 %v3638_v52, %v1400_v4  ;;  %v1402_v9 = vpop.f32.mrb[65].mxu1 }
 0x2e8   : > { %v1403_v16 = vpop.f32.mrb[66].mxu1 }
 0x2e9   : > { %v1404_v18 = vadd.f32 %v3638_v52, %v1403_v16  ;;  %v1405_v19 = vpop.f32.mrb[67].mxu1  ;;  %v3829_v22 = vadd.f32 %v2944_v20, %v1401_v6  ;;  %v2948_v6 = vld [vmem:[%s3359_s29 + $0x140] sm:$0xff] }
 0x2ea   : > { %v2949_v19 = vld [vmem:[%s3359_s29 + $0x148] sm:$0xff] }
 0x2eb   : > { %1645 = vadd.xlane.f32.xlu0 %v3829_v22  ;;  %v3833_v24 = vadd.f32 %v2945_v23, %v1404_v18 }
 0x2ed   : > { %1647 = vadd.xlane.f32.xlu1 %v3833_v24 }
 0x2ee   : > { %v1408_v13 = vpop.f32.mrb[68].mxu1 }
 0x2ef   : > { %v1409_v34 = vadd.f32 %v3638_v52, %v1408_v13  ;;  %v1410_v36 = vpop.f32.mrb[69].mxu1 }
 0x2f0   : > { %v1411_v37 = vpop.f32.mrb[70].mxu1 }
 0x2f1   : > { %v1412_v56 = vadd.f32 %v3638_v52, %v1411_v37  ;;  %v1413_v39 = vpop.f32.mrb[71].mxu1  ;;  %v3839_v42 = vadd.f32 %v2946_v12, %v1409_v34 }
 0x2f3   : > { %1649 = vadd.xlane.f32.xlu0 %v3839_v42  ;;  %v3843_v46 = vadd.f32 %v2947_v44, %v1412_v56 }
 0x2f5   : > { %1651 = vadd.xlane.f32.xlu1 %v3843_v46 }
 0x2f6   : > { %v1416_v48 = vpop.f32.mrb[72].mxu1 }
 0x2f7   : > { %v1417_v51 = vadd.f32 %v3638_v52, %v1416_v48  ;;  %v1418_v53 = vpop.f32.mrb[73].mxu1 }
 0x2f8   : > { %v1419_v55 = vpop.f32.mrb[74].mxu1  ;;  %v1582_v60 = vpop.xlane.xlu0 %1581 }
 0x2f9   : > { %v1420_v61 = vadd.f32 %v3638_v52, %v1419_v55  ;;  %v1704_v2 = vmul.f32 0.0078125, %v1582_v60  ;;  %v1421_v4 = vpop.f32.mrb[75].mxu1  ;;  %v3849_v9 = vadd.f32 %v2948_v6, %v1417_v51  ;;  %v2950_v55 = vld [vmem:[%s3359_s29 + $0x158] sm:$0xff] }
 0x2fa   : > { %v1584_v16 = vpop.xlane.xlu1 %1583 }
 0x2fb   : > { %v1705_v18 = vmul.f32 0.0078125, %v1584_v16  ;;  %1653 = vadd.xlane.f32.xlu0 %v3849_v9  ;;  %v3853_v20 = vadd.f32 %v2949_v19, %v1420_v61  ;;  %v3856_v23 = vsub.f32 %v3644_v7, %v1704_v2  ;;  %v2951_v61 = vld [vmem:[%s3359_s29 + $0x150] sm:$0xff] }
 0x2fd   : > { %1655 = vadd.xlane.f32.xlu1 %v3853_v20  ;;  %v3860_v13 = vsub.f32 %v3650_v0, %v1705_v18  ;;  %v1830_v56 = vmul.f32 %v3856_v23, %v3856_v23 }
 0x2fe   : > { %v1424_v34 = vpop.f32.mrb[76].mxu1 }
 0x2ff   : > { %v1425_v36 = vadd.f32 %v3638_v52, %v1424_v34  ;;  %v1426_v37 = vpop.f32.mrb[77].mxu1  ;;  %v1831_v39 = vmul.f32 %v3860_v13, %v3860_v13 }
 0x300   : > { %v1427_v12 = vpop.f32.mrb[78].mxu1  ;;  %v1586_v7 = vpop.xlane.xlu0 %1585 }
 0x301   : > { %v1428_v44 = vadd.f32 %v3638_v52, %v1427_v12  ;;  %v1706_v48 = vmul.f32 0.0078125, %v1586_v7  ;;  %v1429_v51 = vpop.f32.mrb[79].mxu1  ;;  %1897 = vadd.xlane.f32.xlu1 %v1830_v56  ;;  %1899 = vadd.xlane.f32.xlu0 %v1831_v39  ;;  %v3872_v2 = vadd.f32 %v2951_v61, %v1425_v36 }
 0x302   : > { %v1588_v0 = vpop.xlane.xlu1 %1587  ;;  %v2953_v51 = vld [vmem:[%s3359_s29 + $0x160] sm:$0xff] }
 0x303   : > { %v1707_v53 = vmul.f32 0.0078125, %v1588_v0  ;;  %v3869_v60 = vadd.f32 %v2950_v55, %v1428_v44  ;;  %v3875_v4 = vsub.f32 %v3658_v33, %v1706_v48  ;;  %v2952_v44 = vld [vmem:[%s3359_s29 + $0x168] sm:$0xff] }
 0x305   : > { %1659 = vadd.xlane.f32.xlu1 %v3869_v60  ;;  %1657 = vadd.xlane.f32.xlu0 %v3872_v2  ;;  %v3880_v6 = vsub.f32 %v3663_v38, %v1707_v53  ;;  %v1832_v34 = vmul.f32 %v3875_v4, %v3875_v4 }
 0x306   : > { %v1432_v16 = vpop.f32.mrb[80].mxu1 }
 0x307   : > { %v1433_v18 = vadd.f32 %v3638_v52, %v1432_v16  ;;  %v1434_v19 = vpop.f32.mrb[81].mxu1  ;;  %v1833_v33 = vmul.f32 %v3880_v6, %v3880_v6 }
 0x308   : > { %v1435_v36 = vpop.f32.mrb[82].mxu1  ;;  %v1590_v37 = vpop.xlane.xlu0 %1589 }
 0x309   : > { %v1436_v56 = vadd.f32 %v3638_v52, %v1435_v36  ;;  %v1708_v39 = vmul.f32 0.0078125, %v1590_v37  ;;  %v1437_v12 = vpop.f32.mrb[83].mxu1  ;;  %1901 = vadd.xlane.f32.xlu1 %v1832_v34  ;;  %1903 = vadd.xlane.f32.xlu0 %v1833_v33  ;;  %v3892_v0 = vadd.f32 %v2953_v51, %v1433_v18 }
 0x30a   : > { %v1592_v38 = vpop.xlane.xlu1 %1591 }
 0x30b   : > { %v1709_v7 = vmul.f32 0.0078125, %v1592_v38  ;;  %v3889_v48 = vadd.f32 %v2952_v44, %v1436_v56  ;;  %v3895_v53 = vsub.f32 %v3670_v49, %v1708_v39 }
 0x30c   : > { %v1574_v55 = vpop.xlane.xlu0 %1573 }
 0x30d   : > { %v1700_v61 = vmul.f32 0.0078125, %v1574_v55  ;;  %1663 = vadd.xlane.f32.xlu1 %v3889_v48  ;;  %1661 = vadd.xlane.f32.xlu0 %v3892_v0  ;;  %v3900_v16 = vsub.f32 %v3674_v54, %v1709_v7  ;;  %v1834_v18 = vmul.f32 %v3895_v53, %v3895_v53  ;;  %v2954_v7 = vld [vmem:[%s3359_s29 + $0x170] sm:$0xff] }
 0x30e   : > { %v1440_v19 = vpop.f32.mrb[84].mxu1 }
 0x30f   : > { %v1441_v34 = vadd.f32 %v3638_v52, %v1440_v19  ;;  %v1442_v33 = vpop.f32.mrb[85].mxu1  ;;  %v1835_v49 = vmul.f32 %v3900_v16, %v3900_v16  ;;  %v3908_v36 = vsub.f32 %v3679_v58, %v1700_v61 }
 0x310   : > { %v1443_v37 = vpop.f32.mrb[86].mxu1  ;;  %v1576_v56 = vpop.xlane.xlu0 %1575 }
 0x311   : > { %v1701_v39 = vmul.f32 0.0078125, %v1576_v56  ;;  %v1445_v12 = vpop.f32.mrb[87].mxu1  ;;  %1905 = vadd.xlane.f32.xlu1 %v1834_v18  ;;  %1907 = vadd.xlane.f32.xlu0 %v1835_v49  ;;  %v1444_v38 = vadd.f32 %v3638_v52, %v1443_v37  ;;  %v3912_v44 = vadd.f32 %v2954_v7, %v1441_v34  ;;  %v1826_v51 = vmul.f32 %v3908_v36, %v3908_v36  ;;  %v2955_v37 = vld [vmem:[%s3359_s29 + $0x178] sm:$0xff] }
 0x312   : > { %v1578_v54 = vpop.xlane.xlu1 %1577 }
 0x313   : > { %v3917_v55 = vsub.f32 %v3685_v5, %v1701_v39  ;;  %v1702_v19 = vmul.f32 0.0078125, %v1578_v54  ;;  %v3921_v12 = vadd.f32 %v2955_v37, %v1444_v38 }
 0x314   : > { %v1594_v58 = vpop.xlane.xlu0 %1593 }
 0x315   : > { %v1710_v61 = vmul.f32 0.0078125, %v1594_v58  ;;  %1665 = vadd.xlane.f32.xlu0 %v3912_v44  ;;  %1889 = vadd.xlane.f32.xlu1 %v1826_v51  ;;  %v1827_v34 = vmul.f32 %v3917_v55, %v3917_v55  ;;  %v3933_v58 = vsub.f32 %v3690_v11, %v1702_v19 }
 0x316   : > { %v1448_v33 = vpop.f32.mrb[88].mxu1  ;;  %v1596_v18 = vpop.xlane.xlu1 %1595 }
 0x317   : > { %v1711_v49 = vmul.f32 0.0078125, %v1596_v18  ;;  %v1450_v56 = vpop.f32.mrb[89].mxu1  ;;  %v3926_v7 = vsub.f32 %v3694_v15, %v1710_v61  ;;  %4662 = vst [vmem:[#allocation17_spill] sm:$0xff] %v3933_v58  ;;  %v1449_v38 = vadd.f32 %v3638_v52, %v1448_v33  ;;  %v1828_v11 = vmul.f32 %v3933_v58, %v3933_v58 }
 0x318   : > { %v1451_v5 = vpop.f32.mrb[90].mxu1  ;;  %v1598_v18 = vpop.xlane.xlu0 %1597 }
 0x319   : > { %4660 = vst [vmem:[#allocation15_spill] sm:$0xff] %v3926_v7  ;;  %v1453_v39 = vpop.f32.mrb[91].mxu1  ;;  %1667 = vadd.xlane.f32.xlu1 %v3921_v12  ;;  %1891 = vadd.xlane.f32.xlu0 %v1827_v34  ;;  %v3930_v54 = vsub.f32 %v3700_v21, %v1711_v49  ;;  %v1836_v61 = vmul.f32 %v3926_v7, %v3926_v7  ;;  %v1712_v37 = vmul.f32 0.0078125, %v1598_v18 }
 0x31a   : > { %v1580_v51 = vpop.xlane.xlu1 %1579  ;;  %v1452_v19 = vadd.f32 %v3638_v52, %v1451_v5  ;;  %v2956_v39 = vld [vmem:[%s3359_s29 + $0x180] sm:$0xff] }
 0x31b   : > { %4661 = vst [vmem:[#allocation16_spill] sm:$0xff] %v3930_v54  ;;  %v1703_v56 = vmul.f32 0.0078125, %v1580_v51  ;;  %v1837_v15 = vmul.f32 %v3930_v54, %v3930_v54  ;;  %v3944_v51 = vadd.f32 %v2956_v39, %v1449_v38  ;;  %v3951_v18 = vsub.f32 %v3704_v25, %v1712_v37 }
 0x31d   : > { %1911 = vadd.xlane.f32.xlu0 %v1837_v15  ;;  %1909 = vadd.xlane.f32.xlu1 %v1836_v61  ;;  %v3947_v54 = vsub.f32 %v3709_v28, %v1703_v56  ;;  %4664 = vst [vmem:[#allocation19_spill] sm:$0xff] %v3951_v18  ;;  %v1838_v25 = vmul.f32 %v3951_v18, %v3951_v18  ;;  %v2959_v18 = vld [vmem:[%s3359_s29 + $0x198] sm:$0xff] }
 0x31e   : > { %v1456_v21 = vpop.f32.mrb[92].mxu1  ;;  %v1600_v49 = vpop.xlane.xlu1 %1599 }
 0x31f   : > { %v1713_v33 = vmul.f32 0.0078125, %v1600_v49  ;;  %v1458_v34 = vpop.f32.mrb[93].mxu1  ;;  %4663 = vst [vmem:[#allocation18_spill] sm:$0xff] %v3947_v54  ;;  %v1829_v5 = vmul.f32 %v3947_v54, %v3947_v54  ;;  %v2957_v49 = vld [vmem:[%s3359_s29 + $0x188] sm:$0xff]  ;;  %v1457_v37 = vadd.f32 %v3638_v52, %v1456_v21  ;;  %v2958_v54 = vld [vmem:[%s3359_s29 + $0x190] sm:$0xff] }
 0x320   : > { %v1459_v7 = vpop.f32.mrb[94].mxu1  ;;  %v1602_v61 = vpop.xlane.xlu0 %1601  ;;  %v3956_v34 = vadd.f32 %v2957_v49, %v1452_v19 }
 0x321   : > { %v1461_v15 = vpop.f32.mrb[95].mxu1  ;;  %1669 = vadd.xlane.f32.xlu0 %v3944_v51  ;;  %1893 = vadd.xlane.f32.xlu1 %v1828_v11  ;;  %v3959_v38 = vsub.f32 %v3714_v35, %v1713_v33  ;;  %v1714_v56 = vmul.f32 0.0078125, %v1602_v61  ;;  %v1460_v39 = vadd.f32 %v3638_v52, %v1459_v7  ;;  %v3972_v58 = vadd.f32 %v2958_v54, %v1457_v37 }
 0x322   : > { %v1604_v28 = vpop.xlane.xlu1 %1603 }
 0x323   : > { %4665 = vst [vmem:[#allocation20_spill] sm:$0xff] %v3959_v38  ;;  %v1715_v19 = vmul.f32 0.0078125, %v1604_v28  ;;  %v1839_v35 = vmul.f32 %v3959_v38, %v3959_v38  ;;  %v3969_v61 = vsub.f32 %v3719_v40, %v1714_v56  ;;  %v3975_v21 = vadd.f32 %v2959_v18, %v1460_v39 }
 0x325   : > { %1895 = vadd.xlane.f32.xlu0 %v1829_v5  ;;  %1671 = vadd.xlane.f32.xlu1 %v3956_v34  ;;  %4666 = vst [vmem:[#allocation21_spill] sm:$0xff] %v3969_v61  ;;  %v3978_v7 = vsub.f32 %v3723_v41, %v1715_v19  ;;  %v1840_v56 = vmul.f32 %v3969_v61, %v3969_v61  ;;  %v2961_v61 = vld [vmem:[%s3359_s29 + $0x1a8] sm:$0xff] }
 0x326   : > { %v1464_v11 = vpop.f32.mrb[96].mxu1 }
 0x327   : > { %v1466_v15 = vpop.f32.mrb[97].mxu1  ;;  %4667 = vst [vmem:[#allocation22_spill] sm:$0xff] %v3978_v7  ;;  %v1465_v54 = vadd.f32 %v3638_v52, %v1464_v11  ;;  %v1841_v41 = vmul.f32 %v3978_v7, %v3978_v7 }
 0x328   : > { %v1467_v33 = vpop.f32.mrb[98].mxu1  ;;  %v1606_v49 = vpop.xlane.xlu0 %1605 }
 0x329   : > { %v1469_v5 = vpop.f32.mrb[99].mxu1  ;;  %1915 = vadd.xlane.f32.xlu0 %v1839_v35  ;;  %1913 = vadd.xlane.f32.xlu1 %v1838_v25  ;;  %v1716_v25 = vmul.f32 0.0078125, %v1606_v49  ;;  %v1468_v18 = vadd.f32 %v3638_v52, %v1467_v33  ;;  %v2960_v49 = vld [vmem:[%s3359_s29 + $0x1a0] sm:$0xff] }
 0x32a   : > { %v1608_v28 = vpop.xlane.xlu1 %1607  ;;  %v3992_v38 = vadd.f32 %v2960_v49, %v1465_v54 }
 0x32b   : > { %v1717_v37 = vmul.f32 0.0078125, %v1608_v28  ;;  %v3989_v35 = vsub.f32 %v3729_v47, %v1716_v25  ;;  %v3995_v11 = vadd.f32 %v2961_v61, %v1468_v18 }
 0x32d   : > { %1673 = vadd.xlane.f32.xlu0 %v3972_v58  ;;  %1675 = vadd.xlane.f32.xlu1 %v3975_v21  ;;  %4668 = vst [vmem:[#allocation23_spill] sm:$0xff] %v3989_v35  ;;  %v3998_v33 = vsub.f32 %v3733_v50, %v1717_v37  ;;  %v1842_v25 = vmul.f32 %v3989_v35, %v3989_v35  ;;  %v2963_v35 = vld [vmem:[%s3359_s29 + $0x1b8] sm:$0xff] }
 0x32e   : > { %v1472_v40 = vpop.f32.mrb[100].mxu1 }
 0x32f   : > { %v1474_v39 = vpop.f32.mrb[101].mxu1  ;;  %4669 = vst [vmem:[#allocation24_spill] sm:$0xff] %v3998_v33  ;;  %v1473_v54 = vadd.f32 %v3638_v52, %v1472_v40  ;;  %v1843_v50 = vmul.f32 %v3998_v33, %v3998_v33 }
 0x330   : > { %v1475_v19 = vpop.f32.mrb[102].mxu1  ;;  %v1610_v5 = vpop.xlane.xlu0 %1609 }
 0x331   : > { %v1477_v15 = vpop.f32.mrb[103].mxu1  ;;  %1919 = vadd.xlane.f32.xlu0 %v1841_v41  ;;  %1917 = vadd.xlane.f32.xlu1 %v1840_v56  ;;  %v1718_v56 = vmul.f32 0.0078125, %v1610_v5  ;;  %v1476_v61 = vadd.f32 %v3638_v52, %v1475_v19  ;;  %v2962_v5 = vld [vmem:[%s3359_s29 + $0x1b0] sm:$0xff] }
 0x332   : > { %v1612_v28 = vpop.xlane.xlu1 %1611  ;;  %v4012_v49 = vadd.f32 %v2962_v5, %v1473_v54  ;;  %v2964_v5 = vld [vmem:[%s3359_s29 + $0x1c0] sm:$0xff] }
 0x333   : > { %v1719_v18 = vmul.f32 0.0078125, %v1612_v28  ;;  %v4009_v15 = vsub.f32 %v3739_v62, %v1718_v56  ;;  %v4015_v7 = vadd.f32 %v2963_v35, %v1476_v61 }
 0x334   : > { %4671 = vst [vmem:[#allocation26_spill] sm:$0xff] %v4012_v49 }
 0x335   : > { %1677 = vadd.xlane.f32.xlu0 %v3992_v38  ;;  %1679 = vadd.xlane.f32.xlu1 %v3995_v11  ;;  %4670 = vst [vmem:[#allocation25_spill] sm:$0xff] %v4009_v15  ;;  %v4018_v40 = vsub.f32 %v3743_v1, %v1719_v18 }
 0x336   : > { %v1480_v47 = vpop.f32.mrb[104].mxu1 }
 0x337   : > { %v1482_v39 = vpop.f32.mrb[105].mxu1  ;;  %4672 = vst [vmem:[#allocation27_spill] sm:$0xff] %v4018_v40  ;;  %v1481_v62 = vadd.f32 %v3638_v52, %v1480_v47  ;;  %v1845_v18 = vmul.f32 %v4018_v40, %v4018_v40  ;;  %v2965_v47 = vld [vmem:[%s3359_s29 + $0x1c8] sm:$0xff] }
 0x338   : > { %v1483_v37 = vpop.f32.mrb[106].mxu1  ;;  %v1614_v19 = vpop.xlane.xlu0 %1613 }
 0x339   : > { %v1485_v41 = vpop.f32.mrb[107].mxu1  ;;  %1923 = vadd.xlane.f32.xlu0 %v1843_v50  ;;  %1921 = vadd.xlane.f32.xlu1 %v1842_v25  ;;  %v1844_v25 = vmul.f32 %v4009_v15, %v4009_v15  ;;  %v1484_v35 = vadd.f32 %v3638_v52, %v1483_v37  ;;  %v1720_v54 = vmul.f32 0.0078125, %v1614_v19  ;;  %v4029_v33 = vadd.f32 %v2964_v5, %v1481_v62 }
 0x33a   : > { %v1616_v28 = vpop.xlane.xlu1 %1615 }
 0x33b   : > { %v1721_v61 = vmul.f32 0.0078125, %v1616_v28  ;;  %v4038_v37 = vsub.f32 %v3749_v14, %v1720_v54 }
 0x33d   : > { %1681 = vadd.xlane.f32.xlu0 %v4012_v49  ;;  %1683 = vadd.xlane.f32.xlu1 %v4015_v7  ;;  %v4032_v49 = vadd.f32 %v2965_v47, %v1484_v35  ;;  %v4035_v15 = vsub.f32 %v3753_v17, %v1721_v61  ;;  %4674 = vst [vmem:[#allocation29_spill] sm:$0xff] %v4038_v37 }
 0x33e   : > { %v1488_v56 = vpop.f32.mrb[108].mxu1  ;;  %v1846_v14 = vmul.f32 %v4038_v37, %v4038_v37 }
 0x33f   : > { %v1490_v1 = vpop.f32.mrb[109].mxu1  ;;  %4673 = vst [vmem:[#allocation28_spill] sm:$0xff] %v4035_v15  ;;  %v1489_v62 = vadd.f32 %v3638_v52, %v1488_v56  ;;  %v1847_v17 = vmul.f32 %v4035_v15, %v4035_v15  ;;  %v2966_v56 = vld [vmem:[%s3359_s29 + $0x1d0] sm:$0xff] }
 0x340   : > { %v1491_v39 = vpop.f32.mrb[110].mxu1  ;;  %v1618_v41 = vpop.xlane.xlu0 %1617 }
 0x341   : > { %v1493_v50 = vpop.f32.mrb[111].mxu1  ;;  %1927 = vadd.xlane.f32.xlu0 %v1845_v18  ;;  %1925 = vadd.xlane.f32.xlu1 %v1844_v25  ;;  %v1722_v19 = vmul.f32 0.0078125, %v1618_v41  ;;  %v1492_v25 = vadd.f32 %v3638_v52, %v1491_v39  ;;  %v4053_v39 = vadd.f32 %v2966_v56, %v1489_v62  ;;  %v2967_v41 = vld [vmem:[%s3359_s29 + $0x1d8] sm:$0xff] }
 0x342   : > { %v1620_v18 = vpop.xlane.xlu1 %1619 }
 0x343   : > { %v4049_v1 = vsub.f32 %v3759_v27, %v1722_v19  ;;  %4676 = vst [vmem:[#allocation31_spill] sm:$0xff] %v4053_v39  ;;  %v4056_v5 = vadd.f32 %v2967_v41, %v1492_v25 }
 0x345   : > { %1685 = vadd.xlane.f32.xlu0 %v4029_v33  ;;  %1687 = vadd.xlane.f32.xlu1 %v4032_v49  ;;  %4675 = vst [vmem:[#allocation30_spill] sm:$0xff] %v4049_v1  ;;  %v1848_v27 = vmul.f32 %v4049_v1, %v4049_v1 }
 0x346   : > { %v1496_v28 = vpop.f32.mrb[112].mxu1 }
 0x347   : > { %v1498_v35 = vpop.f32.mrb[113].mxu1  ;;  %v1497_v50 = vadd.f32 %v3638_v52, %v1496_v28 }
 0x348   : > { %v1499_v54 = vpop.f32.mrb[114].mxu1  ;;  %v1622_v47 = vpop.xlane.xlu0 %1621  ;;  %v1723_v35 = vmul.f32 0.0078125, %v1620_v18 }
 0x349   : > { %v1501_v61 = vpop.f32.mrb[115].mxu1  ;;  %1931 = vadd.xlane.f32.xlu0 %v1847_v17  ;;  %1929 = vadd.xlane.f32.xlu1 %v1846_v14  ;;  %v1500_v19 = vadd.f32 %v3638_v52, %v1499_v54  ;;  %v1724_v28 = vmul.f32 0.0078125, %v1622_v47  ;;  %v2969_v47 = vld [vmem:[%s3359_s29 + $0x1f0] sm:$0xff] }
 0x34a   : > { %v1624_v62 = vpop.xlane.xlu1 %1623  ;;  %v2968_v61 = vld [vmem:[%s3359_s29 + $0x1e0] sm:$0xff]  ;;  %v4069_v1 = vsub.f32 %v3763_v31, %v1723_v35 }
 0x34b   : > { %v4065_v56 = vadd.f32 %v2968_v61, %v1497_v50  ;;  %v1725_v18 = vmul.f32 0.0078125, %v1624_v62  ;;  %v4078_v50 = vsub.f32 %v3769_v57, %v1724_v28 }
 0x34d   : > { %1689 = vadd.xlane.f32.xlu0 %v4053_v39  ;;  %1691 = vadd.xlane.f32.xlu1 %v4056_v5  ;;  %v2970_v39 = vld [vmem:[%s3359_s29 + $0x1e8] sm:$0xff]  ;;  %v1850_v35 = vmul.f32 %v4078_v50, %v4078_v50  ;;  %s2479_s29 = ssub.s32 (%p4694_p9), 125, %s2478_s23 }
 0x34e   : > { %v1504_v17 = vpop.f32.mrb[116].mxu1  ;;  %p2480_p10 = scmp.lt.s32.totalorder (%p4694_p9), %s2479_s29, 63 }
 0x34f   : > { %v1505_v14 = vadd.f32 %v3638_v52, %v1504_v17  ;;  %v1506_v25 = vpop.f32.mrb[117].mxu1  ;;  %v4075_v52 = vadd.f32 %v2970_v39, %v1500_v19 }
 0x350   : > { %v1507_v41 = vpop.f32.mrb[118].mxu1  ;;  %v1626_v15 = vpop.xlane.xlu0 %1625 }
 0x351   : > { %v1508_v37 = vpop.f32.mrb[119].mxu1  ;;  %1693 = vadd.xlane.f32.xlu0 %v4065_v56  ;;  %1933 = vadd.xlane.f32.xlu1 %v1848_v27  ;;  %v1726_v54 = vmul.f32 0.0078125, %v1626_v15  ;;  %v4072_v40 = vadd.f32 %v2969_v47, %v1505_v14  ;;  %v1849_v15 = vmul.f32 %v4069_v1, %v4069_v1 }
 0x352   : > { %v1628_v17 = vpop.xlane.xlu1 %1627  ;;  %v4083_v37 = vsub.f32 %v3773_v30, %v1725_v18 }
 0x353   : > { %v1727_v31 = vmul.f32 0.0078125, %v1628_v17  ;;  %v4090_v39 = vsub.f32 %v3779_v29, %v1726_v54 }
 0x354   : > { %v1851_v28 = vmul.f32 %v4083_v37, %v4083_v37 }
 0x355   : > { %1697 = vadd.xlane.f32.xlu0 %v4072_v40  ;;  %1695 = vadd.xlane.f32.xlu1 %v4075_v52  ;;  %v1852_v14 = vmul.f32 %v4090_v39, %v4090_v39  ;;  %v4100_v25 = vsub.f32 %v3783_v59, %v1727_v31 }
 0x357   : > { %v1853_v61 = vmul.f32 %v4100_v25, %v4100_v25 }
 0x358   : > { %v1630_v57 = vpop.xlane.xlu0 %1629 }
 0x359   : > { %v1728_v27 = vmul.f32 0.0078125, %v1630_v57  ;;  %1935 = vadd.xlane.f32.xlu0 %v1849_v15  ;;  %1937 = vadd.xlane.f32.xlu1 %v1850_v35 }
 0x35a   : > { %v1632_v19 = vpop.xlane.xlu1 %1631 }
 0x35b   : > { %v4095_v30 = vsub.f32 %v3789_v8, %v1728_v27  ;;  %v1729_v62 = vmul.f32 0.0078125, %v1632_v19 }
 0x35d   : > { %1939 = vadd.xlane.f32.xlu0 %v1851_v28  ;;  %1941 = vadd.xlane.f32.xlu1 %v1852_v14  ;;  %v4103_v29 = vsub.f32 %v3793_v10, %v1729_v62  ;;  %v1854_v41 = vmul.f32 %v4095_v30, %v4095_v30 }
 0x35f   : > { %v1855_v17 = vmul.f32 %v4103_v29, %v4103_v29 }
 0x360   : > { %v1634_v8 = vpop.xlane.xlu0 %1633 }
 0x361   : > { %v1730_v18 = vmul.f32 0.0078125, %v1634_v8  ;;  %1943 = vadd.xlane.f32.xlu0 %v1853_v61  ;;  %1945 = vadd.xlane.f32.xlu1 %v1854_v41 }
 0x362   : > { %v1636_v54 = vpop.xlane.xlu1 %1635 }
 0x363   : > { %v4110_v47 = vsub.f32 %v3799_v26, %v1730_v18  ;;  %v1731_v59 = vmul.f32 0.0078125, %v1636_v54 }
 0x365   : > { %v4115_v10 = vsub.f32 %v3803_v32, %v1731_v59  ;;  %1947 = vadd.xlane.f32.xlu0 %v1855_v17  ;;  %v1856_v31 = vmul.f32 %v4110_v47, %v4110_v47 }
 0x367   : > { %1949 = vadd.xlane.f32.xlu1 %v1856_v31  ;;  %v1857_v15 = vmul.f32 %v4115_v10, %v4115_v10 }
 0x368   : > { %v1638_v35 = vpop.xlane.xlu0 %1637 }
 0x369   : > { %v1732_v57 = vmul.f32 0.0078125, %v1638_v35  ;;  %1951 = vadd.xlane.f32.xlu0 %v1857_v15 }
 0x36a   : > { %v1640_v26 = vpop.xlane.xlu1 %1639 }
 0x36b   : > { %v4122_v27 = vsub.f32 %v3809_v43, %v1732_v57  ;;  %v1733_v19 = vmul.f32 0.0078125, %v1640_v26 }
 0x36d   : > { %v4125_v28 = vsub.f32 %v3813_v45, %v1733_v19  ;;  %v1858_v32 = vmul.f32 %v4122_v27, %v4122_v27 }
 0x36f   : > { %1953 = vadd.xlane.f32.xlu1 %v1858_v32  ;;  %v1859_v62 = vmul.f32 %v4125_v28, %v4125_v28 }
 0x370   : > { %v1642_v14 = vpop.xlane.xlu0 %1641 }
 0x371   : > { %v1734_v61 = vmul.f32 0.0078125, %v1642_v14  ;;  %1955 = vadd.xlane.f32.xlu0 %v1859_v62 }
 0x372   : > { %v1644_v41 = vpop.xlane.xlu1 %1643 }
 0x373   : > { %v4132_v8 = vsub.f32 %v3819_v63, %v1734_v61  ;;  %v1735_v43 = vmul.f32 0.0078125, %v1644_v41 }
 0x375   : > { %v4135_v18 = vsub.f32 %v3823_v3, %v1735_v43  ;;  %v1860_v45 = vmul.f32 %v4132_v8, %v4132_v8 }
 0x377   : > { %1957 = vadd.xlane.f32.xlu1 %v1860_v45  ;;  %v1861_v54 = vmul.f32 %v4135_v18, %v4135_v18 }
 0x378   : > { %v1646_v59 = vpop.xlane.xlu0 %1645 }
 0x379   : > { %v1736_v17 = vmul.f32 0.0078125, %v1646_v59  ;;  %1959 = vadd.xlane.f32.xlu0 %v1861_v54 }
 0x37a   : > { %v1648_v31 = vpop.xlane.xlu1 %1647 }
 0x37b   : > { %v4142_v15 = vsub.f32 %v3829_v22, %v1736_v17  ;;  %v1737_v63 = vmul.f32 0.0078125, %v1648_v31 }
 0x37d   : > { %v4145_v35 = vsub.f32 %v3833_v24, %v1737_v63  ;;  %v1862_v3 = vmul.f32 %v4142_v15, %v4142_v15 }
 0x37f   : > { %1961 = vadd.xlane.f32.xlu1 %v1862_v3  ;;  %v1863_v57 = vmul.f32 %v4145_v35, %v4145_v35 }
 0x380   : > { %v1650_v26 = vpop.xlane.xlu0 %1649 }
 0x381   : > { %v1738_v19 = vmul.f32 0.0078125, %v1650_v26  ;;  %1963 = vadd.xlane.f32.xlu0 %v1863_v57 }
 0x382   : > { %v1652_v32 = vpop.xlane.xlu1 %1651 }
 0x383   : > { %v4152_v62 = vsub.f32 %v3839_v42, %v1738_v19  ;;  %v1739_v22 = vmul.f32 0.0078125, %v1652_v32 }
 0x385   : > { %v4155_v14 = vsub.f32 %v3843_v46, %v1739_v22  ;;  %v1864_v24 = vmul.f32 %v4152_v62, %v4152_v62 }
 0x387   : > { %1965 = vadd.xlane.f32.xlu1 %v1864_v24  ;;  %v1865_v61 = vmul.f32 %v4155_v14, %v4155_v14 }
 0x388   : > { %v1654_v41 = vpop.xlane.xlu0 %1653 }
 0x389   : > { %v1740_v43 = vmul.f32 0.0078125, %v1654_v41  ;;  %1967 = vadd.xlane.f32.xlu0 %v1865_v61 }
 0x38a   : > { %v1656_v45 = vpop.xlane.xlu1 %1655 }
 0x38b   : > { %v4162_v54 = vsub.f32 %v3849_v9, %v1740_v43  ;;  %v1741_v42 = vmul.f32 0.0078125, %v1656_v45 }
 0x38d   : > { %v4165_v59 = vsub.f32 %v3853_v20, %v1741_v42  ;;  %v1866_v46 = vmul.f32 %v4162_v54, %v4162_v54 }
 0x38e   : > { %v1898_v17 = vpop.xlane.xlu1 %1897  ;;  %v1900_v31 = vpop.xlane.xlu0 %1899 }
 0x38f   : > { %v2019_v63 = vmul.f32 0.0078125, %v1898_v17  ;;  %v2020_v3 = vmul.f32 0.0078125, %v1900_v31  ;;  %1969 = vadd.xlane.f32.xlu1 %v1866_v46  ;;  %v1867_v57 = vmul.f32 %v4165_v59, %v4165_v59 }
 0x391   : > { %v2082_v26 = vadd.f32 1e-05, %v2019_v63  ;;  %v2083_v19 = vadd.f32 1e-05, %v2020_v3  ;;  %1971 = vadd.xlane.f32.xlu0 %v1867_v57 }
 0x392   : > { %v1660_v9 = vpop.xlane.xlu1 %1659  ;;  %v1658_v32 = vpop.xlane.xlu0 %1657 }
 0x393   : > { %2782 = vrsqrt.f32 %v2082_v26  ;;  %v1743_v22 = vmul.f32 0.0078125, %v1660_v9  ;;  %v1742_v20 = vmul.f32 0.0078125, %v1658_v32 }
 0x394   : > { %2784 = vrsqrt.f32 %v2083_v19  ;;  %v4184_v19 = vld [vmem:[%s4620_s5] ss:$0 sm:$0xff] }
 0x395   : > { %v4172_v24 = vsub.f32 %v3869_v60, %v1743_v22  ;;  %v4175_v61 = vsub.f32 %v3872_v2, %v1742_v20 }
 0x396   : > { %v1902_v41 = vpop.xlane.xlu1 %1901  ;;  %v1904_v43 = vpop.xlane.xlu0 %1903 }
 0x397   : > { %v2021_v45 = vmul.f32 0.0078125, %v1902_v41  ;;  %v2022_v42 = vmul.f32 0.0078125, %v1904_v43  ;;  %v1869_v46 = vmul.f32 %v4172_v24, %v4172_v24  ;;  %v1868_v17 = vmul.f32 %v4175_v61, %v4175_v61 }
 0x399   : > { %v2084_v31 = vadd.f32 1e-05, %v2021_v45  ;;  %v2085_v63 = vadd.f32 1e-05, %v2022_v42  ;;  %1975 = vadd.xlane.f32.xlu0 %v1869_v46  ;;  %1973 = vadd.xlane.f32.xlu1 %v1868_v17  ;;  %v4196_v45 = vld [vmem:[%s4621_s6] ss:$0 sm:$0xff] }
 0x39a   : > { %v1664_v3 = vpop.xlane.xlu1 %1663  ;;  %v1662_v60 = vpop.xlane.xlu0 %1661 }
 0x39b   : > { %2786 = vrsqrt.f32 %v2084_v31  ;;  %v1745_v57 = vmul.f32 0.0078125, %v1664_v3  ;;  %v1744_v2 = vmul.f32 0.0078125, %v1662_v60 }
 0x39c   : > { %2788 = vrsqrt.f32 %v2085_v63 }
 0x39d   : > { %v2783_v26 = vpop.eup %2782  ;;  %v4187_v9 = vsub.f32 %v3889_v48, %v1745_v57  ;;  %v4190_v32 = vsub.f32 %v3892_v0, %v1744_v2 }
 0x39e   : > { %v2785_v22 = vpop.eup %2784  ;;  %v2208_v20 = vmul.f32 %v2783_v26, %v3856_v23  ;;  %v1906_v41 = vpop.xlane.xlu1 %1905 }
 0x39f   : > { %v1908_v43 = vpop.xlane.xlu0 %1907  ;;  %v2209_v42 = vmul.f32 %v2785_v22, %v3860_v13  ;;  %v2023_v46 = vmul.f32 0.0078125, %v1906_v41  ;;  %v1871_v48 = vmul.f32 %v4187_v9, %v4187_v9  ;;  %v1870_v23 = vmul.f32 %v4190_v32, %v4190_v32 }
 0x3a0   : > { %v2024_v17 = vmul.f32 0.0078125, %v1908_v43  ;;  %v2278_v0 = vmul.f32 %v4184_v19, %v2208_v20 }
 0x3a1   : > { %v2279_v31 = vmul.f32 %v4184_v19, %v2209_v42  ;;  %v2086_v63 = vadd.f32 1e-05, %v2023_v46  ;;  %1979 = vadd.xlane.f32.xlu0 %v1871_v48  ;;  %1977 = vadd.xlane.f32.xlu1 %v1870_v23 }
 0x3a2   : > { %v2087_v3 = vadd.f32 1e-05, %v2024_v17  ;;  %v2348_v60 = vadd.f32 %v4196_v45, %v2278_v0  ;;  %v1890_v13 = vpop.xlane.xlu1 %1889 }
 0x3a3   : > { %v1666_v57 = vpop.xlane.xlu0 %1665  ;;  %v2349_v2 = vadd.f32 %v4196_v45, %v2279_v31  ;;  %2790 = vrsqrt.f32 %v2086_v63  ;;  %v2015_v26 = vmul.f32 0.0078125, %v1890_v13 }
 0x3a4   : > { %v1746_v22 = vmul.f32 0.0078125, %v1666_v57  ;;  %2411 = vst [vmem:[%s4209_s16 + $0x20] sm:$0xff] %v2348_v60  ;;  %2792 = vrsqrt.f32 %v2087_v3 }
 0x3a5   : > { %v2787_v20 = vpop.eup %2786  ;;  %2412 = vst [vmem:[%s4209_s16 + $0x28] sm:$0xff] %v2349_v2  ;;  %v2078_v41 = vadd.f32 1e-05, %v2015_v26 }
 0x3a6   : > { %v4214_v43 = vsub.f32 %v3912_v44, %v1746_v22  ;;  %v2789_v42 = vpop.eup %2788  ;;  %v2210_v46 = vmul.f32 %v2787_v20, %v3875_v4  ;;  %v1668_v17 = vpop.xlane.xlu1 %1667 }
 0x3a7   : > { %v1892_v48 = vpop.xlane.xlu0 %1891  ;;  %v2211_v0 = vmul.f32 %v2789_v42, %v3880_v6  ;;  %2794 = vrsqrt.f32 %v2078_v41  ;;  %v1747_v23 = vmul.f32 0.0078125, %v1668_v17 }
 0x3a8   : > { %v2016_v31 = vmul.f32 0.0078125, %v1892_v48  ;;  %v2280_v63 = vmul.f32 %v4184_v19, %v2210_v46  ;;  %v1872_v3 = vmul.f32 %v4214_v43, %v4214_v43 }
 0x3a9   : > { %v2281_v44 = vmul.f32 %v4184_v19, %v2211_v0  ;;  %v4223_v60 = vsub.f32 %v3921_v12, %v1747_v23 }
 0x3aa   : > { %v2079_v4 = vadd.f32 1e-05, %v2016_v31  ;;  %v2350_v13 = vadd.f32 %v4196_v45, %v2280_v63  ;;  %1981 = vadd.xlane.f32.xlu1 %v1872_v3  ;;  %v1910_v6 = vpop.xlane.xlu1 %1909 }
 0x3ab   : > { %v1912_v57 = vpop.xlane.xlu0 %1911  ;;  %v2351_v2 = vadd.f32 %v4196_v45, %v2281_v44  ;;  %v2025_v26 = vmul.f32 0.0078125, %v1910_v6  ;;  %v1873_v20 = vmul.f32 %v4223_v60, %v4223_v60 }
 0x3ac   : > { %2796 = vrsqrt.f32 %v2079_v4  ;;  %v2026_v22 = vmul.f32 0.0078125, %v1912_v57  ;;  %2413 = vst [vmem:[%s4209_s16 + $0x30] sm:$0xff] %v2350_v13 }
 0x3ad   : > { %v2791_v41 = vpop.eup %2790  ;;  %2414 = vst [vmem:[%s4209_s16 + $0x38] sm:$0xff] %v2351_v2  ;;  %v2088_v42 = vadd.f32 1e-05, %v2025_v26  ;;  %1983 = vadd.xlane.f32.xlu0 %v1873_v20 }
 0x3ae   : > { %v2089_v12 = vadd.f32 1e-05, %v2026_v22  ;;  %v2793_v46 = vpop.eup %2792  ;;  %v2212_v17 = vmul.f32 %v2791_v41, %v3895_v53  ;;  %v1894_v48 = vpop.xlane.xlu1 %1893 }
 0x3af   : > { %v1670_v0 = vpop.xlane.xlu0 %1669  ;;  %v2213_v23 = vmul.f32 %v2793_v46, %v3900_v16  ;;  %2798 = vrsqrt.f32 %v2088_v42  ;;  %v2017_v31 = vmul.f32 0.0078125, %v1894_v48 }
 0x3b0   : > { %v1748_v63 = vmul.f32 0.0078125, %v1670_v0  ;;  %v2282_v3 = vmul.f32 %v4184_v19, %v2212_v17  ;;  %2800 = vrsqrt.f32 %v2089_v12 }
 0x3b1   : > { %v2795_v44 = vpop.eup %2794  ;;  %v2283_v4 = vmul.f32 %v4184_v19, %v2213_v23  ;;  %v2080_v13 = vadd.f32 1e-05, %v2017_v31 }
 0x3b2   : > { %v4236_v6 = vsub.f32 %v3944_v51, %v1748_v63  ;;  %v2352_v53 = vadd.f32 %v4196_v45, %v2282_v3  ;;  %v2204_v57 = vmul.f32 %v2795_v44, %v3908_v36  ;;  %v1672_v16 = vpop.xlane.xlu1 %1671 }
 0x3b3   : > { %v1896_v2 = vpop.xlane.xlu0 %1895  ;;  %v2353_v26 = vadd.f32 %v4196_v45, %v2283_v4  ;;  %2802 = vrsqrt.f32 %v2080_v13  ;;  %v1749_v22 = vmul.f32 0.0078125, %v1672_v16 }
 0x3b4   : > { %v2018_v20 = vmul.f32 0.0078125, %v1896_v2  ;;  %2415 = vst [vmem:[%s4209_s16 + $0x40] sm:$0xff] %v2352_v53  ;;  %v2274_v41 = vmul.f32 %v4184_v19, %v2204_v57  ;;  %v1874_v42 = vmul.f32 %v4236_v6, %v4236_v6  ;;  %v4677_v53 = vld [vmem:[#allocation15_spill] sm:$0xff] }
 0x3b5   : > { %2416 = vst [vmem:[%s4209_s16 + $0x48] sm:$0xff] %v2353_v26  ;;  %v4247_v12 = vsub.f32 %v3956_v34, %v1749_v22  ;;  %v4678_v26 = vld [vmem:[#allocation16_spill] sm:$0xff] }
 0x3b6   : > { %v2797_v51 = vpop.eup %2796  ;;  %v2081_v36 = vadd.f32 1e-05, %v2018_v20  ;;  %v2344_v46 = vadd.f32 %v4196_v45, %v2274_v41  ;;  %1985 = vadd.xlane.f32.xlu1 %v1874_v42  ;;  %v1914_v48 = vpop.xlane.xlu1 %1913 }
 0x3b7   : > { %v2205_v17 = vmul.f32 %v2797_v51, %v3917_v55  ;;  %v1916_v0 = vpop.xlane.xlu0 %1915  ;;  %v2027_v23 = vmul.f32 0.0078125, %v1914_v48  ;;  %v1875_v63 = vmul.f32 %v4247_v12, %v4247_v12 }
 0x3b8   : > { %2804 = vrsqrt.f32 %v2081_v36  ;;  %v2028_v31 = vmul.f32 0.0078125, %v1916_v0  ;;  %2407 = vst [vmem:[%s4209_s16] sm:$0xff] %v2344_v46  ;;  %v4679_v0 = vld [vmem:[#allocation17_spill] sm:$0xff] }
 0x3b9   : > { %v2275_v3 = vmul.f32 %v4184_v19, %v2205_v17  ;;  %v2799_v34 = vpop.eup %2798  ;;  %v2090_v44 = vadd.f32 1e-05, %v2027_v23  ;;  %1987 = vadd.xlane.f32.xlu0 %v1875_v63 }
 0x3ba   : > { %v2091_v4 = vadd.f32 1e-05, %v2028_v31  ;;  %v2801_v13 = vpop.eup %2800  ;;  %v2214_v57 = vmul.f32 %v2799_v34, %v4677_v53  ;;  %v1676_v16 = vpop.xlane.xlu1 %1675 }
 0x3bb   : > { %v2345_v55 = vadd.f32 %v4196_v45, %v2275_v3  ;;  %v1674_v2 = vpop.xlane.xlu0 %1673  ;;  %v2215_v22 = vmul.f32 %v2801_v13, %v4678_v26  ;;  %2806 = vrsqrt.f32 %v2090_v44  ;;  %v1751_v20 = vmul.f32 0.0078125, %v1676_v16  ;;  %v4680_v16 = vld [vmem:[#allocation18_spill] sm:$0xff] }
 0x3bc   : > { %v1750_v41 = vmul.f32 0.0078125, %v1674_v2  ;;  %v2284_v42 = vmul.f32 %v4184_v19, %v2214_v57  ;;  %2808 = vrsqrt.f32 %v2091_v4 }
 0x3bd   : > { %2408 = vst [vmem:[%s4209_s16 + $0x8] sm:$0xff] %v2345_v55  ;;  %v2803_v51 = vpop.eup %2802  ;;  %v2285_v36 = vmul.f32 %v4184_v19, %v2215_v22  ;;  %v4262_v46 = vsub.f32 %v3975_v21, %v1751_v20 }
 0x3be   : > { %v4265_v17 = vsub.f32 %v3972_v58, %v1750_v41  ;;  %v2354_v48 = vadd.f32 %v4196_v45, %v2284_v42  ;;  %v2206_v23 = vmul.f32 %v2803_v51, %v4679_v0  ;;  %v1918_v31 = vpop.xlane.xlu1 %1917 }
 0x3bf   : > { %v1920_v63 = vpop.xlane.xlu0 %1919  ;;  %v2355_v3 = vadd.f32 %v4196_v45, %v2285_v36  ;;  %v2029_v34 = vmul.f32 0.0078125, %v1918_v31  ;;  %v1877_v4 = vmul.f32 %v4262_v46, %v4262_v46  ;;  %v4681_v31 = vld [vmem:[#allocation19_spill] sm:$0xff] }
 0x3c0   : > { %v2030_v44 = vmul.f32 0.0078125, %v1920_v63  ;;  %2417 = vst [vmem:[%s4209_s16 + $0x50] sm:$0xff] %v2354_v48  ;;  %v2276_v21 = vmul.f32 %v4184_v19, %v2206_v23  ;;  %v1876_v58 = vmul.f32 %v4265_v17, %v4265_v17 }
 0x3c1   : > { %2418 = vst [vmem:[%s4209_s16 + $0x58] sm:$0xff] %v2355_v3  ;;  %v2092_v55 = vadd.f32 1e-05, %v2029_v34  ;;  %1991 = vadd.xlane.f32.xlu0 %v1877_v4 }
 0x3c2   : > { %v2805_v13 = vpop.eup %2804  ;;  %v2093_v53 = vadd.f32 1e-05, %v2030_v44  ;;  %v2346_v57 = vadd.f32 %v4196_v45, %v2276_v21  ;;  %1989 = vadd.xlane.f32.xlu1 %v1876_v58  ;;  %v1680_v26 = vpop.xlane.xlu1 %1679  ;;  %v4682_v44 = vld [vmem:[#allocation20_spill] sm:$0xff] }
 0x3c3   : > { %v2207_v2 = vmul.f32 %v2805_v13, %v4680_v16  ;;  %v1678_v22 = vpop.xlane.xlu0 %1677  ;;  %2810 = vrsqrt.f32 %v2092_v55  ;;  %v1753_v20 = vmul.f32 0.0078125, %v1680_v26 }
 0x3c4   : > { %v1752_v41 = vmul.f32 0.0078125, %v1678_v22  ;;  %2409 = vst [vmem:[%s4209_s16 + $0x10] sm:$0xff] %v2346_v57  ;;  %2812 = vrsqrt.f32 %v2093_v53 }
 0x3c5   : > { %v2277_v42 = vmul.f32 %v4184_v19, %v2207_v2  ;;  %v2807_v51 = vpop.eup %2806  ;;  %v4282_v36 = vsub.f32 %v3995_v11, %v1753_v20 }
 0x3c6   : > { %v4285_v48 = vsub.f32 %v3992_v38, %v1752_v41  ;;  %v2809_v0 = vpop.eup %2808  ;;  %v2216_v63 = vmul.f32 %v2807_v51, %v4681_v31  ;;  %v1922_v3 = vpop.xlane.xlu1 %1921 }
 0x3c7   : > { %v2347_v23 = vadd.f32 %v4196_v45, %v2277_v42  ;;  %v1924_v34 = vpop.xlane.xlu0 %1923  ;;  %v2217_v4 = vmul.f32 %v2809_v0, %v4682_v44  ;;  %v2031_v21 = vmul.f32 0.0078125, %v1922_v3  ;;  %v1879_v13 = vmul.f32 %v4282_v36, %v4282_v36  ;;  %v4683_v0 = vld [vmem:[#allocation26_spill] sm:$0xff] }
 0x3c8   : > { %v2032_v58 = vmul.f32 0.0078125, %v1924_v34  ;;  %v2286_v11 = vmul.f32 %v4184_v19, %v2216_v63  ;;  %v1878_v38 = vmul.f32 %v4285_v48, %v4285_v48  ;;  %v4684_v63 = vld [vmem:[#allocation21_spill] sm:$0xff] }
 0x3c9   : > { %2410 = vst [vmem:[%s4209_s16 + $0x18] sm:$0xff] %v2347_v23  ;;  %v2287_v55 = vmul.f32 %v4184_v19, %v2217_v4  ;;  %v2094_v53 = vadd.f32 1e-05, %v2031_v21  ;;  %1995 = vadd.xlane.f32.xlu0 %v1879_v13  ;;  %v4685_v4 = vld [vmem:[#allocation22_spill] sm:$0xff] }
 0x3ca   : > { %v2095_v57 = vadd.f32 1e-05, %v2032_v58  ;;  %v2356_v16 = vadd.f32 %v4196_v45, %v2286_v11  ;;  %1993 = vadd.xlane.f32.xlu1 %v1878_v38  ;;  %v1684_v2 = vpop.xlane.xlu1 %1683 }
 0x3cb   : > { %v1682_v26 = vpop.xlane.xlu0 %1681  ;;  %v2357_v22 = vadd.f32 %v4196_v45, %v2287_v55  ;;  %2814 = vrsqrt.f32 %v2094_v53  ;;  %v1755_v20 = vmul.f32 0.0078125, %v1684_v2 }
 0x3cc   : > { %v1754_v41 = vmul.f32 0.0078125, %v1682_v26  ;;  %2419 = vst [vmem:[%s4209_s16 + $0x60] sm:$0xff] %v2356_v16  ;;  %2816 = vrsqrt.f32 %v2095_v57 }
 0x3cd   : > { %v2811_v42 = vpop.eup %2810  ;;  %2420 = vst [vmem:[%s4209_s16 + $0x68] sm:$0xff] %v2357_v22  ;;  %v4302_v51 = vsub.f32 %v4015_v7, %v1755_v20 }
 0x3ce   : > { %v4305_v23 = vsub.f32 %v4683_v0, %v1754_v41  ;;  %v2813_v31 = vpop.eup %2812  ;;  %v2218_v3 = vmul.f32 %v2811_v42, %v4684_v63  ;;  %v1926_v34 = vpop.xlane.xlu1 %1925 }
 0x3cf   : > { %v1928_v44 = vpop.xlane.xlu0 %1927  ;;  %v2219_v21 = vmul.f32 %v2813_v31, %v4685_v4  ;;  %v2033_v58 = vmul.f32 0.0078125, %v1926_v34  ;;  %v1881_v11 = vmul.f32 %v4302_v51, %v4302_v51 }
 0x3d0   : > { %v2034_v13 = vmul.f32 0.0078125, %v1928_v44  ;;  %v2288_v38 = vmul.f32 %v4184_v19, %v2218_v3  ;;  %v1880_v7 = vmul.f32 %v4305_v23, %v4305_v23  ;;  %v4686_v3 = vld [vmem:[#allocation23_spill] sm:$0xff] }
 0x3d1   : > { %v2289_v55 = vmul.f32 %v4184_v19, %v2219_v21  ;;  %v2096_v53 = vadd.f32 1e-05, %v2033_v58  ;;  %1999 = vadd.xlane.f32.xlu0 %v1881_v11  ;;  %v4687_v21 = vld [vmem:[#allocation24_spill] sm:$0xff] }
 0x3d2   : > { %v2097_v57 = vadd.f32 1e-05, %v2034_v13  ;;  %v2358_v16 = vadd.f32 %v4196_v45, %v2288_v38  ;;  %1997 = vadd.xlane.f32.xlu1 %v1880_v7  ;;  %v1688_v2 = vpop.xlane.xlu1 %1687 }
 0x3d3   : > { %v1686_v26 = vpop.xlane.xlu0 %1685  ;;  %v2359_v22 = vadd.f32 %v4196_v45, %v2289_v55  ;;  %2818 = vrsqrt.f32 %v2096_v53  ;;  %v1757_v20 = vmul.f32 0.0078125, %v1688_v2 }
 0x3d4   : > { %v1756_v41 = vmul.f32 0.0078125, %v1686_v26  ;;  %2421 = vst [vmem:[%s4209_s16 + $0x70] sm:$0xff] %v2358_v16  ;;  %2820 = vrsqrt.f32 %v2097_v57 }
 0x3d5   : > { %v2815_v42 = vpop.eup %2814  ;;  %2422 = vst [vmem:[%s4209_s16 + $0x78] sm:$0xff] %v2359_v22  ;;  %v4320_v0 = vsub.f32 %v4032_v49, %v1757_v20 }
 0x3d6   : > { %v4323_v31 = vsub.f32 %v4029_v33, %v1756_v41  ;;  %v2817_v63 = vpop.eup %2816  ;;  %v2220_v34 = vmul.f32 %v2815_v42, %v4686_v3  ;;  %v1930_v44 = vpop.xlane.xlu1 %1929 }
 0x3d7   : > { %v1932_v4 = vpop.xlane.xlu0 %1931  ;;  %v2221_v58 = vmul.f32 %v2817_v63, %v4687_v21  ;;  %v2035_v13 = vmul.f32 0.0078125, %v1930_v44  ;;  %v1883_v38 = vmul.f32 %v4320_v0, %v4320_v0  ;;  %v4688_v63 = vld [vmem:[#allocation31_spill] sm:$0xff]  ;;  %v4689_v44 = vld [vmem:[#allocation25_spill] sm:$0xff] }
 0x3d8   : > { %v2036_v11 = vmul.f32 0.0078125, %v1932_v4  ;;  %v2290_v7 = vmul.f32 %v4184_v19, %v2220_v34  ;;  %v1882_v49 = vmul.f32 %v4323_v31, %v4323_v31 }
 0x3d9   : > { %v2291_v33 = vmul.f32 %v4184_v19, %v2221_v58  ;;  %v2098_v55 = vadd.f32 1e-05, %v2035_v13  ;;  %2003 = vadd.xlane.f32.xlu0 %v1883_v38  ;;  %v4690_v13 = vld [vmem:[#allocation27_spill] sm:$0xff] }
 0x3da   : > { %v2099_v53 = vadd.f32 1e-05, %v2036_v11  ;;  %v2360_v57 = vadd.f32 %v4196_v45, %v2290_v7  ;;  %2001 = vadd.xlane.f32.xlu1 %v1882_v49  ;;  %v1692_v16 = vpop.xlane.xlu1 %1691 }
 0x3db   : > { %v1690_v2 = vpop.xlane.xlu0 %1689  ;;  %v2361_v26 = vadd.f32 %v4196_v45, %v2291_v33  ;;  %2822 = vrsqrt.f32 %v2098_v55  ;;  %v1759_v22 = vmul.f32 0.0078125, %v1692_v16 }
 0x3dc   : > { %v1758_v20 = vmul.f32 0.0078125, %v1690_v2  ;;  %2423 = vst [vmem:[%s4209_s16 + $0x80] sm:$0xff] %v2360_v57  ;;  %2824 = vrsqrt.f32 %v2099_v53 }
 0x3dd   : > { %v2819_v41 = vpop.eup %2818  ;;  %2424 = vst [vmem:[%s4209_s16 + $0x88] sm:$0xff] %v2361_v26  ;;  %v4338_v42 = vsub.f32 %v4056_v5, %v1759_v22 }
 0x3de   : > { %v4341_v3 = vsub.f32 %v4688_v63, %v1758_v20  ;;  %v2821_v34 = vpop.eup %2820  ;;  %v2222_v4 = vmul.f32 %v2819_v41, %v4689_v44  ;;  %v1934_v21 = vpop.xlane.xlu1 %1933 }
 0x3df   : > { %v1694_v58 = vpop.xlane.xlu0 %1693  ;;  %v2223_v11 = vmul.f32 %v2821_v34, %v4690_v13  ;;  %v2037_v38 = vmul.f32 0.0078125, %v1934_v21  ;;  %v1885_v49 = vmul.f32 %v4338_v42, %v4338_v42  ;;  %v4691_v21 = vld [vmem:[#allocation29_spill] sm:$0xff] }
 0x3e0   : > { %v1760_v7 = vmul.f32 0.0078125, %v1694_v58  ;;  %v2292_v33 = vmul.f32 %v4184_v19, %v2222_v4  ;;  %v1884_v5 = vmul.f32 %v4341_v3, %v4341_v3 }
 0x3e1   : > { %v2293_v55 = vmul.f32 %v4184_v19, %v2223_v11  ;;  %v2100_v53 = vadd.f32 1e-05, %v2037_v38  ;;  %2007 = vadd.xlane.f32.xlu0 %v1885_v49  ;;  %v4692_v38 = vld [vmem:[#allocation28_spill] sm:$0xff] }
 0x3e2   : > { %v4352_v57 = vsub.f32 %v4065_v56, %v1760_v7  ;;  %v2362_v16 = vadd.f32 %v4196_v45, %v2292_v33  ;;  %2005 = vadd.xlane.f32.xlu1 %v1884_v5  ;;  %v1696_v2 = vpop.xlane.xlu1 %1695 }
 0x3e3   : > { %v1698_v26 = vpop.xlane.xlu0 %1697  ;;  %v2363_v22 = vadd.f32 %v4196_v45, %v2293_v55  ;;  %2826 = vrsqrt.f32 %v2100_v53  ;;  %v1761_v20 = vmul.f32 0.0078125, %v1696_v2 }
 0x3e4   : > { %v1762_v41 = vmul.f32 0.0078125, %v1698_v26  ;;  %2425 = vst [vmem:[%s4209_s16 + $0x90] sm:$0xff] %v2362_v16  ;;  %v1886_v63 = vmul.f32 %v4352_v57, %v4352_v57 }
 0x3e5   : > { %v2823_v34 = vpop.eup %2822  ;;  %2426 = vst [vmem:[%s4209_s16 + $0x98] sm:$0xff] %v2363_v22  ;;  %v4361_v56 = vsub.f32 %v4075_v52, %v1761_v20 }
 0x3e6   : > { %v4364_v44 = vsub.f32 %v4072_v40, %v1762_v41  ;;  %v2825_v4 = vpop.eup %2824  ;;  %v2224_v58 = vmul.f32 %v2823_v34, %v4691_v21  ;;  %2009 = vadd.xlane.f32.xlu1 %v1886_v63  ;;  %v1938_v13 = vpop.xlane.xlu1 %1937 }
 0x3e7   : > { %v1936_v11 = vpop.xlane.xlu0 %1935  ;;  %v2225_v7 = vmul.f32 %v2825_v4, %v4692_v38  ;;  %v2039_v49 = vmul.f32 0.0078125, %v1938_v13  ;;  %v1887_v5 = vmul.f32 %v4361_v56, %v4361_v56 }
 0x3e8   : > { %v2038_v33 = vmul.f32 0.0078125, %v1936_v11  ;;  %v2294_v52 = vmul.f32 %v4184_v19, %v2224_v58  ;;  %v1888_v40 = vmul.f32 %v4364_v44, %v4364_v44  ;;  %v4693_v58 = vld [vmem:[#allocation30_spill] sm:$0xff] }
 0x3e9   : > { %v2295_v55 = vmul.f32 %v4184_v19, %v2225_v7  ;;  %v2102_v53 = vadd.f32 1e-05, %v2039_v49  ;;  %2011 = vadd.xlane.f32.xlu0 %v1887_v5 }
 0x3ea   : > { %v2101_v16 = vadd.f32 1e-05, %v2038_v33  ;;  %v2364_v2 = vadd.f32 %v4196_v45, %v2294_v52  ;;  %2013 = vadd.xlane.f32.xlu1 %v1888_v40  ;;  %v1942_v26 = vpop.xlane.xlu1 %1941 }
 0x3eb   : > { %v1940_v22 = vpop.xlane.xlu0 %1939  ;;  %v2365_v20 = vadd.f32 %v4196_v45, %v2295_v55  ;;  %2828 = vrsqrt.f32 %v2102_v53  ;;  %v2041_v41 = vmul.f32 0.0078125, %v1942_v26 }
 0x3ec   : > { %v2040_v63 = vmul.f32 0.0078125, %v1940_v22  ;;  %2427 = vst [vmem:[%s4209_s16 + $0xa0] sm:$0xff] %v2364_v2  ;;  %2830 = vrsqrt.f32 %v2101_v16 }
 0x3ed   : > { %v2827_v34 = vpop.eup %2826  ;;  %2428 = vst [vmem:[%s4209_s16 + $0xa8] sm:$0xff] %v2365_v20  ;;  %v2104_v4 = vadd.f32 1e-05, %v2041_v41 }
 0x3ee   : > { %v2103_v21 = vadd.f32 1e-05, %v2040_v63  ;;  %v2226_v13 = vmul.f32 %v2827_v34, %v4693_v58  ;;  %v1946_v11 = vpop.xlane.xlu1 %1945 }
 0x3ef   : > { %v1944_v38 = vpop.xlane.xlu0 %1943  ;;  %2832 = vrsqrt.f32 %v2104_v4  ;;  %v2043_v7 = vmul.f32 0.0078125, %v1946_v11 }
 0x3f0   : > { %v2042_v49 = vmul.f32 0.0078125, %v1944_v38  ;;  %v2296_v33 = vmul.f32 %v4184_v19, %v2226_v13  ;;  %2834 = vrsqrt.f32 %v2103_v21 }
 0x3f1   : > { %v2106_v5 = vadd.f32 1e-05, %v2043_v7 }
 0x3f2   : > { %v2105_v52 = vadd.f32 1e-05, %v2042_v49  ;;  %v2366_v40 = vadd.f32 %v4196_v45, %v2296_v33 }
 0x3f3   : > { %v1948_v55 = vpop.xlane.xlu0 %1947  ;;  %2836 = vrsqrt.f32 %v2106_v5 }
 0x3f4   : > { %v2044_v53 = vmul.f32 0.0078125, %v1948_v55  ;;  %2429 = vst [vmem:[%s4209_s16 + $0xb0] sm:$0xff] %v2366_v40  ;;  %2838 = vrsqrt.f32 %v2105_v52  ;;  %v1950_v16 = vpop.xlane.xlu1 %1949 }
 0x3f5   : > { %v2829_v2 = vpop.eup %2828  ;;  %v2045_v22 = vmul.f32 0.0078125, %v1950_v16 }
 0x3f6   : > { %v2107_v26 = vadd.f32 1e-05, %v2044_v53  ;;  %v2831_v20 = vpop.eup %2830  ;;  %v2228_v41 = vmul.f32 %v2829_v2, %v4078_v50 }
 0x3f7   : > { %v1952_v63 = vpop.xlane.xlu0 %1951  ;;  %v2227_v34 = vmul.f32 %v2831_v20, %v4069_v1  ;;  %v2108_v4 = vadd.f32 1e-05, %v2045_v22 }
 0x3f8   : > { %2840 = vrsqrt.f32 %v2107_v26  ;;  %v2046_v21 = vmul.f32 0.0078125, %v1952_v63  ;;  %v2298_v58 = vmul.f32 %v4184_v19, %v2228_v41 }
 0x3f9   : > { %v2833_v13 = vpop.eup %2832  ;;  %v2297_v11 = vmul.f32 %v4184_v19, %v2227_v34  ;;  %2842 = vrsqrt.f32 %v2108_v4 }
 0x3fa   : > { %v2109_v38 = vadd.f32 1e-05, %v2046_v21  ;;  %v2835_v7 = vpop.eup %2834  ;;  %v2368_v49 = vadd.f32 %v4196_v45, %v2298_v58  ;;  %v2230_v50 = vmul.f32 %v2833_v13, %v4090_v39 }
 0x3fb   : > { %v2367_v33 = vadd.f32 %v4196_v45, %v2297_v11  ;;  %v2229_v1 = vmul.f32 %v2835_v7, %v4083_v37 }
 0x3fc   : > { %2844 = vrsqrt.f32 %v2109_v38  ;;  %2431 = vst [vmem:[%s4209_s16 + $0xc0] sm:$0xff] %v2368_v49  ;;  %v2300_v5 = vmul.f32 %v4184_v19, %v2230_v50  ;;  %v1954_v52 = vpop.xlane.xlu1 %1953 }
 0x3fd   : > { %v2837_v40 = vpop.eup %2836  ;;  %2430 = vst [vmem:[%s4209_s16 + $0xb8] sm:$0xff] %v2367_v33  ;;  %v2299_v55 = vmul.f32 %v4184_v19, %v2229_v1  ;;  %v2047_v53 = vmul.f32 0.0078125, %v1954_v52 }
 0x3fe   : > { %v2839_v16 = vpop.eup %2838  ;;  %v2370_v2 = vadd.f32 %v4196_v45, %v2300_v5  ;;  %v2232_v39 = vmul.f32 %v2837_v40, %v4095_v30  ;;  %v1956_v26 = vpop.xlane.xlu0 %1955 }
 0x3ff   : > { %v2369_v37 = vadd.f32 %v4196_v45, %v2299_v55  ;;  %v2231_v22 = vmul.f32 %v2839_v16, %v4100_v25  ;;  %v2110_v20 = vadd.f32 1e-05, %v2047_v53  ;;  %v2048_v41 = vmul.f32 0.0078125, %v1956_v26 }
 0x400   : > { %2433 = vst [vmem:[%s4209_s16 + $0xd0] sm:$0xff] %v2370_v2  ;;  %v2302_v63 = vmul.f32 %v4184_v19, %v2232_v39 }
 0x401   : > { %2432 = vst [vmem:[%s4209_s16 + $0xc8] sm:$0xff] %v2369_v37  ;;  %v2301_v4 = vmul.f32 %v4184_v19, %v2231_v22  ;;  %2846 = vrsqrt.f32 %v2110_v20  ;;  %v2111_v21 = vadd.f32 1e-05, %v2048_v41 }
 0x402   : > { %v2841_v34 = vpop.eup %2840  ;;  %v2372_v30 = vadd.f32 %v4196_v45, %v2302_v63 }
 0x403   : > { %v2233_v58 = vmul.f32 %v2841_v34, %v4103_v29  ;;  %v2843_v13 = vpop.eup %2842  ;;  %v2371_v25 = vadd.f32 %v4196_v45, %v2301_v4  ;;  %2848 = vrsqrt.f32 %v2111_v21 }
 0x404   : > { %2435 = vst [vmem:[%s4209_s16 + $0xe0] sm:$0xff] %v2372_v30  ;;  %v2234_v38 = vmul.f32 %v2843_v13, %v4110_v47  ;;  %v1958_v7 = vpop.xlane.xlu1 %1957 }
 0x405   : > { %v2303_v11 = vmul.f32 %v4184_v19, %v2233_v58  ;;  %2434 = vst [vmem:[%s4209_s16 + $0xd8] sm:$0xff] %v2371_v25  ;;  %v2049_v50 = vmul.f32 0.0078125, %v1958_v7 }
 0x406   : > { %v2845_v49 = vpop.eup %2844  ;;  %v2304_v29 = vmul.f32 %v4184_v19, %v2234_v38  ;;  %v1960_v5 = vpop.xlane.xlu0 %1959 }
 0x407   : > { %v2373_v33 = vadd.f32 %v4196_v45, %v2303_v11  ;;  %v2235_v1 = vmul.f32 %v2845_v49, %v4115_v10  ;;  %v2112_v52 = vadd.f32 1e-05, %v2049_v50  ;;  %v2050_v40 = vmul.f32 0.0078125, %v1960_v5 }
 0x408   : > { %v2374_v55 = vadd.f32 %v4196_v45, %v2304_v29 }
 0x409   : > { %2436 = vst [vmem:[%s4209_s16 + $0xe8] sm:$0xff] %v2373_v33  ;;  %v2305_v47 = vmul.f32 %v4184_v19, %v2235_v1  ;;  %2850 = vrsqrt.f32 %v2112_v52  ;;  %v2113_v53 = vadd.f32 1e-05, %v2050_v40 }
 0x40a   : > { %2437 = vst [vmem:[%s4209_s16 + $0xf0] sm:$0xff] %v2374_v55 }
 0x40b   : > { %v2375_v16 = vadd.f32 %v4196_v45, %v2305_v47  ;;  %v2847_v2 = vpop.eup %2846  ;;  %2852 = vrsqrt.f32 %v2113_v53 }
 0x40c   : > { %v2236_v39 = vmul.f32 %v2847_v2, %v4122_v27  ;;  %v1962_v10 = vpop.xlane.xlu1 %1961 }
 0x40d   : > { %2438 = vst [vmem:[%s4209_s16 + $0xf8] sm:$0xff] %v2375_v16  ;;  %v2849_v26 = vpop.eup %2848  ;;  %v2051_v37 = vmul.f32 0.0078125, %v1962_v10 }
 0x40e   : > { %v2306_v22 = vmul.f32 %v4184_v19, %v2236_v39  ;;  %v2237_v20 = vmul.f32 %v2849_v26, %v4125_v28  ;;  %v1964_v41 = vpop.xlane.xlu0 %1963 }
 0x40f   : > { %v2114_v63 = vadd.f32 1e-05, %v2051_v37  ;;  %v2052_v34 = vmul.f32 0.0078125, %v1964_v41 }
 0x410   : > { %v2376_v4 = vadd.f32 %v4196_v45, %v2306_v22  ;;  %v2307_v21 = vmul.f32 %v4184_v19, %v2237_v20 }
 0x411   : > { %2854 = vrsqrt.f32 %v2114_v63  ;;  %v2115_v30 = vadd.f32 1e-05, %v2052_v34 }
 0x412   : > { %2439 = vst [vmem:[%s4209_s16 + $0x100] sm:$0xff] %v2376_v4  ;;  %v2377_v27 = vadd.f32 %v4196_v45, %v2307_v21 }
 0x413   : > { %v2851_v58 = vpop.eup %2850  ;;  %2856 = vrsqrt.f32 %v2115_v30 }
 0x414   : > { %2440 = vst [vmem:[%s4209_s16 + $0x108] sm:$0xff] %v2377_v27  ;;  %v2238_v13 = vmul.f32 %v2851_v58, %v4132_v8  ;;  %v1966_v25 = vpop.xlane.xlu1 %1965 }
 0x415   : > { %v2853_v28 = vpop.eup %2852  ;;  %v2053_v11 = vmul.f32 0.0078125, %v1966_v25 }
 0x416   : > { %v2308_v38 = vmul.f32 %v4184_v19, %v2238_v13  ;;  %v2239_v7 = vmul.f32 %v2853_v28, %v4135_v18  ;;  %v1968_v49 = vpop.xlane.xlu0 %1967 }
 0x417   : > { %v2116_v50 = vadd.f32 1e-05, %v2053_v11  ;;  %v2054_v33 = vmul.f32 0.0078125, %v1968_v49 }
 0x418   : > { %v2378_v29 = vadd.f32 %v4196_v45, %v2308_v38  ;;  %v2309_v1 = vmul.f32 %v4184_v19, %v2239_v7 }
 0x419   : > { %2858 = vrsqrt.f32 %v2116_v50  ;;  %v2117_v5 = vadd.f32 1e-05, %v2054_v33 }
 0x41a   : > { %2441 = vst [vmem:[%s4209_s16 + $0x110] sm:$0xff] %v2378_v29  ;;  %v2379_v8 = vadd.f32 %v4196_v45, %v2309_v1 }
 0x41b   : > { %v2855_v52 = vpop.eup %2854  ;;  %2860 = vrsqrt.f32 %v2117_v5 }
 0x41c   : > { %2442 = vst [vmem:[%s4209_s16 + $0x118] sm:$0xff] %v2379_v8  ;;  %v2240_v40 = vmul.f32 %v2855_v52, %v4142_v15  ;;  %v1970_v55 = vpop.xlane.xlu1 %1969 }
 0x41d   : > { %v2857_v18 = vpop.eup %2856  ;;  %v2055_v47 = vmul.f32 0.0078125, %v1970_v55 }
 0x41e   : > { %v2310_v53 = vmul.f32 %v4184_v19, %v2240_v40  ;;  %v2241_v16 = vmul.f32 %v2857_v18, %v4145_v35  ;;  %v1972_v2 = vpop.xlane.xlu0 %1971 }
 0x41f   : > { %v2118_v39 = vadd.f32 1e-05, %v2055_v47  ;;  %v2056_v10 = vmul.f32 0.0078125, %v1972_v2 }
 0x420   : > { %v2380_v26 = vadd.f32 %v4196_v45, %v2310_v53  ;;  %v2311_v37 = vmul.f32 %v4184_v19, %v2241_v16 }
 0x421   : > { %2862 = vrsqrt.f32 %v2118_v39  ;;  %v2119_v22 = vadd.f32 1e-05, %v2056_v10 }
 0x422   : > { %2443 = vst [vmem:[%s4209_s16 + $0x120] sm:$0xff] %v2380_v26  ;;  %v2381_v15 = vadd.f32 %v4196_v45, %v2311_v37 }
 0x423   : > { %v2859_v20 = vpop.eup %2858  ;;  %2864 = vrsqrt.f32 %v2119_v22 }
 0x424   : > { %2444 = vst [vmem:[%s4209_s16 + $0x128] sm:$0xff] %v2381_v15  ;;  %v2242_v41 = vmul.f32 %v2859_v20, %v4152_v62 }
 0x425   : > { %v2861_v35 = vpop.eup %2860 }
 0x426   : > { %v2312_v63 = vmul.f32 %v4184_v19, %v2242_v41  ;;  %v2243_v34 = vmul.f32 %v2861_v35, %v4155_v14  ;;  %v1974_v4 = vpop.xlane.xlu1 %1973  ;;  %v1976_v21 = vpop.xlane.xlu0 %1975 }
 0x427   : > { %v2057_v30 = vmul.f32 0.0078125, %v1974_v4  ;;  %v2058_v27 = vmul.f32 0.0078125, %v1976_v21 }
 0x428   : > { %v2382_v58 = vadd.f32 %v4196_v45, %v2312_v63  ;;  %v2313_v13 = vmul.f32 %v4184_v19, %v2243_v34 }
 0x429   : > { %v2120_v25 = vadd.f32 1e-05, %v2057_v30  ;;  %v2121_v28 = vadd.f32 1e-05, %v2058_v27 }
 0x42a   : > { %2445 = vst [vmem:[%s4209_s16 + $0x130] sm:$0xff] %v2382_v58  ;;  %v2383_v11 = vadd.f32 %v4196_v45, %v2313_v13 }
 0x42b   : > { %v2863_v62 = vpop.eup %2862  ;;  %2866 = vrsqrt.f32 %v2120_v25 }
 0x42c   : > { %2446 = vst [vmem:[%s4209_s16 + $0x138] sm:$0xff] %v2383_v11  ;;  %v2244_v38 = vmul.f32 %v2863_v62, %v4162_v54  ;;  %2868 = vrsqrt.f32 %v2121_v28 }
 0x42d   : > { %v2865_v14 = vpop.eup %2864 }
 0x42e   : > { %v2314_v7 = vmul.f32 %v4184_v19, %v2244_v38  ;;  %v2245_v49 = vmul.f32 %v2865_v14, %v4165_v59  ;;  %v1980_v50 = vpop.xlane.xlu0 %1979  ;;  %v1978_v33 = vpop.xlane.xlu1 %1977 }
 0x42f   : > { %v2060_v29 = vmul.f32 0.0078125, %v1980_v50  ;;  %v2059_v8 = vmul.f32 0.0078125, %v1978_v33 }
 0x430   : > { %v2384_v1 = vadd.f32 %v4196_v45, %v2314_v7  ;;  %v2315_v5 = vmul.f32 %v4184_v19, %v2245_v49  ;;  %v4482_v7 = vld [vmem:[%s4620_s5] ss:$0 sm:$0xff] }
 0x431   : > { %v2123_v52 = vadd.f32 1e-05, %v2060_v29  ;;  %v2122_v54 = vadd.f32 1e-05, %v2059_v8 }
 0x432   : > { %2447 = vst [vmem:[%s4209_s16 + $0x140] sm:$0xff] %v2384_v1  ;;  %v2385_v40 = vadd.f32 %v4196_v45, %v2315_v5 }
 0x433   : > { %2870 = vrsqrt.f32 %v2123_v52 }
 0x434   : > { %2448 = vst [vmem:[%s4209_s16 + $0x148] sm:$0xff] %v2385_v40  ;;  %2872 = vrsqrt.f32 %v2122_v54 }
 0x435   : > { %v2867_v55 = vpop.eup %2866 }
 0x436   : > { %v2869_v59 = vpop.eup %2868  ;;  %v2246_v18 = vmul.f32 %v2867_v55, %v4175_v61 }
 0x437   : > { %v2247_v47 = vmul.f32 %v2869_v59, %v4172_v24  ;;  %v1982_v53 = vpop.xlane.xlu1 %1981 }
 0x438   : > { %v2316_v16 = vmul.f32 %v4184_v19, %v2246_v18  ;;  %v2061_v2 = vmul.f32 0.0078125, %v1982_v53 }
 0x439   : > { %v2317_v39 = vmul.f32 %v4184_v19, %v2247_v47 }
 0x43a   : > { %v2386_v10 = vadd.f32 %v4196_v45, %v2316_v16  ;;  %v2124_v26 = vadd.f32 1e-05, %v2061_v2  ;;  %v1984_v22 = vpop.xlane.xlu0 %1983 }
 0x43b   : > { %v2387_v37 = vadd.f32 %v4196_v45, %v2317_v39  ;;  %v2062_v15 = vmul.f32 0.0078125, %v1984_v22 }
 0x43c   : > { %2449 = vst [vmem:[%s4209_s16 + $0x150] sm:$0xff] %v2386_v10  ;;  %2874 = vrsqrt.f32 %v2124_v26 }
 0x43d   : > { %v2871_v61 = vpop.eup %2870  ;;  %2450 = vst [vmem:[%s4209_s16 + $0x158] sm:$0xff] %v2387_v37  ;;  %v2125_v41 = vadd.f32 1e-05, %v2062_v15 }
 0x43e   : > { %v2873_v24 = vpop.eup %2872  ;;  %v2249_v20 = vmul.f32 %v2871_v61, %v4187_v9 }
 0x43f   : > { %v2248_v35 = vmul.f32 %v2873_v24, %v4190_v32  ;;  %2876 = vrsqrt.f32 %v2125_v41 }
 0x440   : > { %v2319_v63 = vmul.f32 %v4184_v19, %v2249_v20 }
 0x441   : > { %v2318_v34 = vmul.f32 %v4184_v19, %v2248_v35 }
 0x442   : > { %v2389_v4 = vadd.f32 %v4196_v45, %v2319_v63 }
 0x443   : > { %v2388_v21 = vadd.f32 %v4196_v45, %v2318_v34  ;;  %v1986_v30 = vpop.xlane.xlu1 %1985 }
 0x444   : > { %2452 = vst [vmem:[%s4209_s16 + $0x168] sm:$0xff] %v2389_v4  ;;  %v2063_v27 = vmul.f32 0.0078125, %v1986_v30 }
 0x445   : > { %2451 = vst [vmem:[%s4209_s16 + $0x160] sm:$0xff] %v2388_v21 }
 0x446   : > { %v2875_v58 = vpop.eup %2874  ;;  %v2126_v13 = vadd.f32 1e-05, %v2063_v27  ;;  %v1988_v9 = vpop.xlane.xlu0 %1987 }
 0x447   : > { %v2250_v25 = vmul.f32 %v2875_v58, %v4214_v43  ;;  %v2064_v32 = vmul.f32 0.0078125, %v1988_v9 }
 0x448   : > { %2878 = vrsqrt.f32 %v2126_v13 }
 0x449   : > { %v2320_v28 = vmul.f32 %v4184_v19, %v2250_v25  ;;  %v2127_v11 = vadd.f32 1e-05, %v2064_v32  ;;  %v2877_v62 = vpop.eup %2876 }
 0x44a   : > { %v2251_v14 = vmul.f32 %v2877_v62, %v4223_v60 }
 0x44b   : > { %v2390_v38 = vadd.f32 %v4196_v45, %v2320_v28  ;;  %2880 = vrsqrt.f32 %v2127_v11 }
 0x44c   : > { %v2321_v43 = vmul.f32 %v4482_v7, %v2251_v14 }
 0x44d   : > { %2453 = vst [vmem:[%s4209_s16 + $0x170] sm:$0xff] %v2390_v38 }
 0x44e   : > { %v1992_v49 = vpop.xlane.xlu0 %1991  ;;  %v2391_v50 = vadd.f32 %v4196_v45, %v2321_v43  ;;  %v4493_v45 = vld [vmem:[%s4621_s6] ss:$0 sm:$0xff] }
 0x44f   : > { %v1990_v33 = vpop.xlane.xlu1 %1989  ;;  %v2066_v19 = vmul.f32 0.0078125, %v1992_v49 }
 0x450   : > { %v2065_v29 = vmul.f32 0.0078125, %v1990_v33  ;;  %2454 = vst [vmem:[%s4209_s16 + $0x178] sm:$0xff] %v2391_v50 }
 0x451   : > { %v2129_v1 = vadd.f32 1e-05, %v2066_v19 }
 0x452   : > { %v2879_v5 = vpop.eup %2878  ;;  %v2128_v60 = vadd.f32 1e-05, %v2065_v29 }
 0x453   : > { %v2252_v8 = vmul.f32 %v2879_v5, %v4236_v6  ;;  %2882 = vrsqrt.f32 %v2129_v1 }
 0x454   : > { %2884 = vrsqrt.f32 %v2128_v60 }
 0x455   : > { %v2881_v52 = vpop.eup %2880  ;;  %v2322_v40 = vmul.f32 %v4482_v7, %v2252_v8 }
 0x456   : > { %v2253_v54 = vmul.f32 %v2881_v52, %v4247_v12  ;;  %v1996_v55 = vpop.xlane.xlu0 %1995 }
 0x457   : > { %v2392_v59 = vadd.f32 %v4493_v45, %v2322_v40  ;;  %v1994_v18 = vpop.xlane.xlu1 %1993  ;;  %v2068_v47 = vmul.f32 0.0078125, %v1996_v55 }
 0x458   : > { %v2323_v6 = vmul.f32 %v4482_v7, %v2253_v54  ;;  %v2067_v53 = vmul.f32 0.0078125, %v1994_v18 }
 0x459   : > { %2455 = vst [vmem:[%s4209_s16 + $0x180] sm:$0xff] %v2392_v59  ;;  %v2131_v16 = vadd.f32 1e-05, %v2068_v47 }
 0x45a   : > { %v2393_v2 = vadd.f32 %v4493_v45, %v2323_v6  ;;  %v2130_v39 = vadd.f32 1e-05, %v2067_v53 }
 0x45b   : > { %2886 = vrsqrt.f32 %v2131_v16 }
 0x45c   : > { %2456 = vst [vmem:[%s4209_s16 + $0x188] sm:$0xff] %v2393_v2  ;;  %2888 = vrsqrt.f32 %v2130_v39 }
 0x45d   : > { %v2883_v12 = vpop.eup %2882 }
 0x45e   : > { %v2885_v10 = vpop.eup %2884  ;;  %v2255_v26 = vmul.f32 %v2883_v12, %v4262_v46  ;;  %v2000_v37 = vpop.xlane.xlu0 %1999 }
 0x45f   : > { %v2254_v22 = vmul.f32 %v2885_v10, %v4265_v17  ;;  %v1998_v15 = vpop.xlane.xlu1 %1997  ;;  %v2070_v61 = vmul.f32 0.0078125, %v2000_v37 }
 0x460   : > { %v2325_v24 = vmul.f32 %v4482_v7, %v2255_v26  ;;  %v2069_v20 = vmul.f32 0.0078125, %v1998_v15 }
 0x461   : > { %v2324_v41 = vmul.f32 %v4482_v7, %v2254_v22  ;;  %v2133_v35 = vadd.f32 1e-05, %v2070_v61 }
 0x462   : > { %v2395_v63 = vadd.f32 %v4493_v45, %v2325_v24  ;;  %v2132_v34 = vadd.f32 1e-05, %v2069_v20 }
 0x463   : > { %v2394_v4 = vadd.f32 %v4493_v45, %v2324_v41  ;;  %2890 = vrsqrt.f32 %v2133_v35 }
 0x464   : > { %2458 = vst [vmem:[%s4209_s16 + $0x198] sm:$0xff] %v2395_v63  ;;  %2892 = vrsqrt.f32 %v2132_v34 }
 0x465   : > { %v2887_v46 = vpop.eup %2886  ;;  %2457 = vst [vmem:[%s4209_s16 + $0x190] sm:$0xff] %v2394_v4 }
 0x466   : > { %v2889_v17 = vpop.eup %2888  ;;  %v2257_v21 = vmul.f32 %v2887_v46, %v4282_v36  ;;  %v2004_v30 = vpop.xlane.xlu0 %2003 }
 0x467   : > { %v2256_v27 = vmul.f32 %v2889_v17, %v4285_v48  ;;  %v2002_v58 = vpop.xlane.xlu1 %2001  ;;  %v2072_v13 = vmul.f32 0.0078125, %v2004_v30 }
 0x468   : > { %v2327_v9 = vmul.f32 %v4482_v7, %v2257_v21  ;;  %v2071_v25 = vmul.f32 0.0078125, %v2002_v58 }
 0x469   : > { %v2326_v32 = vmul.f32 %v4482_v7, %v2256_v27  ;;  %v2135_v28 = vadd.f32 1e-05, %v2072_v13 }
 0x46a   : > { %v2397_v11 = vadd.f32 %v4493_v45, %v2327_v9  ;;  %v2134_v62 = vadd.f32 1e-05, %v2071_v25 }
 0x46b   : > { %v2396_v38 = vadd.f32 %v4493_v45, %v2326_v32  ;;  %2894 = vrsqrt.f32 %v2135_v28 }
 0x46c   : > { %2460 = vst [vmem:[%s4209_s16 + $0x1a8] sm:$0xff] %v2397_v11  ;;  %2896 = vrsqrt.f32 %v2134_v62 }
 0x46d   : > { %v2891_v36 = vpop.eup %2890  ;;  %2459 = vst [vmem:[%s4209_s16 + $0x1a0] sm:$0xff] %v2396_v38 }
 0x46e   : > { %v2893_v48 = vpop.eup %2892  ;;  %v2259_v14 = vmul.f32 %v2891_v36, %v4302_v51  ;;  %v2008_v43 = vpop.xlane.xlu0 %2007 }
 0x46f   : > { %v2258_v49 = vmul.f32 %v2893_v48, %v4305_v23  ;;  %v2006_v50 = vpop.xlane.xlu1 %2005  ;;  %v2074_v33 = vmul.f32 0.0078125, %v2008_v43 }
 0x470   : > { %v2329_v19 = vmul.f32 %v4482_v7, %v2259_v14  ;;  %v2073_v29 = vmul.f32 0.0078125, %v2006_v50 }
 0x471   : > { %v2328_v1 = vmul.f32 %v4482_v7, %v2258_v49  ;;  %v2137_v5 = vadd.f32 1e-05, %v2074_v33 }
 0x472   : > { %v2399_v60 = vadd.f32 %v4493_v45, %v2329_v19  ;;  %v2136_v8 = vadd.f32 1e-05, %v2073_v29 }
 0x473   : > { %v2398_v52 = vadd.f32 %v4493_v45, %v2328_v1  ;;  %2898 = vrsqrt.f32 %v2137_v5  ;;  %v2010_v40 = vpop.xlane.xlu1 %2009 }
 0x474   : > { %2462 = vst [vmem:[%s4209_s16 + $0x1b8] sm:$0xff] %v2399_v60  ;;  %2900 = vrsqrt.f32 %v2136_v8  ;;  %v2075_v51 = vmul.f32 0.0078125, %v2010_v40 }
 0x475   : > { %v2895_v23 = vpop.eup %2894  ;;  %2461 = vst [vmem:[%s4209_s16 + $0x1b0] sm:$0xff] %v2398_v52 }
 0x476   : > { %v2897_v54 = vpop.eup %2896  ;;  %v2261_v55 = vmul.f32 %v2895_v23, %v4320_v0  ;;  %v2138_v59 = vadd.f32 1e-05, %v2075_v51  ;;  %v2012_v18 = vpop.xlane.xlu0 %2011 }
 0x477   : > { %v2260_v47 = vmul.f32 %v2897_v54, %v4323_v31  ;;  %v2014_v6 = vpop.xlane.xlu1 %2013  ;;  %v2076_v53 = vmul.f32 0.0078125, %v2012_v18 }
 0x478   : > { %v2331_v16 = vmul.f32 %v4482_v7, %v2261_v55  ;;  %2902 = vrsqrt.f32 %v2138_v59  ;;  %v2077_v2 = vmul.f32 0.0078125, %v2014_v6 }
 0x479   : > { %v2330_v39 = vmul.f32 %v4482_v7, %v2260_v47  ;;  %v2139_v12 = vadd.f32 1e-05, %v2076_v53 }
 0x47a   : > { %v2401_v10 = vadd.f32 %v4493_v45, %v2331_v16  ;;  %v2140_v26 = vadd.f32 1e-05, %v2077_v2 }
 0x47b   : > { %v2400_v0 = vadd.f32 %v4493_v45, %v2330_v39  ;;  %2904 = vrsqrt.f32 %v2139_v12 }
 0x47c   : > { %2464 = vst [vmem:[%s4209_s16 + $0x1c8] sm:$0xff] %v2401_v10  ;;  %2906 = vrsqrt.f32 %v2140_v26 }
 0x47d   : > { %v2899_v31 = vpop.eup %2898  ;;  %2463 = vst [vmem:[%s4209_s16 + $0x1c0] sm:$0xff] %v2400_v0 }
 0x47e   : > { %v2901_v37 = vpop.eup %2900  ;;  %v2263_v22 = vmul.f32 %v2899_v31, %v4338_v42 }
 0x47f   : > { %v2262_v15 = vmul.f32 %v2901_v37, %v4341_v3 }
 0x480   : > { %v2333_v61 = vmul.f32 %v4482_v7, %v2263_v22 }
 0x481   : > { %v2332_v24 = vmul.f32 %v4482_v7, %v2262_v15 }
 0x482   : > { %v2903_v20 = vpop.eup %2902  ;;  %v2403_v41 = vadd.f32 %v4493_v45, %v2333_v61 }
 0x483   : > { %v2402_v35 = vadd.f32 %v4493_v45, %v2332_v24  ;;  %v2264_v63 = vmul.f32 %v2903_v20, %v4352_v57 }
 0x484   : > { %2466 = vst [vmem:[%s4209_s16 + $0x1d8] sm:$0xff] %v2403_v41 }
 0x485   : > { %v2905_v34 = vpop.eup %2904  ;;  %2465 = vst [vmem:[%s4209_s16 + $0x1d0] sm:$0xff] %v2402_v35  ;;  %v2334_v42 = vmul.f32 %v4482_v7, %v2264_v63 }
 0x486   : > { %v2907_v3 = vpop.eup %2906  ;;  %v2265_v4 = vmul.f32 %v2905_v34, %v4361_v56 }
 0x487   : > { %v2404_v46 = vadd.f32 %v4493_v45, %v2334_v42  ;;  %v2266_v17 = vmul.f32 %v2907_v3, %v4364_v44  ;;  %2477 = sbr.rel (!%p4694_p9) target bundleno = 1194 (0x4aa), region = 64 }
 0x488   : > { %v2335_v21 = vmul.f32 %v4482_v7, %v2265_v4 }
 0x489   : > { %2467 = vst [vmem:[%s4209_s16 + $0x1e0] sm:$0xff] %v2404_v46  ;;  %v2336_v30 = vmul.f32 %v4482_v7, %v2266_v17 }
 0x48a   : > { %v2405_v57 = vadd.f32 %v4493_v45, %v2335_v21 }
 0x48b   : > { %v2406_v27 = vadd.f32 %v4493_v45, %v2336_v30 }
 0x48c   : > { %2468 = vst [vmem:[%s4209_s16 + $0x1e8] sm:$0xff] %v2405_v57 }
 0x48d   : > { %2469 = vst [vmem:[%s4209_s16 + $0x1f0] sm:$0xff] %v2406_v27 }
 0x48e   : > { %s4705_s29 = smov (!%p2480_p10, %s2479_s29), 63 }
 0x48f   : > { %s4556_s12 = sshll.u32 %s4705_s29, 7 }
 0x490   : > { %s2484_s15 = ssub.s32 8064, %s4556_s12 }
 0x491   : > { %2485 = vsyncadd %s2471_s22, %s2484_s15  ;;  %p2631_p1 = scmp.ne.s32.totalorder %s4556_s12, 0  ;;  %s2638_s13 = smul.u32 8064, %s3203_s28 }
 0x492   : > { %s2490_s18 = sshll.u32 %s4209_s16, 4  ;;  %s3139_s20 = smov [#allocation8]   ;;  %s4569_s18 = int_to_ptr.vmem [resolvable:$true] %s2490_s18 }
 0x493   : > { %s4567_s10 = scalar_lea.hbm %s4622_s7, %s2638_s13  ;;  %s3057_s8 = scalar_lea.vmem %s4569_s18, %s4556_s12 }
 0x494   : > { %p3058_p3 = scmp.ne.s32.totalorder %s4569_s18, %s3057_s8  ;;  %s3061_s11 = sshll.u32 %s3139_s20, 4  ;;  %s3062_s11 = int_to_ptr.vmem [resolvable:$false] %s3061_s11 }
 0x495   : > { %s3063_s28 = scalar_lea.vmem %s3062_s11, 16128  ;;  %p3064_p11 = scmp.lt.s32.totalorder %s4569_s18, %s3062_s11 }
 0x496   : > { %p3059_p5 = pnand %p3058_p3, %p2631_p1  ;;  %p3065_p13 = scmp.lt.s32.totalorder %s3063_s28, %s3057_s8 }
 0x498   : > { %p3060_p6 = pneg %p3059_p5  ;;  %p3066_p0 = por %p3065_p13, %p3064_p11 }
 0x49a   : > { %p3067_p12 = pnand %p3066_p0, %p3060_p6 }
 0x49c   : > { %3070 = shalt.err (!%p3067_p12)
}
 0x49d   : > { %s3071_s16 = scalar_lea.hbm %s4567_s10, %s4556_s12  ;;  %s3075_s14 = scalar_lea.hbm %s4622_s7, 16000 }
 0x49e   : > { %p3072_p7 = scmp.ne.s32.totalorder %s4567_s10, %s3071_s16  ;;  %p3076_p9 = scmp.lt.u32.totalorder %s4567_s10, %s4622_s7 }
 0x49f   : > { %p3077_p10 = scmp.lt.u32.totalorder %s3075_s14, %s3071_s16  ;;  %p3079_p5 = scmp.lt.u32.totalorder %s3071_s16, %s4567_s10 }
 0x4a0   : > { %p3073_p2 = pnand %p3072_p7, %p2631_p1 }
 0x4a1   : > { %p3078_p3 = por %p3077_p10, %p3076_p9 }
 0x4a2   : > { %p3074_p8 = pneg %p3073_p2 }
 0x4a3   : > { %p3080_p6 = por %p3079_p5, %p3078_p3 }
 0x4a5   : > { %p3081_p11 = pnand %p3080_p6, %p3074_p8 }
 0x4a7   : > { %3084 = shalt.err (!%p3081_p11)
}
 0x4a8   : > { %s3140_s15 = smov 128   ;;  %s3141_s13 = smov 8  }
 0x4a9   : > { %2496 = dma.vmem_to_hbm [thread:$0]  (%p2631_p1), %s4569_s18, %s4556_s12, %s4567_s10, %s2471_s22, %s3140_s15, %s3140_s15, %s3141_s13  }
 0x4aa PF: > { %s4695_s9 = sld [smem:[#allocation14_spill]]  ;;  %s2505_s19 = sand.u32 1, %s3115_s24  }
 0x4ab   : > { %s2506_s8 = scalar_lea.sflag [#allocation4], %s2505_s19 }
 0x4b0   : > { %p4696_p13 = scmp.ne.s32.totalorder %s4695_s9, 0 }
 0x4b2   : > { %p2691_p0 = pnand %p2586_p4, %p4696_p13 }
 0x4b4   : > { %3110 = dma.done.wait (!%p2691_p0), %s2506_s8, 8064  }
 0x4b5   : > { %3112 = vsyncadd (!%p2691_p0), %s2506_s8, 4294959232  ;;  %s4697_s27 = sld [smem:[#allocation12_spill]]  ;;  %s4698_s20 = sld [smem:[#allocation13_spill]] }
 0x4b6   : > { %s4699_s24 = smov %s3119_s25  ;;  %s4700_s25 = smov %s3123_s26 }
 0x4bb   : > { %p21_p12 = scmp.ge.s32.totalorder %s4697_s27, 4   ;;  %s4701_s26 = smov %s4698_s20 }
 0x4bd   :  { %23 = sbr.rel (!%p21_p12) target bundleno = 6 (0x6), region = 101 }
 0x4c4   :  { %2511 = vsyncpa [#allocation3], 1 }
 0x4c5   :  { %2513 = vsyncpa [#allocation3 + $0x1], 1 }
 0x4c6   :  { %2514 = vsyncpa [#allocation6], 1 }
 0x4c7   :  { %2515 = vsyncpa [#allocation4], 1 }
 0x4c8   :  { %2517 = vsyncpa [#allocation4 + $0x1], 1 }

</bundles_post_ra>
